<compile_context>
chip_gen: v7x
topology: tpu7x:2x2x1
jax: 0.10.0
libtpu: 0.0.40
codegen_flags: <defaults>
</compile_context>

<pallas_src>
import functools

import jax
import jax.numpy as jnp
from jax.experimental import pallas as pl
from jax.experimental.pallas import tpu as pltpu


def _round_up(x, m):
    return ((x + m - 1) // m) * m


def _tail_layout(C, L, H, DW, O):
    """Row layout of the packed dense-head slab.

    Each block holds W^T (out_features rows x in_features cols) with the bias
    stored as one extra column at column index `in_features`; every block
    starts at an 8-aligned (sublane-aligned) row offset."""
    blocks = [
        ("ml",   2 * L, L + C),   # fused mean / log_var linear
        ("init", H,     L),       # init_hidden_decoder
        ("d0",   DW,    H + C),   # dense layer 0 (acts on cat([lstm_out, x_case]))
        ("d1",   DW,    DW),      # dense layer 1
        ("last", 10,    DW),      # last_layer
        ("om",   O,     10),      # output_mean
    ]
    layout = {}
    r = 0
    width = 0
    for name, out_f, in_f in blocks:
        layout[name] = (r, out_f, in_f)
        r = _round_up(r + out_f, 8)
        width = max(width, in_f + 1)
    return layout, r, width


def lstm_vae_kernel(T, P1, C, L, H, DW, O, enc_r0, dec_r0, tail_layout,
                    x_case_ref,   # (C, Bt)              f32
                    x_ref,        # (T, P+1, Bt)          f32  (ones row appended)
                    lens_ref,     # (1, Bt)               i32  prefix lengths
                    noise_ref,    # (L, Bt)               f32  reparam noise
                    wx_ref,       # (4L+4H, P+1)          input proj W_ih (+bias col)
                    whh_ref,      # (pad(4L)+pad(4H), max(L,H))  recurrent W_hh
                    tail_ref,     # (R, W)                dense-head W^T + bias cols
                    out_ref):     # (O, Bt)
    f32 = jnp.float32
    Bt = x_case_ref.shape[1]
    G4L = 4 * L
    G = 4 * L + 4 * H
    LH = max(L, H)

    x_case = x_case_ref[...]                    # (C, Bt)
    noise = noise_ref[...]                      # (L, Bt)

    # Hoisted validity-mask broadcast (sublane broadcast, done once); per-step
    # work is only a scalar compare + selects.
    lens_bc = jnp.broadcast_to(lens_ref[...], (LH, Bt))   # (LH, Bt) int32

    def t_w(name, c0=0, c1=None):
        r, out_f, in_f = tail_layout[name]
        c1 = in_f if c1 is None else c1
        return tail_ref[r:r + out_f, c0:c1]

    def t_b(name):
        r, out_f, in_f = tail_layout[name]
        return tail_ref[r:r + out_f, in_f:in_f + 1]

    # ---- hoisted input projection for all T steps of both LSTMs ------------
    # x carries a trailing ones-row so (b_ih + b_hh) is folded into the matmul.
    # Result per step is (4L+4H, Bt) with batch on lanes; enc/dec gate blocks
    # sit at 8-aligned row offsets (free sublane slices).
    wx = wx_ref[...]                             # (G, P+1)
    x_all = x_ref[...]                           # (T, P+1, Bt)
    xg = [jnp.dot(wx, x_all[t], preferred_element_type=f32) for t in range(T)]

    w_enc_hh = whh_ref[enc_r0:enc_r0 + 4 * L, 0:L]     # (4L, L)
    w_dec_hh = whh_ref[dec_r0:dec_r0 + 4 * H, 0:H]     # (4H, H)

    def lstm_step(x_gates, h, c, w_hh, n):
        # One fused recurrent matmul per step; gate order i, f, g, o.
        # Gate splits are 8-sublane-aligned views -> no lane relayout; sigmoid
        # covers the contiguous [i|f] rows in a single activation.
        g = x_gates + jnp.dot(w_hh, h, preferred_element_type=f32)   # (4n, Bt)
        if_g = jax.nn.sigmoid(g[0:2 * n])         # i and f together
        g_g = jnp.tanh(g[2 * n:3 * n])
        o_g = jax.nn.sigmoid(g[3 * n:4 * n])
        c_new = if_g[n:2 * n] * c + if_g[0:n] * g_g
        h_new = o_g * jnp.tanh(c_new)
        return h_new, c_new

    # ---- encoder LSTM (packed-sequence semantics via masked state update) --
    # Fully unrolled: T is static (== lax.fori_loop(..., unroll=True)).
    h = jnp.zeros((L, Bt), f32)
    c = jnp.zeros((L, Bt), f32)
    for t in range(T):
        h_new, c_new = lstm_step(xg[t][0:G4L], h, c, w_enc_hh, L)
        valid = lens_bc[0:L] > t                  # scalar compare only
        h = jnp.where(valid, h_new, h)
        c = jnp.where(valid, c_new, c)
    h_enc = h

    # ---- reparameterization (mean | log_var fused into one weight) ---------
    # W_ml^T @ cat([h_enc; x_case]) realized as two dots on column blocks.
    ml = (jnp.dot(t_w("ml", 0, L), h_enc, preferred_element_type=f32)
          + jnp.dot(t_w("ml", L, L + C), x_case, preferred_element_type=f32)
          + t_b("ml"))                            # (2L, Bt)
    mean = ml[0:L]
    log_var = ml[L:2 * L]
    z = noise * jnp.exp(0.5 * log_var) + mean     # (L, Bt)

    # ---- decoder LSTM (h0 = c0 = init_hidden_decoder(z)) -------------------
    hd = (jnp.dot(t_w("init"), z, preferred_element_type=f32)
          + t_b("init"))                          # (H, Bt)
    h = hd
    c = hd
    for t in range(T):
        h_new, c_new = lstm_step(xg[t][G4L:G], h, c, w_dec_hh, H)
        valid = lens_bc[0:H] > t
        h = jnp.where(valid, h_new, h)
        c = jnp.where(valid, c_new, c)

    # pad_packed_sequence zero-fills padded steps, so output[:, -1, :] is only
    # nonzero for sequences with prefix_len >= T.
    lstm_out = jnp.where(lens_bc[0:H] >= T, h, 0.0)

    # ---- dense head (dropout p=0 == identity) -------------------------------
    # relu over the concat == relu on each half; concat @ W == two split dots.
    lstm_out_r = jnp.maximum(lstm_out, 0.0)
    x_case_r = jnp.maximum(x_case, 0.0)
    hidden = jnp.maximum(
        jnp.dot(t_w("d0", 0, H), lstm_out_r, preferred_element_type=f32)
        + jnp.dot(t_w("d0", H, H + C), x_case_r, preferred_element_type=f32)
        + t_b("d0"), 0.0)
    hidden = jnp.maximum(
        jnp.dot(t_w("d1"), hidden, preferred_element_type=f32)
        + t_b("d1"), 0.0)
    last = jnp.maximum(
        jnp.dot(t_w("last"), hidden, preferred_element_type=f32)
        + t_b("last"), 0.0)
    # final output_mean has NO relu (matches the PyTorch forward); lane-dense
    # (O, Bt) store.
    out_ref[...] = (jnp.dot(t_w("om"), last, preferred_element_type=f32)
                    + t_b("om"))


def pack_params(params, *, P, C, L, H, DW, O):
    """Pack all weights/biases into 3 VMEM slabs, already transposed for the
    batch-on-lanes layout (PyTorch-native (out, in) orientation)."""
    f32 = jnp.float32
    G = 4 * L + 4 * H
    P1 = P + 1

    # input-projection slab: rows = [enc gates ; dec gates], last col = bias
    wx = jnp.zeros((G, P1), f32)
    wx = wx.at[0:4 * L, 0:P].set(params["enc_w_ih"].astype(f32))
    wx = wx.at[0:4 * L, P].set(params["enc_b"].astype(f32))
    wx = wx.at[4 * L:G, 0:P].set(params["dec_w_ih"].astype(f32))
    wx = wx.at[4 * L:G, P].set(params["dec_b"].astype(f32))

    # recurrent-weight slab: encoder block then decoder block, 8-aligned rows
    enc_r0 = 0
    dec_r0 = _round_up(4 * L, 8)
    whh = jnp.zeros((dec_r0 + _round_up(4 * H, 8), max(L, H)), f32)
    whh = whh.at[0:4 * L, 0:L].set(params["enc_w_hh"].astype(f32))
    whh = whh.at[dec_r0:dec_r0 + 4 * H, 0:H].set(params["dec_w_hh"].astype(f32))

    # dense-head slab: W^T block + bias column, 8-aligned row offsets
    layout, rows, width = _tail_layout(C, L, H, DW, O)
    tail = jnp.zeros((rows, width), f32)
    blocks = {
        "ml":   (params["w_ml"],   params["b_ml"]),
        "init": (params["w_init"], params["b_init"]),
        "d0":   (params["w_d0"],   params["b_d0"]),
        "d1":   (params["w_d1"],   params["b_d1"]),
        "last": (params["w_last"], params["b_last"]),
        "om":   (params["w_om"],   params["b_om"]),
    }
    for name, (w, b) in blocks.items():
        r, out_f, in_f = layout[name]
        tail = tail.at[r:r + out_f, 0:in_f].set(w.astype(f32))
        tail = tail.at[r:r + out_f, in_f].set(b.astype(f32))

    return wx, whh, tail, layout, enc_r0, dec_r0


def lstm_vae_forward(x_case, x_process, prefix_len, noise, params, *, b_tile=None):
    """x_case: (B,C) ; x_process: (B,P,T) ; prefix_len: (B,) ; noise: (B,L).

    Returns (B, nr_outputs), matching the PyTorch module's forward()."""
    B, P, T = x_process.shape
    C = x_case.shape[1]
    L = noise.shape[1]
    H = params["w_init"].shape[0]
    DW = params["w_d1"].shape[0]
    O = params["w_om"].shape[0]
    P1 = P + 1

    if b_tile is None:
        # Batch sits on the lane (last) dim, so a partial tile must be a
        # multiple of 128.  Prefer big tiles (MXU rows / per-step overhead) and
        # >= 2 grid tiles so v7x can shard across both TensorCores.
        if B % 256 == 0 and B >= 512:
            b_tile = 256
        elif B % 128 == 0 and B >= 256:
            b_tile = 128
        else:
            b_tile = B
    assert B % b_tile == 0, "batch must be divisible by the batch tile"
    assert b_tile == B or b_tile % 128 == 0, \
        "partial batch tiles must be lane-aligned (multiple of 128)"
    grid = (B // b_tile,)

    wx, whh, tail, layout, enc_r0, dec_r0 = pack_params(
        params, P=P, C=C, L=L, H=H, DW=DW, O=O)

    # ---- batch-on-lanes data layouts (one-time XLA relayouts outside kernel)
    x_case_t = x_case.astype(jnp.float32).T                          # (C, B)
    x_tpb = jnp.transpose(x_process, (2, 1, 0)).astype(jnp.float32)  # (T, P, B)
    ones = jnp.ones((T, 1, B), jnp.float32)                          # bias row
    x_aug = jnp.concatenate([x_tpb, ones], axis=1)                   # (T, P+1, B)
    lens = prefix_len.astype(jnp.int32).reshape(1, B)                # (1, B)
    noise_t = noise.astype(jnp.float32).T                            # (L, B)

    kernel = functools.partial(
        lstm_vae_kernel, T, P1, C, L, H, DW, O, enc_r0, dec_r0, layout)

    def full_spec(a):
        return pl.BlockSpec(a.shape, lambda i: (0,) * a.ndim)

    fn = pl.pallas_call(
        kernel,
        out_shape=jax.ShapeDtypeStruct((O, B), jnp.float32),
        grid=grid,
        in_specs=[
            pl.BlockSpec((C, b_tile), lambda i: (0, i)),
            pl.BlockSpec((T, P1, b_tile), lambda i: (0, 0, i)),
            pl.BlockSpec((1, b_tile), lambda i: (0, i)),
            pl.BlockSpec((L, b_tile), lambda i: (0, i)),
            full_spec(wx), full_spec(whh), full_spec(tail),
        ],
        out_specs=pl.BlockSpec((O, b_tile), lambda i: (0, i)),
        compiler_params=pltpu.CompilerParams(
            dimension_semantics=("parallel",)),
    )
    out_t = fn(x_case_t, x_aug, lens, noise_t, wx, whh, tail)        # (O, B)
    return out_t.T                                                   # (B, O)


def init_params(key, *, P, C, L, H, DW, O):
    """Deterministic synthetic init (PyTorch-style uniform U(-k, k)) in the
    PyTorch-native (out_features, in_features) orientation used by the kernel
    (gate order i, f, g, o; LSTM biases already summed b_ih + b_hh)."""
    ks = iter(jax.random.split(key, 24))

    def u(shape, fan_in):
        k = 1.0 / jnp.sqrt(jnp.float32(max(fan_in, 1)))
        return jax.random.uniform(next(ks), shape, jnp.float32, -k, k)

    return {
        # encoder LSTM: input P -> hidden L
        "enc_w_ih": u((4 * L, P), L),
        "enc_w_hh": u((4 * L, L), L),
        "enc_b":    u((4 * L,), L) + u((4 * L,), L),    # b_ih + b_hh
        # decoder LSTM: input P -> hidden H
        "dec_w_ih": u((4 * H, P), H),
        "dec_w_hh": u((4 * H, H), H),
        "dec_b":    u((4 * H,), H) + u((4 * H,), H),
        # fused mean/log_var: rows [0:L] = mean, [L:2L] = log_var
        "w_ml": u((2 * L, L + C), L + C), "b_ml": u((2 * L,), L + C),
        # init_hidden_decoder: L -> H (nr_lstm_layers = 1)
        "w_init": u((H, L), L), "b_init": u((H,), L),
        # dense head
        "w_d0": u((DW, H + C), H + C), "b_d0": u((DW,), H + C),
        "w_d1": u((DW, DW), DW), "b_d1": u((DW,), DW),
        "w_last": u((10, DW), DW), "b_last": u((10,), DW),
        "w_om": u((O, 10), 10), "b_om": u((O,), 10),
    }


if __name__ == "__main__":
    # Module config: input_size_case=4, input_size_process=8, nr_lstm_layers=1,
    # lstm_size=16, latent_size=16, nr_dense_layers=2, dense_width=32, p=0.0,
    # nr_outputs=1.
    B, T = 8, 8
    P, C = 8, 4          # input_size_process, input_size_case
    L, H = 16, 16        # latent_size, lstm_size
    DW, O = 32, 1        # dense_width, nr_outputs

    key = jax.random.PRNGKey(0)
    k_case, k_proc, k_noise, k_param = jax.random.split(key, 4)

    x_case = jax.random.normal(k_case, (B, C), jnp.float32)
    x_process = jax.random.normal(k_proc, (B, P, T), jnp.float32)   # (batch, features, seq)
    prefix_len = jnp.array([T, T - 2, 3, T, 1, 5, T, 2], dtype=jnp.int32)
    # torch.randn reparameterization noise, generated deterministically here
    noise = jax.random.normal(k_noise, (B, L), jnp.float32)

    params = init_params(k_param, P=P, C=C, L=L, H=H, DW=DW, O=O)

    out = lstm_vae_forward(x_case, x_process, prefix_len, noise, params)
    out = jax.block_until_ready(out)

    assert out.shape == (B, O), out.shape
    assert bool(jnp.all(jnp.isfinite(out)))
    print("KERNEL_OK")
</pallas_src>

<mosaic_0001>
module attributes {stable_mosaic.version = 11 : i64} {
  func.func @lstm_vae_kernel(%arg0: i32, %arg1: memref<4x8xf32, #tpu.memory_space<vmem>>, %arg2: memref<8x9x8xf32, #tpu.memory_space<vmem>>, %arg3: memref<1x8xi32, #tpu.memory_space<vmem>>, %arg4: memref<16x8xf32, #tpu.memory_space<vmem>>, %arg5: memref<128x9xf32, #tpu.memory_space<vmem>>, %arg6: memref<128x16xf32, #tpu.memory_space<vmem>>, %arg7: memref<136x33xf32, #tpu.memory_space<vmem>>, %arg8: memref<1x8xf32, #tpu.memory_space<vmem>>) attributes {dimension_semantics = [#tpu.dimension_semantics<parallel>], iteration_bounds = array<i64: 1>, scalar_prefetch = 0 : i64, scratch_operands = 0 : i64, tpu.core_type = #tpu.core_type<tc>, window_params = [{transform_indices = @transform_0, window_bounds = array<i64: 4, 8>}, {transform_indices = @transform_1, window_bounds = array<i64: 8, 9, 8>}, {transform_indices = @transform_2, window_bounds = array<i64: 1, 8>}, {transform_indices = @transform_3, window_bounds = array<i64: 16, 8>}, {pipeline_mode = #tpu.pipeline_mode<synchronous>, transform_indices = @transform_4, window_bounds = array<i64: 128, 9>}, {pipeline_mode = #tpu.pipeline_mode<synchronous>, transform_indices = @transform_5, window_bounds = array<i64: 128, 16>}, {pipeline_mode = #tpu.pipeline_mode<synchronous>, transform_indices = @transform_6, window_bounds = array<i64: 136, 33>}, {transform_indices = @transform_7, window_bounds = array<i64: 1, 8>}]} {
    %c0 = arith.constant 0 : index
    %c0_0 = arith.constant 0 : index
    %0 = vector.load %arg1[%c0, %c0_0] : memref<4x8xf32, #tpu.memory_space<vmem>>, vector<4x8xf32>
    %c0_1 = arith.constant 0 : index
    %c0_2 = arith.constant 0 : index
    %1 = vector.load %arg4[%c0_1, %c0_2] : memref<16x8xf32, #tpu.memory_space<vmem>>, vector<16x8xf32>
    %c0_3 = arith.constant 0 : index
    %c0_4 = arith.constant 0 : index
    %2 = vector.load %arg3[%c0_3, %c0_4] : memref<1x8xi32, #tpu.memory_space<vmem>>, vector<1x8xi32>
    %3 = vector.shape_cast %2 : vector<1x8xi32> to vector<1x8xi32>
    %4 = vector.broadcast %3 : vector<1x8xi32> to vector<16x8xi32>
    %c0_5 = arith.constant 0 : index
    %c0_6 = arith.constant 0 : index
    %5 = vector.load %arg5[%c0_5, %c0_6] : memref<128x9xf32, #tpu.memory_space<vmem>>, vector<128x9xf32>
    %c0_7 = arith.constant 0 : index
    %c0_8 = arith.constant 0 : index
    %c0_9 = arith.constant 0 : index
    %6 = vector.load %arg2[%c0_7, %c0_8, %c0_9] : memref<8x9x8xf32, #tpu.memory_space<vmem>>, vector<8x9x8xf32>
    %7 = vector.extract_strided_slice %6 {offsets = [0, 0, 0], sizes = [1, 9, 8], strides = [1, 1, 1]} : vector<8x9x8xf32> to vector<1x9x8xf32>
    %8 = vector.shape_cast %7 : vector<1x9x8xf32> to vector<9x8xf32>
    %cst = arith.constant dense<0.000000e+00> : vector<128x8xf32>
    %9 = tpu.matmul %5, %8, %cst {dimension_numbers = #tpu.dot_dimension_numbers<[1], [0], [0], [1], [0, 0, 1, 1], [], []>} : vector<128x9xf32>, vector<9x8xf32>, vector<128x8xf32> -> vector<128x8xf32>
    %10 = vector.extract_strided_slice %6 {offsets = [1, 0, 0], sizes = [1, 9, 8], strides = [1, 1, 1]} : vector<8x9x8xf32> to vector<1x9x8xf32>
    %11 = vector.shape_cast %10 : vector<1x9x8xf32> to vector<9x8xf32>
    %cst_10 = arith.constant dense<0.000000e+00> : vector<128x8xf32>
    %12 = tpu.matmul %5, %11, %cst_10 {dimension_numbers = #tpu.dot_dimension_numbers<[1], [0], [0], [1], [0, 0, 1, 1], [], []>} : vector<128x9xf32>, vector<9x8xf32>, vector<128x8xf32> -> vector<128x8xf32>
    %13 = vector.extract_strided_slice %6 {offsets = [2, 0, 0], sizes = [1, 9, 8], strides = [1, 1, 1]} : vector<8x9x8xf32> to vector<1x9x8xf32>
    %14 = vector.shape_cast %13 : vector<1x9x8xf32> to vector<9x8xf32>
    %cst_11 = arith.constant dense<0.000000e+00> : vector<128x8xf32>
    %15 = tpu.matmul %5, %14, %cst_11 {dimension_numbers = #tpu.dot_dimension_numbers<[1], [0], [0], [1], [0, 0, 1, 1], [], []>} : vector<128x9xf32>, vector<9x8xf32>, vector<128x8xf32> -> vector<128x8xf32>
    %16 = vector.extract_strided_slice %6 {offsets = [3, 0, 0], sizes = [1, 9, 8], strides = [1, 1, 1]} : vector<8x9x8xf32> to vector<1x9x8xf32>
    %17 = vector.shape_cast %16 : vector<1x9x8xf32> to vector<9x8xf32>
    %cst_12 = arith.constant dense<0.000000e+00> : vector<128x8xf32>
    %18 = tpu.matmul %5, %17, %cst_12 {dimension_numbers = #tpu.dot_dimension_numbers<[1], [0], [0], [1], [0, 0, 1, 1], [], []>} : vector<128x9xf32>, vector<9x8xf32>, vector<128x8xf32> -> vector<128x8xf32>
    %19 = vector.extract_strided_slice %6 {offsets = [4, 0, 0], sizes = [1, 9, 8], strides = [1, 1, 1]} : vector<8x9x8xf32> to vector<1x9x8xf32>
    %20 = vector.shape_cast %19 : vector<1x9x8xf32> to vector<9x8xf32>
    %cst_13 = arith.constant dense<0.000000e+00> : vector<128x8xf32>
    %21 = tpu.matmul %5, %20, %cst_13 {dimension_numbers = #tpu.dot_dimension_numbers<[1], [0], [0], [1], [0, 0, 1, 1], [], []>} : vector<128x9xf32>, vector<9x8xf32>, vector<128x8xf32> -> vector<128x8xf32>
    %22 = vector.extract_strided_slice %6 {offsets = [5, 0, 0], sizes = [1, 9, 8], strides = [1, 1, 1]} : vector<8x9x8xf32> to vector<1x9x8xf32>
    %23 = vector.shape_cast %22 : vector<1x9x8xf32> to vector<9x8xf32>
    %cst_14 = arith.constant dense<0.000000e+00> : vector<128x8xf32>
    %24 = tpu.matmul %5, %23, %cst_14 {dimension_numbers = #tpu.dot_dimension_numbers<[1], [0], [0], [1], [0, 0, 1, 1], [], []>} : vector<128x9xf32>, vector<9x8xf32>, vector<128x8xf32> -> vector<128x8xf32>
    %25 = vector.extract_strided_slice %6 {offsets = [6, 0, 0], sizes = [1, 9, 8], strides = [1, 1, 1]} : vector<8x9x8xf32> to vector<1x9x8xf32>
    %26 = vector.shape_cast %25 : vector<1x9x8xf32> to vector<9x8xf32>
    %cst_15 = arith.constant dense<0.000000e+00> : vector<128x8xf32>
    %27 = tpu.matmul %5, %26, %cst_15 {dimension_numbers = #tpu.dot_dimension_numbers<[1], [0], [0], [1], [0, 0, 1, 1], [], []>} : vector<128x9xf32>, vector<9x8xf32>, vector<128x8xf32> -> vector<128x8xf32>
    %28 = vector.extract_strided_slice %6 {offsets = [7, 0, 0], sizes = [1, 9, 8], strides = [1, 1, 1]} : vector<8x9x8xf32> to vector<1x9x8xf32>
    %29 = vector.shape_cast %28 : vector<1x9x8xf32> to vector<9x8xf32>
    %cst_16 = arith.constant dense<0.000000e+00> : vector<128x8xf32>
    %30 = tpu.matmul %5, %29, %cst_16 {dimension_numbers = #tpu.dot_dimension_numbers<[1], [0], [0], [1], [0, 0, 1, 1], [], []>} : vector<128x9xf32>, vector<9x8xf32>, vector<128x8xf32> -> vector<128x8xf32>
    %c0_17 = arith.constant 0 : index
    %c0_18 = arith.constant 0 : index
    %31 = vector.load %arg6[%c0_17, %c0_18] : memref<128x16xf32, #tpu.memory_space<vmem>>, vector<64x16xf32>
    %c64 = arith.constant 64 : index
    %c0_19 = arith.constant 0 : index
    %32 = vector.load %arg6[%c64, %c0_19] : memref<128x16xf32, #tpu.memory_space<vmem>>, vector<64x16xf32>
    %cst_20 = arith.constant 0.000000e+00 : f32
    %33 = vector.broadcast %cst_20 : f32 to vector<16x8xf32>
    %cst_21 = arith.constant 0.000000e+00 : f32
    %34 = vector.broadcast %cst_21 : f32 to vector<16x8xf32>
    %35 = vector.extract_strided_slice %9 {offsets = [0, 0], sizes = [64, 8], strides = [1, 1]} : vector<128x8xf32> to vector<64x8xf32>
    %cst_22 = arith.constant dense<0.000000e+00> : vector<64x8xf32>
    %36 = tpu.matmul %31, %33, %cst_22 {dimension_numbers = #tpu.dot_dimension_numbers<[1], [0], [0], [1], [0, 0, 1, 1], [], []>} : vector<64x16xf32>, vector<16x8xf32>, vector<64x8xf32> -> vector<64x8xf32>
    %37 = arith.addf %35, %36 : vector<64x8xf32>
    %38 = vector.extract_strided_slice %37 {offsets = [0, 0], sizes = [32, 8], strides = [1, 1]} : vector<64x8xf32> to vector<32x8xf32>
    %39 = arith.negf %38 : vector<32x8xf32>
    %40 = math.exp %39 : vector<32x8xf32>
    %cst_23 = arith.constant 1.000000e+00 : f32
    %41 = vector.broadcast %cst_23 : f32 to vector<32x8xf32>
    %42 = arith.addf %41, %40 : vector<32x8xf32>
    %43 = arith.divf %41, %42 : vector<32x8xf32>
    %44 = vector.extract_strided_slice %37 {offsets = [32, 0], sizes = [16, 8], strides = [1, 1]} : vector<64x8xf32> to vector<16x8xf32>
    %45 = math.tanh %44 : vector<16x8xf32>
    %46 = vector.extract_strided_slice %37 {offsets = [48, 0], sizes = [16, 8], strides = [1, 1]} : vector<64x8xf32> to vector<16x8xf32>
    %47 = arith.negf %46 : vector<16x8xf32>
    %48 = math.exp %47 : vector<16x8xf32>
    %cst_24 = arith.constant 1.000000e+00 : f32
    %49 = vector.broadcast %cst_24 : f32 to vector<16x8xf32>
    %50 = arith.addf %49, %48 : vector<16x8xf32>
    %51 = arith.divf %49, %50 : vector<16x8xf32>
    %52 = vector.extract_strided_slice %43 {offsets = [16, 0], sizes = [16, 8], strides = [1, 1]} : vector<32x8xf32> to vector<16x8xf32>
    %53 = arith.mulf %52, %34 : vector<16x8xf32>
    %54 = vector.extract_strided_slice %43 {offsets = [0, 0], sizes = [16, 8], strides = [1, 1]} : vector<32x8xf32> to vector<16x8xf32>
    %55 = arith.mulf %54, %45 : vector<16x8xf32>
    %56 = arith.addf %53, %55 : vector<16x8xf32>
    %57 = math.tanh %56 : vector<16x8xf32>
    %58 = arith.mulf %51, %57 : vector<16x8xf32>
    %c0_i32 = arith.constant 0 : i32
    %59 = vector.broadcast %c0_i32 : i32 to vector<16x8xi32>
    %60 = arith.cmpi sgt, %4, %59 : vector<16x8xi32>
    %61 = arith.select %60, %58, %33 : vector<16x8xi1>, vector<16x8xf32>
    %62 = arith.select %60, %56, %34 : vector<16x8xi1>, vector<16x8xf32>
    %63 = vector.extract_strided_slice %12 {offsets = [0, 0], sizes = [64, 8], strides = [1, 1]} : vector<128x8xf32> to vector<64x8xf32>
    %cst_25 = arith.constant dense<0.000000e+00> : vector<64x8xf32>
    %64 = tpu.matmul %31, %61, %cst_25 {dimension_numbers = #tpu.dot_dimension_numbers<[1], [0], [0], [1], [0, 0, 1, 1], [], []>} : vector<64x16xf32>, vector<16x8xf32>, vector<64x8xf32> -> vector<64x8xf32>
    %65 = arith.addf %63, %64 : vector<64x8xf32>
    %66 = vector.extract_strided_slice %65 {offsets = [0, 0], sizes = [32, 8], strides = [1, 1]} : vector<64x8xf32> to vector<32x8xf32>
    %67 = arith.negf %66 : vector<32x8xf32>
    %68 = math.exp %67 : vector<32x8xf32>
    %cst_26 = arith.constant 1.000000e+00 : f32
    %69 = vector.broadcast %cst_26 : f32 to vector<32x8xf32>
    %70 = arith.addf %69, %68 : vector<32x8xf32>
    %71 = arith.divf %69, %70 : vector<32x8xf32>
    %72 = vector.extract_strided_slice %65 {offsets = [32, 0], sizes = [16, 8], strides = [1, 1]} : vector<64x8xf32> to vector<16x8xf32>
    %73 = math.tanh %72 : vector<16x8xf32>
    %74 = vector.extract_strided_slice %65 {offsets = [48, 0], sizes = [16, 8], strides = [1, 1]} : vector<64x8xf32> to vector<16x8xf32>
    %75 = arith.negf %74 : vector<16x8xf32>
    %76 = math.exp %75 : vector<16x8xf32>
    %cst_27 = arith.constant 1.000000e+00 : f32
    %77 = vector.broadcast %cst_27 : f32 to vector<16x8xf32>
    %78 = arith.addf %77, %76 : vector<16x8xf32>
    %79 = arith.divf %77, %78 : vector<16x8xf32>
    %80 = vector.extract_strided_slice %71 {offsets = [16, 0], sizes = [16, 8], strides = [1, 1]} : vector<32x8xf32> to vector<16x8xf32>
    %81 = arith.mulf %80, %62 : vector<16x8xf32>
    %82 = vector.extract_strided_slice %71 {offsets = [0, 0], sizes = [16, 8], strides = [1, 1]} : vector<32x8xf32> to vector<16x8xf32>
    %83 = arith.mulf %82, %73 : vector<16x8xf32>
    %84 = arith.addf %81, %83 : vector<16x8xf32>
    %85 = math.tanh %84 : vector<16x8xf32>
    %86 = arith.mulf %79, %85 : vector<16x8xf32>
    %c1_i32 = arith.constant 1 : i32
    %87 = vector.broadcast %c1_i32 : i32 to vector<16x8xi32>
    %88 = arith.cmpi sgt, %4, %87 : vector<16x8xi32>
    %89 = arith.select %88, %86, %61 : vector<16x8xi1>, vector<16x8xf32>
    %90 = arith.select %88, %84, %62 : vector<16x8xi1>, vector<16x8xf32>
    %91 = vector.extract_strided_slice %15 {offsets = [0, 0], sizes = [64, 8], strides = [1, 1]} : vector<128x8xf32> to vector<64x8xf32>
    %cst_28 = arith.constant dense<0.000000e+00> : vector<64x8xf32>
    %92 = tpu.matmul %31, %89, %cst_28 {dimension_numbers = #tpu.dot_dimension_numbers<[1], [0], [0], [1], [0, 0, 1, 1], [], []>} : vector<64x16xf32>, vector<16x8xf32>, vector<64x8xf32> -> vector<64x8xf32>
    %93 = arith.addf %91, %92 : vector<64x8xf32>
    %94 = vector.extract_strided_slice %93 {offsets = [0, 0], sizes = [32, 8], strides = [1, 1]} : vector<64x8xf32> to vector<32x8xf32>
    %95 = arith.negf %94 : vector<32x8xf32>
    %96 = math.exp %95 : vector<32x8xf32>
    %cst_29 = arith.constant 1.000000e+00 : f32
    %97 = vector.broadcast %cst_29 : f32 to vector<32x8xf32>
    %98 = arith.addf %97, %96 : vector<32x8xf32>
    %99 = arith.divf %97, %98 : vector<32x8xf32>
    %100 = vector.extract_strided_slice %93 {offsets = [32, 0], sizes = [16, 8], strides = [1, 1]} : vector<64x8xf32> to vector<16x8xf32>
    %101 = math.tanh %100 : vector<16x8xf32>
    %102 = vector.extract_strided_slice %93 {offsets = [48, 0], sizes = [16, 8], strides = [1, 1]} : vector<64x8xf32> to vector<16x8xf32>
    %103 = arith.negf %102 : vector<16x8xf32>
    %104 = math.exp %103 : vector<16x8xf32>
    %cst_30 = arith.constant 1.000000e+00 : f32
    %105 = vector.broadcast %cst_30 : f32 to vector<16x8xf32>
    %106 = arith.addf %105, %104 : vector<16x8xf32>
    %107 = arith.divf %105, %106 : vector<16x8xf32>
    %108 = vector.extract_strided_slice %99 {offsets = [16, 0], sizes = [16, 8], strides = [1, 1]} : vector<32x8xf32> to vector<16x8xf32>
    %109 = arith.mulf %108, %90 : vector<16x8xf32>
    %110 = vector.extract_strided_slice %99 {offsets = [0, 0], sizes = [16, 8], strides = [1, 1]} : vector<32x8xf32> to vector<16x8xf32>
    %111 = arith.mulf %110, %101 : vector<16x8xf32>
    %112 = arith.addf %109, %111 : vector<16x8xf32>
    %113 = math.tanh %112 : vector<16x8xf32>
    %114 = arith.mulf %107, %113 : vector<16x8xf32>
    %c2_i32 = arith.constant 2 : i32
    %115 = vector.broadcast %c2_i32 : i32 to vector<16x8xi32>
    %116 = arith.cmpi sgt, %4, %115 : vector<16x8xi32>
    %117 = arith.select %116, %114, %89 : vector<16x8xi1>, vector<16x8xf32>
    %118 = arith.select %116, %112, %90 : vector<16x8xi1>, vector<16x8xf32>
    %119 = vector.extract_strided_slice %18 {offsets = [0, 0], sizes = [64, 8], strides = [1, 1]} : vector<128x8xf32> to vector<64x8xf32>
    %cst_31 = arith.constant dense<0.000000e+00> : vector<64x8xf32>
    %120 = tpu.matmul %31, %117, %cst_31 {dimension_numbers = #tpu.dot_dimension_numbers<[1], [0], [0], [1], [0, 0, 1, 1], [], []>} : vector<64x16xf32>, vector<16x8xf32>, vector<64x8xf32> -> vector<64x8xf32>
    %121 = arith.addf %119, %120 : vector<64x8xf32>
    %122 = vector.extract_strided_slice %121 {offsets = [0, 0], sizes = [32, 8], strides = [1, 1]} : vector<64x8xf32> to vector<32x8xf32>
    %123 = arith.negf %122 : vector<32x8xf32>
    %124 = math.exp %123 : vector<32x8xf32>
    %cst_32 = arith.constant 1.000000e+00 : f32
    %125 = vector.broadcast %cst_32 : f32 to vector<32x8xf32>
    %126 = arith.addf %125, %124 : vector<32x8xf32>
    %127 = arith.divf %125, %126 : vector<32x8xf32>
    %128 = vector.extract_strided_slice %121 {offsets = [32, 0], sizes = [16, 8], strides = [1, 1]} : vector<64x8xf32> to vector<16x8xf32>
    %129 = math.tanh %128 : vector<16x8xf32>
    %130 = vector.extract_strided_slice %121 {offsets = [48, 0], sizes = [16, 8], strides = [1, 1]} : vector<64x8xf32> to vector<16x8xf32>
    %131 = arith.negf %130 : vector<16x8xf32>
    %132 = math.exp %131 : vector<16x8xf32>
    %cst_33 = arith.constant 1.000000e+00 : f32
    %133 = vector.broadcast %cst_33 : f32 to vector<16x8xf32>
    %134 = arith.addf %133, %132 : vector<16x8xf32>
    %135 = arith.divf %133, %134 : vector<16x8xf32>
    %136 = vector.extract_strided_slice %127 {offsets = [16, 0], sizes = [16, 8], strides = [1, 1]} : vector<32x8xf32> to vector<16x8xf32>
    %137 = arith.mulf %136, %118 : vector<16x8xf32>
    %138 = vector.extract_strided_slice %127 {offsets = [0, 0], sizes = [16, 8], strides = [1, 1]} : vector<32x8xf32> to vector<16x8xf32>
    %139 = arith.mulf %138, %129 : vector<16x8xf32>
    %140 = arith.addf %137, %139 : vector<16x8xf32>
    %141 = math.tanh %140 : vector<16x8xf32>
    %142 = arith.mulf %135, %141 : vector<16x8xf32>
    %c3_i32 = arith.constant 3 : i32
    %143 = vector.broadcast %c3_i32 : i32 to vector<16x8xi32>
    %144 = arith.cmpi sgt, %4, %143 : vector<16x8xi32>
    %145 = arith.select %144, %142, %117 : vector<16x8xi1>, vector<16x8xf32>
    %146 = arith.select %144, %140, %118 : vector<16x8xi1>, vector<16x8xf32>
    %147 = vector.extract_strided_slice %21 {offsets = [0, 0], sizes = [64, 8], strides = [1, 1]} : vector<128x8xf32> to vector<64x8xf32>
    %cst_34 = arith.constant dense<0.000000e+00> : vector<64x8xf32>
    %148 = tpu.matmul %31, %145, %cst_34 {dimension_numbers = #tpu.dot_dimension_numbers<[1], [0], [0], [1], [0, 0, 1, 1], [], []>} : vector<64x16xf32>, vector<16x8xf32>, vector<64x8xf32> -> vector<64x8xf32>
    %149 = arith.addf %147, %148 : vector<64x8xf32>
    %150 = vector.extract_strided_slice %149 {offsets = [0, 0], sizes = [32, 8], strides = [1, 1]} : vector<64x8xf32> to vector<32x8xf32>
    %151 = arith.negf %150 : vector<32x8xf32>
    %152 = math.exp %151 : vector<32x8xf32>
    %cst_35 = arith.constant 1.000000e+00 : f32
    %153 = vector.broadcast %cst_35 : f32 to vector<32x8xf32>
    %154 = arith.addf %153, %152 : vector<32x8xf32>
    %155 = arith.divf %153, %154 : vector<32x8xf32>
    %156 = vector.extract_strided_slice %149 {offsets = [32, 0], sizes = [16, 8], strides = [1, 1]} : vector<64x8xf32> to vector<16x8xf32>
    %157 = math.tanh %156 : vector<16x8xf32>
    %158 = vector.extract_strided_slice %149 {offsets = [48, 0], sizes = [16, 8], strides = [1, 1]} : vector<64x8xf32> to vector<16x8xf32>
    %159 = arith.negf %158 : vector<16x8xf32>
    %160 = math.exp %159 : vector<16x8xf32>
    %cst_36 = arith.constant 1.000000e+00 : f32
    %161 = vector.broadcast %cst_36 : f32 to vector<16x8xf32>
    %162 = arith.addf %161, %160 : vector<16x8xf32>
    %163 = arith.divf %161, %162 : vector<16x8xf32>
    %164 = vector.extract_strided_slice %155 {offsets = [16, 0], sizes = [16, 8], strides = [1, 1]} : vector<32x8xf32> to vector<16x8xf32>
    %165 = arith.mulf %164, %146 : vector<16x8xf32>
    %166 = vector.extract_strided_slice %155 {offsets = [0, 0], sizes = [16, 8], strides = [1, 1]} : vector<32x8xf32> to vector<16x8xf32>
    %167 = arith.mulf %166, %157 : vector<16x8xf32>
    %168 = arith.addf %165, %167 : vector<16x8xf32>
    %169 = math.tanh %168 : vector<16x8xf32>
    %170 = arith.mulf %163, %169 : vector<16x8xf32>
    %c4_i32 = arith.constant 4 : i32
    %171 = vector.broadcast %c4_i32 : i32 to vector<16x8xi32>
    %172 = arith.cmpi sgt, %4, %171 : vector<16x8xi32>
    %173 = arith.select %172, %170, %145 : vector<16x8xi1>, vector<16x8xf32>
    %174 = arith.select %172, %168, %146 : vector<16x8xi1>, vector<16x8xf32>
    %175 = vector.extract_strided_slice %24 {offsets = [0, 0], sizes = [64, 8], strides = [1, 1]} : vector<128x8xf32> to vector<64x8xf32>
    %cst_37 = arith.constant dense<0.000000e+00> : vector<64x8xf32>
    %176 = tpu.matmul %31, %173, %cst_37 {dimension_numbers = #tpu.dot_dimension_numbers<[1], [0], [0], [1], [0, 0, 1, 1], [], []>} : vector<64x16xf32>, vector<16x8xf32>, vector<64x8xf32> -> vector<64x8xf32>
    %177 = arith.addf %175, %176 : vector<64x8xf32>
    %178 = vector.extract_strided_slice %177 {offsets = [0, 0], sizes = [32, 8], strides = [1, 1]} : vector<64x8xf32> to vector<32x8xf32>
    %179 = arith.negf %178 : vector<32x8xf32>
    %180 = math.exp %179 : vector<32x8xf32>
    %cst_38 = arith.constant 1.000000e+00 : f32
    %181 = vector.broadcast %cst_38 : f32 to vector<32x8xf32>
    %182 = arith.addf %181, %180 : vector<32x8xf32>
    %183 = arith.divf %181, %182 : vector<32x8xf32>
    %184 = vector.extract_strided_slice %177 {offsets = [32, 0], sizes = [16, 8], strides = [1, 1]} : vector<64x8xf32> to vector<16x8xf32>
    %185 = math.tanh %184 : vector<16x8xf32>
    %186 = vector.extract_strided_slice %177 {offsets = [48, 0], sizes = [16, 8], strides = [1, 1]} : vector<64x8xf32> to vector<16x8xf32>
    %187 = arith.negf %186 : vector<16x8xf32>
    %188 = math.exp %187 : vector<16x8xf32>
    %cst_39 = arith.constant 1.000000e+00 : f32
    %189 = vector.broadcast %cst_39 : f32 to vector<16x8xf32>
    %190 = arith.addf %189, %188 : vector<16x8xf32>
    %191 = arith.divf %189, %190 : vector<16x8xf32>
    %192 = vector.extract_strided_slice %183 {offsets = [16, 0], sizes = [16, 8], strides = [1, 1]} : vector<32x8xf32> to vector<16x8xf32>
    %193 = arith.mulf %192, %174 : vector<16x8xf32>
    %194 = vector.extract_strided_slice %183 {offsets = [0, 0], sizes = [16, 8], strides = [1, 1]} : vector<32x8xf32> to vector<16x8xf32>
    %195 = arith.mulf %194, %185 : vector<16x8xf32>
    %196 = arith.addf %193, %195 : vector<16x8xf32>
    %197 = math.tanh %196 : vector<16x8xf32>
    %198 = arith.mulf %191, %197 : vector<16x8xf32>
    %c5_i32 = arith.constant 5 : i32
    %199 = vector.broadcast %c5_i32 : i32 to vector<16x8xi32>
    %200 = arith.cmpi sgt, %4, %199 : vector<16x8xi32>
    %201 = arith.select %200, %198, %173 : vector<16x8xi1>, vector<16x8xf32>
    %202 = arith.select %200, %196, %174 : vector<16x8xi1>, vector<16x8xf32>
    %203 = vector.extract_strided_slice %27 {offsets = [0, 0], sizes = [64, 8], strides = [1, 1]} : vector<128x8xf32> to vector<64x8xf32>
    %cst_40 = arith.constant dense<0.000000e+00> : vector<64x8xf32>
    %204 = tpu.matmul %31, %201, %cst_40 {dimension_numbers = #tpu.dot_dimension_numbers<[1], [0], [0], [1], [0, 0, 1, 1], [], []>} : vector<64x16xf32>, vector<16x8xf32>, vector<64x8xf32> -> vector<64x8xf32>
    %205 = arith.addf %203, %204 : vector<64x8xf32>
    %206 = vector.extract_strided_slice %205 {offsets = [0, 0], sizes = [32, 8], strides = [1, 1]} : vector<64x8xf32> to vector<32x8xf32>
    %207 = arith.negf %206 : vector<32x8xf32>
    %208 = math.exp %207 : vector<32x8xf32>
    %cst_41 = arith.constant 1.000000e+00 : f32
    %209 = vector.broadcast %cst_41 : f32 to vector<32x8xf32>
    %210 = arith.addf %209, %208 : vector<32x8xf32>
    %211 = arith.divf %209, %210 : vector<32x8xf32>
    %212 = vector.extract_strided_slice %205 {offsets = [32, 0], sizes = [16, 8], strides = [1, 1]} : vector<64x8xf32> to vector<16x8xf32>
    %213 = math.tanh %212 : vector<16x8xf32>
    %214 = vector.extract_strided_slice %205 {offsets = [48, 0], sizes = [16, 8], strides = [1, 1]} : vector<64x8xf32> to vector<16x8xf32>
    %215 = arith.negf %214 : vector<16x8xf32>
    %216 = math.exp %215 : vector<16x8xf32>
    %cst_42 = arith.constant 1.000000e+00 : f32
    %217 = vector.broadcast %cst_42 : f32 to vector<16x8xf32>
    %218 = arith.addf %217, %216 : vector<16x8xf32>
    %219 = arith.divf %217, %218 : vector<16x8xf32>
    %220 = vector.extract_strided_slice %211 {offsets = [16, 0], sizes = [16, 8], strides = [1, 1]} : vector<32x8xf32> to vector<16x8xf32>
    %221 = arith.mulf %220, %202 : vector<16x8xf32>
    %222 = vector.extract_strided_slice %211 {offsets = [0, 0], sizes = [16, 8], strides = [1, 1]} : vector<32x8xf32> to vector<16x8xf32>
    %223 = arith.mulf %222, %213 : vector<16x8xf32>
    %224 = arith.addf %221, %223 : vector<16x8xf32>
    %225 = math.tanh %224 : vector<16x8xf32>
    %226 = arith.mulf %219, %225 : vector<16x8xf32>
    %c6_i32 = arith.constant 6 : i32
    %227 = vector.broadcast %c6_i32 : i32 to vector<16x8xi32>
    %228 = arith.cmpi sgt, %4, %227 : vector<16x8xi32>
    %229 = arith.select %228, %226, %201 : vector<16x8xi1>, vector<16x8xf32>
    %230 = arith.select %228, %224, %202 : vector<16x8xi1>, vector<16x8xf32>
    %231 = vector.extract_strided_slice %30 {offsets = [0, 0], sizes = [64, 8], strides = [1, 1]} : vector<128x8xf32> to vector<64x8xf32>
    %cst_43 = arith.constant dense<0.000000e+00> : vector<64x8xf32>
    %232 = tpu.matmul %31, %229, %cst_43 {dimension_numbers = #tpu.dot_dimension_numbers<[1], [0], [0], [1], [0, 0, 1, 1], [], []>} : vector<64x16xf32>, vector<16x8xf32>, vector<64x8xf32> -> vector<64x8xf32>
    %233 = arith.addf %231, %232 : vector<64x8xf32>
    %234 = vector.extract_strided_slice %233 {offsets = [0, 0], sizes = [32, 8], strides = [1, 1]} : vector<64x8xf32> to vector<32x8xf32>
    %235 = arith.negf %234 : vector<32x8xf32>
    %236 = math.exp %235 : vector<32x8xf32>
    %cst_44 = arith.constant 1.000000e+00 : f32
    %237 = vector.broadcast %cst_44 : f32 to vector<32x8xf32>
    %238 = arith.addf %237, %236 : vector<32x8xf32>
    %239 = arith.divf %237, %238 : vector<32x8xf32>
    %240 = vector.extract_strided_slice %233 {offsets = [32, 0], sizes = [16, 8], strides = [1, 1]} : vector<64x8xf32> to vector<16x8xf32>
    %241 = math.tanh %240 : vector<16x8xf32>
    %242 = vector.extract_strided_slice %233 {offsets = [48, 0], sizes = [16, 8], strides = [1, 1]} : vector<64x8xf32> to vector<16x8xf32>
    %243 = arith.negf %242 : vector<16x8xf32>
    %244 = math.exp %243 : vector<16x8xf32>
    %cst_45 = arith.constant 1.000000e+00 : f32
    %245 = vector.broadcast %cst_45 : f32 to vector<16x8xf32>
    %246 = arith.addf %245, %244 : vector<16x8xf32>
    %247 = arith.divf %245, %246 : vector<16x8xf32>
    %248 = vector.extract_strided_slice %239 {offsets = [16, 0], sizes = [16, 8], strides = [1, 1]} : vector<32x8xf32> to vector<16x8xf32>
    %249 = arith.mulf %248, %230 : vector<16x8xf32>
    %250 = vector.extract_strided_slice %239 {offsets = [0, 0], sizes = [16, 8], strides = [1, 1]} : vector<32x8xf32> to vector<16x8xf32>
    %251 = arith.mulf %250, %241 : vector<16x8xf32>
    %252 = arith.addf %249, %251 : vector<16x8xf32>
    %253 = math.tanh %252 : vector<16x8xf32>
    %254 = arith.mulf %247, %253 : vector<16x8xf32>
    %c7_i32 = arith.constant 7 : i32
    %255 = vector.broadcast %c7_i32 : i32 to vector<16x8xi32>
    %256 = arith.cmpi sgt, %4, %255 : vector<16x8xi32>
    %257 = arith.select %256, %254, %229 : vector<16x8xi1>, vector<16x8xf32>
    %c0_46 = arith.constant 0 : index
    %c0_47 = arith.constant 0 : index
    %258 = vector.load %arg7[%c0_46, %c0_47] : memref<136x33xf32, #tpu.memory_space<vmem>>, vector<32x16xf32>
    %cst_48 = arith.constant dense<0.000000e+00> : vector<32x8xf32>
    %259 = tpu.matmul %258, %257, %cst_48 {dimension_numbers = #tpu.dot_dimension_numbers<[1], [0], [0], [1], [0, 0, 1, 1], [], []>} : vector<32x16xf32>, vector<16x8xf32>, vector<32x8xf32> -> vector<32x8xf32>
    %c0_49 = arith.constant 0 : index
    %c16 = arith.constant 16 : index
    %260 = vector.load %arg7[%c0_49, %c16] : memref<136x33xf32, #tpu.memory_space<vmem>>, vector<32x4xf32>
    %cst_50 = arith.constant dense<0.000000e+00> : vector<32x8xf32>
    %261 = tpu.matmul %260, %0, %cst_50 {dimension_numbers = #tpu.dot_dimension_numbers<[1], [0], [0], [1], [0, 0, 1, 1], [], []>} : vector<32x4xf32>, vector<4x8xf32>, vector<32x8xf32> -> vector<32x8xf32>
    %262 = arith.addf %259, %261 : vector<32x8xf32>
    %c0_51 = arith.constant 0 : index
    %c20 = arith.constant 20 : index
    %263 = vector.load %arg7[%c0_51, %c20] : memref<136x33xf32, #tpu.memory_space<vmem>>, vector<32x1xf32>
    %264 = vector.broadcast %263 : vector<32x1xf32> to vector<32x8xf32>
    %265 = arith.addf %262, %264 : vector<32x8xf32>
    %266 = vector.extract_strided_slice %265 {offsets = [0, 0], sizes = [16, 8], strides = [1, 1]} : vector<32x8xf32> to vector<16x8xf32>
    %267 = vector.extract_strided_slice %265 {offsets = [16, 0], sizes = [16, 8], strides = [1, 1]} : vector<32x8xf32> to vector<16x8xf32>
    %cst_52 = arith.constant 5.000000e-01 : f32
    %268 = vector.broadcast %cst_52 : f32 to vector<16x8xf32>
    %269 = arith.mulf %268, %267 : vector<16x8xf32>
    %270 = math.exp %269 : vector<16x8xf32>
    %271 = arith.mulf %1, %270 : vector<16x8xf32>
    %272 = arith.addf %271, %266 : vector<16x8xf32>
    %c32 = arith.constant 32 : index
    %c0_53 = arith.constant 0 : index
    %273 = vector.load %arg7[%c32, %c0_53] : memref<136x33xf32, #tpu.memory_space<vmem>>, vector<16x16xf32>
    %cst_54 = arith.constant dense<0.000000e+00> : vector<16x8xf32>
    %274 = tpu.matmul %273, %272, %cst_54 {dimension_numbers = #tpu.dot_dimension_numbers<[1], [0], [0], [1], [0, 0, 1, 1], [], []>} : vector<16x16xf32>, vector<16x8xf32>, vector<16x8xf32> -> vector<16x8xf32>
    %c32_55 = arith.constant 32 : index
    %c16_56 = arith.constant 16 : index
    %275 = vector.load %arg7[%c32_55, %c16_56] : memref<136x33xf32, #tpu.memory_space<vmem>>, vector<16x1xf32>
    %276 = vector.broadcast %275 : vector<16x1xf32> to vector<16x8xf32>
    %277 = arith.addf %274, %276 : vector<16x8xf32>
    %278 = vector.extract_strided_slice %9 {offsets = [64, 0], sizes = [64, 8], strides = [1, 1]} : vector<128x8xf32> to vector<64x8xf32>
    %cst_57 = arith.constant dense<0.000000e+00> : vector<64x8xf32>
    %279 = tpu.matmul %32, %277, %cst_57 {dimension_numbers = #tpu.dot_dimension_numbers<[1], [0], [0], [1], [0, 0, 1, 1], [], []>} : vector<64x16xf32>, vector<16x8xf32>, vector<64x8xf32> -> vector<64x8xf32>
    %280 = arith.addf %278, %279 : vector<64x8xf32>
    %281 = vector.extract_strided_slice %280 {offsets = [0, 0], sizes = [32, 8], strides = [1, 1]} : vector<64x8xf32> to vector<32x8xf32>
    %282 = arith.negf %281 : vector<32x8xf32>
    %283 = math.exp %282 : vector<32x8xf32>
    %cst_58 = arith.constant 1.000000e+00 : f32
    %284 = vector.broadcast %cst_58 : f32 to vector<32x8xf32>
    %285 = arith.addf %284, %283 : vector<32x8xf32>
    %286 = arith.divf %284, %285 : vector<32x8xf32>
    %287 = vector.extract_strided_slice %280 {offsets = [32, 0], sizes = [16, 8], strides = [1, 1]} : vector<64x8xf32> to vector<16x8xf32>
    %288 = math.tanh %287 : vector<16x8xf32>
    %289 = vector.extract_strided_slice %280 {offsets = [48, 0], sizes = [16, 8], strides = [1, 1]} : vector<64x8xf32> to vector<16x8xf32>
    %290 = arith.negf %289 : vector<16x8xf32>
    %291 = math.exp %290 : vector<16x8xf32>
    %cst_59 = arith.constant 1.000000e+00 : f32
    %292 = vector.broadcast %cst_59 : f32 to vector<16x8xf32>
    %293 = arith.addf %292, %291 : vector<16x8xf32>
    %294 = arith.divf %292, %293 : vector<16x8xf32>
    %295 = vector.extract_strided_slice %286 {offsets = [16, 0], sizes = [16, 8], strides = [1, 1]} : vector<32x8xf32> to vector<16x8xf32>
    %296 = arith.mulf %295, %277 : vector<16x8xf32>
    %297 = vector.extract_strided_slice %286 {offsets = [0, 0], sizes = [16, 8], strides = [1, 1]} : vector<32x8xf32> to vector<16x8xf32>
    %298 = arith.mulf %297, %288 : vector<16x8xf32>
    %299 = arith.addf %296, %298 : vector<16x8xf32>
    %300 = math.tanh %299 : vector<16x8xf32>
    %301 = arith.mulf %294, %300 : vector<16x8xf32>
    %c0_i32_60 = arith.constant 0 : i32
    %302 = vector.broadcast %c0_i32_60 : i32 to vector<16x8xi32>
    %303 = arith.cmpi sgt, %4, %302 : vector<16x8xi32>
    %304 = arith.select %303, %301, %277 : vector<16x8xi1>, vector<16x8xf32>
    %305 = arith.select %303, %299, %277 : vector<16x8xi1>, vector<16x8xf32>
    %306 = vector.extract_strided_slice %12 {offsets = [64, 0], sizes = [64, 8], strides = [1, 1]} : vector<128x8xf32> to vector<64x8xf32>
    %cst_61 = arith.constant dense<0.000000e+00> : vector<64x8xf32>
    %307 = tpu.matmul %32, %304, %cst_61 {dimension_numbers = #tpu.dot_dimension_numbers<[1], [0], [0], [1], [0, 0, 1, 1], [], []>} : vector<64x16xf32>, vector<16x8xf32>, vector<64x8xf32> -> vector<64x8xf32>
    %308 = arith.addf %306, %307 : vector<64x8xf32>
    %309 = vector.extract_strided_slice %308 {offsets = [0, 0], sizes = [32, 8], strides = [1, 1]} : vector<64x8xf32> to vector<32x8xf32>
    %310 = arith.negf %309 : vector<32x8xf32>
    %311 = math.exp %310 : vector<32x8xf32>
    %cst_62 = arith.constant 1.000000e+00 : f32
    %312 = vector.broadcast %cst_62 : f32 to vector<32x8xf32>
    %313 = arith.addf %312, %311 : vector<32x8xf32>
    %314 = arith.divf %312, %313 : vector<32x8xf32>
    %315 = vector.extract_strided_slice %308 {offsets = [32, 0], sizes = [16, 8], strides = [1, 1]} : vector<64x8xf32> to vector<16x8xf32>
    %316 = math.tanh %315 : vector<16x8xf32>
    %317 = vector.extract_strided_slice %308 {offsets = [48, 0], sizes = [16, 8], strides = [1, 1]} : vector<64x8xf32> to vector<16x8xf32>
    %318 = arith.negf %317 : vector<16x8xf32>
    %319 = math.exp %318 : vector<16x8xf32>
    %cst_63 = arith.constant 1.000000e+00 : f32
    %320 = vector.broadcast %cst_63 : f32 to vector<16x8xf32>
    %321 = arith.addf %320, %319 : vector<16x8xf32>
    %322 = arith.divf %320, %321 : vector<16x8xf32>
    %323 = vector.extract_strided_slice %314 {offsets = [16, 0], sizes = [16, 8], strides = [1, 1]} : vector<32x8xf32> to vector<16x8xf32>
    %324 = arith.mulf %323, %305 : vector<16x8xf32>
    %325 = vector.extract_strided_slice %314 {offsets = [0, 0], sizes = [16, 8], strides = [1, 1]} : vector<32x8xf32> to vector<16x8xf32>
    %326 = arith.mulf %325, %316 : vector<16x8xf32>
    %327 = arith.addf %324, %326 : vector<16x8xf32>
    %328 = math.tanh %327 : vector<16x8xf32>
    %329 = arith.mulf %322, %328 : vector<16x8xf32>
    %c1_i32_64 = arith.constant 1 : i32
    %330 = vector.broadcast %c1_i32_64 : i32 to vector<16x8xi32>
    %331 = arith.cmpi sgt, %4, %330 : vector<16x8xi32>
    %332 = arith.select %331, %329, %304 : vector<16x8xi1>, vector<16x8xf32>
    %333 = arith.select %331, %327, %305 : vector<16x8xi1>, vector<16x8xf32>
    %334 = vector.extract_strided_slice %15 {offsets = [64, 0], sizes = [64, 8], strides = [1, 1]} : vector<128x8xf32> to vector<64x8xf32>
    %cst_65 = arith.constant dense<0.000000e+00> : vector<64x8xf32>
    %335 = tpu.matmul %32, %332, %cst_65 {dimension_numbers = #tpu.dot_dimension_numbers<[1], [0], [0], [1], [0, 0, 1, 1], [], []>} : vector<64x16xf32>, vector<16x8xf32>, vector<64x8xf32> -> vector<64x8xf32>
    %336 = arith.addf %334, %335 : vector<64x8xf32>
    %337 = vector.extract_strided_slice %336 {offsets = [0, 0], sizes = [32, 8], strides = [1, 1]} : vector<64x8xf32> to vector<32x8xf32>
    %338 = arith.negf %337 : vector<32x8xf32>
    %339 = math.exp %338 : vector<32x8xf32>
    %cst_66 = arith.constant 1.000000e+00 : f32
    %340 = vector.broadcast %cst_66 : f32 to vector<32x8xf32>
    %341 = arith.addf %340, %339 : vector<32x8xf32>
    %342 = arith.divf %340, %341 : vector<32x8xf32>
    %343 = vector.extract_strided_slice %336 {offsets = [32, 0], sizes = [16, 8], strides = [1, 1]} : vector<64x8xf32> to vector<16x8xf32>
    %344 = math.tanh %343 : vector<16x8xf32>
    %345 = vector.extract_strided_slice %336 {offsets = [48, 0], sizes = [16, 8], strides = [1, 1]} : vector<64x8xf32> to vector<16x8xf32>
    %346 = arith.negf %345 : vector<16x8xf32>
    %347 = math.exp %346 : vector<16x8xf32>
    %cst_67 = arith.constant 1.000000e+00 : f32
    %348 = vector.broadcast %cst_67 : f32 to vector<16x8xf32>
    %349 = arith.addf %348, %347 : vector<16x8xf32>
    %350 = arith.divf %348, %349 : vector<16x8xf32>
    %351 = vector.extract_strided_slice %342 {offsets = [16, 0], sizes = [16, 8], strides = [1, 1]} : vector<32x8xf32> to vector<16x8xf32>
    %352 = arith.mulf %351, %333 : vector<16x8xf32>
    %353 = vector.extract_strided_slice %342 {offsets = [0, 0], sizes = [16, 8], strides = [1, 1]} : vector<32x8xf32> to vector<16x8xf32>
    %354 = arith.mulf %353, %344 : vector<16x8xf32>
    %355 = arith.addf %352, %354 : vector<16x8xf32>
    %356 = math.tanh %355 : vector<16x8xf32>
    %357 = arith.mulf %350, %356 : vector<16x8xf32>
    %c2_i32_68 = arith.constant 2 : i32
    %358 = vector.broadcast %c2_i32_68 : i32 to vector<16x8xi32>
    %359 = arith.cmpi sgt, %4, %358 : vector<16x8xi32>
    %360 = arith.select %359, %357, %332 : vector<16x8xi1>, vector<16x8xf32>
    %361 = arith.select %359, %355, %333 : vector<16x8xi1>, vector<16x8xf32>
    %362 = vector.extract_strided_slice %18 {offsets = [64, 0], sizes = [64, 8], strides = [1, 1]} : vector<128x8xf32> to vector<64x8xf32>
    %cst_69 = arith.constant dense<0.000000e+00> : vector<64x8xf32>
    %363 = tpu.matmul %32, %360, %cst_69 {dimension_numbers = #tpu.dot_dimension_numbers<[1], [0], [0], [1], [0, 0, 1, 1], [], []>} : vector<64x16xf32>, vector<16x8xf32>, vector<64x8xf32> -> vector<64x8xf32>
    %364 = arith.addf %362, %363 : vector<64x8xf32>
    %365 = vector.extract_strided_slice %364 {offsets = [0, 0], sizes = [32, 8], strides = [1, 1]} : vector<64x8xf32> to vector<32x8xf32>
    %366 = arith.negf %365 : vector<32x8xf32>
    %367 = math.exp %366 : vector<32x8xf32>
    %cst_70 = arith.constant 1.000000e+00 : f32
    %368 = vector.broadcast %cst_70 : f32 to vector<32x8xf32>
    %369 = arith.addf %368, %367 : vector<32x8xf32>
    %370 = arith.divf %368, %369 : vector<32x8xf32>
    %371 = vector.extract_strided_slice %364 {offsets = [32, 0], sizes = [16, 8], strides = [1, 1]} : vector<64x8xf32> to vector<16x8xf32>
    %372 = math.tanh %371 : vector<16x8xf32>
    %373 = vector.extract_strided_slice %364 {offsets = [48, 0], sizes = [16, 8], strides = [1, 1]} : vector<64x8xf32> to vector<16x8xf32>
    %374 = arith.negf %373 : vector<16x8xf32>
    %375 = math.exp %374 : vector<16x8xf32>
    %cst_71 = arith.constant 1.000000e+00 : f32
    %376 = vector.broadcast %cst_71 : f32 to vector<16x8xf32>
    %377 = arith.addf %376, %375 : vector<16x8xf32>
    %378 = arith.divf %376, %377 : vector<16x8xf32>
    %379 = vector.extract_strided_slice %370 {offsets = [16, 0], sizes = [16, 8], strides = [1, 1]} : vector<32x8xf32> to vector<16x8xf32>
    %380 = arith.mulf %379, %361 : vector<16x8xf32>
    %381 = vector.extract_strided_slice %370 {offsets = [0, 0], sizes = [16, 8], strides = [1, 1]} : vector<32x8xf32> to vector<16x8xf32>
    %382 = arith.mulf %381, %372 : vector<16x8xf32>
    %383 = arith.addf %380, %382 : vector<16x8xf32>
    %384 = math.tanh %383 : vector<16x8xf32>
    %385 = arith.mulf %378, %384 : vector<16x8xf32>
    %c3_i32_72 = arith.constant 3 : i32
    %386 = vector.broadcast %c3_i32_72 : i32 to vector<16x8xi32>
    %387 = arith.cmpi sgt, %4, %386 : vector<16x8xi32>
    %388 = arith.select %387, %385, %360 : vector<16x8xi1>, vector<16x8xf32>
    %389 = arith.select %387, %383, %361 : vector<16x8xi1>, vector<16x8xf32>
    %390 = vector.extract_strided_slice %21 {offsets = [64, 0], sizes = [64, 8], strides = [1, 1]} : vector<128x8xf32> to vector<64x8xf32>
    %cst_73 = arith.constant dense<0.000000e+00> : vector<64x8xf32>
    %391 = tpu.matmul %32, %388, %cst_73 {dimension_numbers = #tpu.dot_dimension_numbers<[1], [0], [0], [1], [0, 0, 1, 1], [], []>} : vector<64x16xf32>, vector<16x8xf32>, vector<64x8xf32> -> vector<64x8xf32>
    %392 = arith.addf %390, %391 : vector<64x8xf32>
    %393 = vector.extract_strided_slice %392 {offsets = [0, 0], sizes = [32, 8], strides = [1, 1]} : vector<64x8xf32> to vector<32x8xf32>
    %394 = arith.negf %393 : vector<32x8xf32>
    %395 = math.exp %394 : vector<32x8xf32>
    %cst_74 = arith.constant 1.000000e+00 : f32
    %396 = vector.broadcast %cst_74 : f32 to vector<32x8xf32>
    %397 = arith.addf %396, %395 : vector<32x8xf32>
    %398 = arith.divf %396, %397 : vector<32x8xf32>
    %399 = vector.extract_strided_slice %392 {offsets = [32, 0], sizes = [16, 8], strides = [1, 1]} : vector<64x8xf32> to vector<16x8xf32>
    %400 = math.tanh %399 : vector<16x8xf32>
    %401 = vector.extract_strided_slice %392 {offsets = [48, 0], sizes = [16, 8], strides = [1, 1]} : vector<64x8xf32> to vector<16x8xf32>
    %402 = arith.negf %401 : vector<16x8xf32>
    %403 = math.exp %402 : vector<16x8xf32>
    %cst_75 = arith.constant 1.000000e+00 : f32
    %404 = vector.broadcast %cst_75 : f32 to vector<16x8xf32>
    %405 = arith.addf %404, %403 : vector<16x8xf32>
    %406 = arith.divf %404, %405 : vector<16x8xf32>
    %407 = vector.extract_strided_slice %398 {offsets = [16, 0], sizes = [16, 8], strides = [1, 1]} : vector<32x8xf32> to vector<16x8xf32>
    %408 = arith.mulf %407, %389 : vector<16x8xf32>
    %409 = vector.extract_strided_slice %398 {offsets = [0, 0], sizes = [16, 8], strides = [1, 1]} : vector<32x8xf32> to vector<16x8xf32>
    %410 = arith.mulf %409, %400 : vector<16x8xf32>
    %411 = arith.addf %408, %410 : vector<16x8xf32>
    %412 = math.tanh %411 : vector<16x8xf32>
    %413 = arith.mulf %406, %412 : vector<16x8xf32>
    %c4_i32_76 = arith.constant 4 : i32
    %414 = vector.broadcast %c4_i32_76 : i32 to vector<16x8xi32>
    %415 = arith.cmpi sgt, %4, %414 : vector<16x8xi32>
    %416 = arith.select %415, %413, %388 : vector<16x8xi1>, vector<16x8xf32>
    %417 = arith.select %415, %411, %389 : vector<16x8xi1>, vector<16x8xf32>
    %418 = vector.extract_strided_slice %24 {offsets = [64, 0], sizes = [64, 8], strides = [1, 1]} : vector<128x8xf32> to vector<64x8xf32>
    %cst_77 = arith.constant dense<0.000000e+00> : vector<64x8xf32>
    %419 = tpu.matmul %32, %416, %cst_77 {dimension_numbers = #tpu.dot_dimension_numbers<[1], [0], [0], [1], [0, 0, 1, 1], [], []>} : vector<64x16xf32>, vector<16x8xf32>, vector<64x8xf32> -> vector<64x8xf32>
    %420 = arith.addf %418, %419 : vector<64x8xf32>
    %421 = vector.extract_strided_slice %420 {offsets = [0, 0], sizes = [32, 8], strides = [1, 1]} : vector<64x8xf32> to vector<32x8xf32>
    %422 = arith.negf %421 : vector<32x8xf32>
    %423 = math.exp %422 : vector<32x8xf32>
    %cst_78 = arith.constant 1.000000e+00 : f32
    %424 = vector.broadcast %cst_78 : f32 to vector<32x8xf32>
    %425 = arith.addf %424, %423 : vector<32x8xf32>
    %426 = arith.divf %424, %425 : vector<32x8xf32>
    %427 = vector.extract_strided_slice %420 {offsets = [32, 0], sizes = [16, 8], strides = [1, 1]} : vector<64x8xf32> to vector<16x8xf32>
    %428 = math.tanh %427 : vector<16x8xf32>
    %429 = vector.extract_strided_slice %420 {offsets = [48, 0], sizes = [16, 8], strides = [1, 1]} : vector<64x8xf32> to vector<16x8xf32>
    %430 = arith.negf %429 : vector<16x8xf32>
    %431 = math.exp %430 : vector<16x8xf32>
    %cst_79 = arith.constant 1.000000e+00 : f32
    %432 = vector.broadcast %cst_79 : f32 to vector<16x8xf32>
    %433 = arith.addf %432, %431 : vector<16x8xf32>
    %434 = arith.divf %432, %433 : vector<16x8xf32>
    %435 = vector.extract_strided_slice %426 {offsets = [16, 0], sizes = [16, 8], strides = [1, 1]} : vector<32x8xf32> to vector<16x8xf32>
    %436 = arith.mulf %435, %417 : vector<16x8xf32>
    %437 = vector.extract_strided_slice %426 {offsets = [0, 0], sizes = [16, 8], strides = [1, 1]} : vector<32x8xf32> to vector<16x8xf32>
    %438 = arith.mulf %437, %428 : vector<16x8xf32>
    %439 = arith.addf %436, %438 : vector<16x8xf32>
    %440 = math.tanh %439 : vector<16x8xf32>
    %441 = arith.mulf %434, %440 : vector<16x8xf32>
    %c5_i32_80 = arith.constant 5 : i32
    %442 = vector.broadcast %c5_i32_80 : i32 to vector<16x8xi32>
    %443 = arith.cmpi sgt, %4, %442 : vector<16x8xi32>
    %444 = arith.select %443, %441, %416 : vector<16x8xi1>, vector<16x8xf32>
    %445 = arith.select %443, %439, %417 : vector<16x8xi1>, vector<16x8xf32>
    %446 = vector.extract_strided_slice %27 {offsets = [64, 0], sizes = [64, 8], strides = [1, 1]} : vector<128x8xf32> to vector<64x8xf32>
    %cst_81 = arith.constant dense<0.000000e+00> : vector<64x8xf32>
    %447 = tpu.matmul %32, %444, %cst_81 {dimension_numbers = #tpu.dot_dimension_numbers<[1], [0], [0], [1], [0, 0, 1, 1], [], []>} : vector<64x16xf32>, vector<16x8xf32>, vector<64x8xf32> -> vector<64x8xf32>
    %448 = arith.addf %446, %447 : vector<64x8xf32>
    %449 = vector.extract_strided_slice %448 {offsets = [0, 0], sizes = [32, 8], strides = [1, 1]} : vector<64x8xf32> to vector<32x8xf32>
    %450 = arith.negf %449 : vector<32x8xf32>
    %451 = math.exp %450 : vector<32x8xf32>
    %cst_82 = arith.constant 1.000000e+00 : f32
    %452 = vector.broadcast %cst_82 : f32 to vector<32x8xf32>
    %453 = arith.addf %452, %451 : vector<32x8xf32>
    %454 = arith.divf %452, %453 : vector<32x8xf32>
    %455 = vector.extract_strided_slice %448 {offsets = [32, 0], sizes = [16, 8], strides = [1, 1]} : vector<64x8xf32> to vector<16x8xf32>
    %456 = math.tanh %455 : vector<16x8xf32>
    %457 = vector.extract_strided_slice %448 {offsets = [48, 0], sizes = [16, 8], strides = [1, 1]} : vector<64x8xf32> to vector<16x8xf32>
    %458 = arith.negf %457 : vector<16x8xf32>
    %459 = math.exp %458 : vector<16x8xf32>
    %cst_83 = arith.constant 1.000000e+00 : f32
    %460 = vector.broadcast %cst_83 : f32 to vector<16x8xf32>
    %461 = arith.addf %460, %459 : vector<16x8xf32>
    %462 = arith.divf %460, %461 : vector<16x8xf32>
    %463 = vector.extract_strided_slice %454 {offsets = [16, 0], sizes = [16, 8], strides = [1, 1]} : vector<32x8xf32> to vector<16x8xf32>
    %464 = arith.mulf %463, %445 : vector<16x8xf32>
    %465 = vector.extract_strided_slice %454 {offsets = [0, 0], sizes = [16, 8], strides = [1, 1]} : vector<32x8xf32> to vector<16x8xf32>
    %466 = arith.mulf %465, %456 : vector<16x8xf32>
    %467 = arith.addf %464, %466 : vector<16x8xf32>
    %468 = math.tanh %467 : vector<16x8xf32>
    %469 = arith.mulf %462, %468 : vector<16x8xf32>
    %c6_i32_84 = arith.constant 6 : i32
    %470 = vector.broadcast %c6_i32_84 : i32 to vector<16x8xi32>
    %471 = arith.cmpi sgt, %4, %470 : vector<16x8xi32>
    %472 = arith.select %471, %469, %444 : vector<16x8xi1>, vector<16x8xf32>
    %473 = arith.select %471, %467, %445 : vector<16x8xi1>, vector<16x8xf32>
    %474 = vector.extract_strided_slice %30 {offsets = [64, 0], sizes = [64, 8], strides = [1, 1]} : vector<128x8xf32> to vector<64x8xf32>
    %cst_85 = arith.constant dense<0.000000e+00> : vector<64x8xf32>
    %475 = tpu.matmul %32, %472, %cst_85 {dimension_numbers = #tpu.dot_dimension_numbers<[1], [0], [0], [1], [0, 0, 1, 1], [], []>} : vector<64x16xf32>, vector<16x8xf32>, vector<64x8xf32> -> vector<64x8xf32>
    %476 = arith.addf %474, %475 : vector<64x8xf32>
    %477 = vector.extract_strided_slice %476 {offsets = [0, 0], sizes = [32, 8], strides = [1, 1]} : vector<64x8xf32> to vector<32x8xf32>
    %478 = arith.negf %477 : vector<32x8xf32>
    %479 = math.exp %478 : vector<32x8xf32>
    %cst_86 = arith.constant 1.000000e+00 : f32
    %480 = vector.broadcast %cst_86 : f32 to vector<32x8xf32>
    %481 = arith.addf %480, %479 : vector<32x8xf32>
    %482 = arith.divf %480, %481 : vector<32x8xf32>
    %483 = vector.extract_strided_slice %476 {offsets = [32, 0], sizes = [16, 8], strides = [1, 1]} : vector<64x8xf32> to vector<16x8xf32>
    %484 = math.tanh %483 : vector<16x8xf32>
    %485 = vector.extract_strided_slice %476 {offsets = [48, 0], sizes = [16, 8], strides = [1, 1]} : vector<64x8xf32> to vector<16x8xf32>
    %486 = arith.negf %485 : vector<16x8xf32>
    %487 = math.exp %486 : vector<16x8xf32>
    %cst_87 = arith.constant 1.000000e+00 : f32
    %488 = vector.broadcast %cst_87 : f32 to vector<16x8xf32>
    %489 = arith.addf %488, %487 : vector<16x8xf32>
    %490 = arith.divf %488, %489 : vector<16x8xf32>
    %491 = vector.extract_strided_slice %482 {offsets = [16, 0], sizes = [16, 8], strides = [1, 1]} : vector<32x8xf32> to vector<16x8xf32>
    %492 = arith.mulf %491, %473 : vector<16x8xf32>
    %493 = vector.extract_strided_slice %482 {offsets = [0, 0], sizes = [16, 8], strides = [1, 1]} : vector<32x8xf32> to vector<16x8xf32>
    %494 = arith.mulf %493, %484 : vector<16x8xf32>
    %495 = arith.addf %492, %494 : vector<16x8xf32>
    %496 = math.tanh %495 : vector<16x8xf32>
    %497 = arith.mulf %490, %496 : vector<16x8xf32>
    %c7_i32_88 = arith.constant 7 : i32
    %498 = vector.broadcast %c7_i32_88 : i32 to vector<16x8xi32>
    %499 = arith.cmpi sgt, %4, %498 : vector<16x8xi32>
    %500 = arith.select %499, %497, %472 : vector<16x8xi1>, vector<16x8xf32>
    %c8_i32 = arith.constant 8 : i32
    %501 = vector.broadcast %c8_i32 : i32 to vector<16x8xi32>
    %502 = arith.cmpi sge, %4, %501 : vector<16x8xi32>
    %cst_89 = arith.constant 0.000000e+00 : f32
    %503 = vector.broadcast %cst_89 : f32 to vector<16x8xf32>
    %504 = arith.select %502, %500, %503 : vector<16x8xi1>, vector<16x8xf32>
    %cst_90 = arith.constant 0.000000e+00 : f32
    %505 = vector.broadcast %cst_90 : f32 to vector<16x8xf32>
    %506 = arith.maximumf %504, %505 : vector<16x8xf32>
    %cst_91 = arith.constant 0.000000e+00 : f32
    %507 = vector.broadcast %cst_91 : f32 to vector<4x8xf32>
    %508 = arith.maximumf %0, %507 : vector<4x8xf32>
    %c48 = arith.constant 48 : index
    %c0_92 = arith.constant 0 : index
    %509 = vector.load %arg7[%c48, %c0_92] : memref<136x33xf32, #tpu.memory_space<vmem>>, vector<32x16xf32>
    %cst_93 = arith.constant dense<0.000000e+00> : vector<32x8xf32>
    %510 = tpu.matmul %509, %506, %cst_93 {dimension_numbers = #tpu.dot_dimension_numbers<[1], [0], [0], [1], [0, 0, 1, 1], [], []>} : vector<32x16xf32>, vector<16x8xf32>, vector<32x8xf32> -> vector<32x8xf32>
    %c48_94 = arith.constant 48 : index
    %c16_95 = arith.constant 16 : index
    %511 = vector.load %arg7[%c48_94, %c16_95] : memref<136x33xf32, #tpu.memory_space<vmem>>, vector<32x4xf32>
    %cst_96 = arith.constant dense<0.000000e+00> : vector<32x8xf32>
    %512 = tpu.matmul %511, %508, %cst_96 {dimension_numbers = #tpu.dot_dimension_numbers<[1], [0], [0], [1], [0, 0, 1, 1], [], []>} : vector<32x4xf32>, vector<4x8xf32>, vector<32x8xf32> -> vector<32x8xf32>
    %513 = arith.addf %510, %512 : vector<32x8xf32>
    %c48_97 = arith.constant 48 : index
    %c20_98 = arith.constant 20 : index
    %514 = vector.load %arg7[%c48_97, %c20_98] : memref<136x33xf32, #tpu.memory_space<vmem>>, vector<32x1xf32>
    %515 = vector.broadcast %514 : vector<32x1xf32> to vector<32x8xf32>
    %516 = arith.addf %513, %515 : vector<32x8xf32>
    %cst_99 = arith.constant 0.000000e+00 : f32
    %517 = vector.broadcast %cst_99 : f32 to vector<32x8xf32>
    %518 = arith.maximumf %516, %517 : vector<32x8xf32>
    %c80 = arith.constant 80 : index
    %c0_100 = arith.constant 0 : index
    %519 = vector.load %arg7[%c80, %c0_100] : memref<136x33xf32, #tpu.memory_space<vmem>>, vector<32x32xf32>
    %cst_101 = arith.constant dense<0.000000e+00> : vector<32x8xf32>
    %520 = tpu.matmul %519, %518, %cst_101 {dimension_numbers = #tpu.dot_dimension_numbers<[1], [0], [0], [1], [0, 0, 1, 1], [], []>} : vector<32x32xf32>, vector<32x8xf32>, vector<32x8xf32> -> vector<32x8xf32>
    %c80_102 = arith.constant 80 : index
    %c32_103 = arith.constant 32 : index
    %521 = vector.load %arg7[%c80_102, %c32_103] : memref<136x33xf32, #tpu.memory_space<vmem>>, vector<32x1xf32>
    %522 = vector.broadcast %521 : vector<32x1xf32> to vector<32x8xf32>
    %523 = arith.addf %520, %522 : vector<32x8xf32>
    %cst_104 = arith.constant 0.000000e+00 : f32
    %524 = vector.broadcast %cst_104 : f32 to vector<32x8xf32>
    %525 = arith.maximumf %523, %524 : vector<32x8xf32>
    %c112 = arith.constant 112 : index
    %c0_105 = arith.constant 0 : index
    %526 = vector.load %arg7[%c112, %c0_105] : memref<136x33xf32, #tpu.memory_space<vmem>>, vector<10x32xf32>
    %cst_106 = arith.constant dense<0.000000e+00> : vector<10x8xf32>
    %527 = tpu.matmul %526, %525, %cst_106 {dimension_numbers = #tpu.dot_dimension_numbers<[1], [0], [0], [1], [0, 0, 1, 1], [], []>} : vector<10x32xf32>, vector<32x8xf32>, vector<10x8xf32> -> vector<10x8xf32>
    %c112_107 = arith.constant 112 : index
    %c32_108 = arith.constant 32 : index
    %528 = vector.load %arg7[%c112_107, %c32_108] : memref<136x33xf32, #tpu.memory_space<vmem>>, vector<10x1xf32>
    %529 = vector.broadcast %528 : vector<10x1xf32> to vector<10x8xf32>
    %530 = arith.addf %527, %529 : vector<10x8xf32>
    %cst_109 = arith.constant 0.000000e+00 : f32
    %531 = vector.broadcast %cst_109 : f32 to vector<10x8xf32>
    %532 = arith.maximumf %530, %531 : vector<10x8xf32>
    %c128 = arith.constant 128 : index
    %c0_110 = arith.constant 0 : index
    %533 = vector.load %arg7[%c128, %c0_110] : memref<136x33xf32, #tpu.memory_space<vmem>>, vector<1x10xf32>
    %cst_111 = arith.constant dense<0.000000e+00> : vector<1x8xf32>
    %534 = tpu.matmul %533, %532, %cst_111 {dimension_numbers = #tpu.dot_dimension_numbers<[1], [0], [0], [1], [0, 0, 1, 1], [], []>} : vector<1x10xf32>, vector<10x8xf32>, vector<1x8xf32> -> vector<1x8xf32>
    %c128_112 = arith.constant 128 : index
    %c10 = arith.constant 10 : index
    %535 = vector.load %arg7[%c128_112, %c10] : memref<136x33xf32, #tpu.memory_space<vmem>>, vector<1x1xf32>
    %536 = vector.broadcast %535 : vector<1x1xf32> to vector<1x8xf32>
    %537 = arith.addf %534, %536 : vector<1x8xf32>
    %c0_113 = arith.constant 0 : index
    %c0_114 = arith.constant 0 : index
    %538 = vector.load %arg8[%c0_113, %c0_114] : memref<1x8xf32, #tpu.memory_space<vmem>>, vector<1x8xf32>
    tpu.vector_store %arg8[%c0_113, %c0_114], %537 {strides = array<i32>} : memref<1x8xf32, #tpu.memory_space<vmem>>, vector<1x8xf32>,
    return
  }
  func.func @transform_0(%arg0: i32) -> (i32, i32) {
    %c0_i32 = arith.constant 0 : i32
    %c0_i32_0 = arith.constant 0 : i32
    return %c0_i32, %arg0 : i32, i32
  }
  func.func @transform_1(%arg0: i32) -> (i32, i32, i32) {
    %c0_i32 = arith.constant 0 : i32
    %c0_i32_0 = arith.constant 0 : i32
    %c0_i32_1 = arith.constant 0 : i32
    return %c0_i32, %c0_i32_0, %arg0 : i32, i32, i32
  }
  func.func @transform_2(%arg0: i32) -> (i32, i32) {
    %c0_i32 = arith.constant 0 : i32
    %c0_i32_0 = arith.constant 0 : i32
    return %c0_i32, %arg0 : i32, i32
  }
  func.func @transform_3(%arg0: i32) -> (i32, i32) {
    %c0_i32 = arith.constant 0 : i32
    %c0_i32_0 = arith.constant 0 : i32
    return %c0_i32, %arg0 : i32, i32
  }
  func.func @transform_4(%arg0: i32) -> (i32, i32) {
    %c0_i32 = arith.constant 0 : i32
    %c0_i32_0 = arith.constant 0 : i32
    %c0_i32_1 = arith.constant 0 : i32
    return %c0_i32, %c0_i32_0 : i32, i32
  }
  func.func @transform_5(%arg0: i32) -> (i32, i32) {
    %c0_i32 = arith.constant 0 : i32
    %c0_i32_0 = arith.constant 0 : i32
    %c0_i32_1 = arith.constant 0 : i32
    return %c0_i32, %c0_i32_0 : i32, i32
  }
  func.func @transform_6(%arg0: i32) -> (i32, i32) {
    %c0_i32 = arith.constant 0 : i32
    %c0_i32_0 = arith.constant 0 : i32
    %c0_i32_1 = arith.constant 0 : i32
    return %c0_i32, %c0_i32_0 : i32, i32
  }
  func.func @transform_7(%arg0: i32) -> (i32, i32) {
    %c0_i32 = arith.constant 0 : i32
    %c0_i32_0 = arith.constant 0 : i32
    return %c0_i32, %arg0 : i32, i32
  }
}

</mosaic_0001>

<bundles_post_ra>
// kernel: tpu_custom_call.1
= control target key start
LH: loop header
LB: loop body
LE: loop exit
PB: predicated region body
PF: predicated region fallthrough
CT: control target
= control target key end

     0   :  { %vm116_vm0 = vcmask 1040384   ;;  %vm7031_vm1 = vmmov 1   ;;  %vm67_vm3 = vcmask 72704   ;;  %s8401_s0 = inlined_call_operand.vmem [shape: f32[4,8], index: 0, kind: input, shape index: {}]   ;;  %s8402_s1 = inlined_call_operand.vmem [shape: f32[8,9,8], index: 1, kind: input, shape index: {}]   ;;  %s8403_s2 = inlined_call_operand.vmem [shape: s32[1,8], index: 2, kind: input, shape index: {}]   ;;  %s8404_s3 = inlined_call_operand.vmem [shape: f32[16,8], index: 3, kind: input, shape index: {}]   ;;  %s8405_s4 = inlined_call_operand.vmem [shape: f32[128,9], index: 4, kind: input, shape index: {}]   ;;  %s8406_s5 = inlined_call_operand.vmem [shape: f32[128,16], index: 5, kind: input, shape index: {}]   ;;  %s8407_s6 = inlined_call_operand.vmem [shape: f32[136,33], index: 6, kind: input, shape index: {}]   ;;  %s8408_s7 = inlined_call_operand.hbm [shape: f32[1,8], index: 7, kind: output, shape index: {}]  }
   0x1   :  { %v51_v0 = vld [vmem:[%s8402_s1] sm:$0xff]  ;;  %v52_v1 = vld [vmem:[%s8402_s1 + $0x8] sm:$0x1]  ;;  %vm7093_vm2 = vmpackc.low %vm116_vm0, %vm7031_vm1 }
   0x2   :  { %v7090_v2 = vld [vmem:[%s8405_s4] sm:$0xff]  ;;  %v6177_v3 = vpack.c.bf16 %v52_v1, %v51_v0  ;;  %v7108_v5 = vld [vmem:[%s8405_s4 + $0x8] sm:$0xff]  ;;  %v7113_v6 = vld [vmem:[%s8405_s4 + $0x10] sm:$0xff] }
   0x3   :  { %5628 = vmatprep.mubr.msk.f32.mxu0 %vm67_vm3, %v7090_v2  ;;  %5656 = vmatprep.mubr.msk.f32.mxu1 %vm67_vm3, %v7090_v2  ;;  %v55_v7 = vld [vmem:[%s8402_s1 + $0x20] sm:$0xff]  ;;  %v56_v8 = vld [vmem:[%s8402_s1 + $0x28] sm:$0x1]  ;;  %v7134_v12 = vld [vmem:[%s8405_s4 + $0x18] sm:$0xff] }
   0x4   :  { %6179 = vmatprep.subr.msk.bf16.mxu0 %vm7093_vm2, %v6177_v3  ;;  %v6189_v9 = vpack.c.bf16 %v56_v8, %v55_v7  ;;  %v59_v10 = vld [vmem:[%s8402_s1 + $0x40] sm:$0xff]  ;;  %v60_v11 = vld [vmem:[%s8402_s1 + $0x48] sm:$0x1] }
   0x5   :  { %6182 = vmatpush3.bf16.msk.msra.mxu0 %vm7093_vm2, %v6177_v3  ;;  %v6201_v13 = vpack.c.bf16 %v60_v11, %v59_v10  ;;  %v7139_v14 = vld [vmem:[%s8405_s4 + $0x20] sm:$0xff] }
   0x6   :  { %6191 = vmatprep.subr.msk.bf16.mxu0 %vm7093_vm2, %v6189_v9 }
   0x8   :  { %5629 = vmatmul.mubr.msk.f32.vlgmr.msra.gmra.mrb[0].mxu0 %vm67_vm3, %v7108_v5 }
   0x9   :  { %5631 = vmatprep.mubr.msk.f32.mxu0 %vm67_vm3, %v7113_v6 }
   0xa   :  { %12 = vsyncpa [#allocation3], 0  ;;  %6194 = vmatpush3.bf16.msk.msra.mxu0 %vm7093_vm2, %v6189_v9  ;;  %v7154_v15 = vld [vmem:[%s8405_s4 + $0x28] sm:$0xff]  ;;  %v7159_v16 = vld [vmem:[%s8405_s4 + $0x30] sm:$0xff]  ;;  %v7032_v38 = vmov 0.0   ;;  %vm1317_vm4 = vcmask 130048  }
   0xb   :  { %6203 = vmatprep.subr.msk.bf16.mxu0 %vm7093_vm2, %v6201_v13  ;;  %v7168_v17 = vld [vmem:[%s8405_s4 + $0x38] sm:$0xff]  ;;  %v7173_v18 = vld [vmem:[%s8405_s4 + $0x40] sm:$0xff]  ;;  %v53_v19 = vld [vmem:[%s8402_s1 + $0x10] sm:$0xff]  ;;  %s7033_s15 = smov 112   ;;  %vm2693_vm13 = vcmask 1043456   ;;  %vm2684_vm14 = vcmask 31744  }
   0xc   :  { %5632 = vmatmul.mubr.msk.f32.gmra.mrb[2].mxu0 %vm67_vm3, %v7134_v12  ;;  %v54_v20 = vld [vmem:[%s8402_s1 + $0x18] sm:$0x1]  ;;  %v57_v21 = vld [vmem:[%s8402_s1 + $0x30] sm:$0xff]  ;;  %v7191_v22 = vld [vmem:[%s8405_s4 + $0x48] sm:$0xff] }
   0xd   :  { %5634 = vmatprep.mubr.msk.f32.mxu0 %vm67_vm3, %v7139_v14  ;;  %v6183_v23 = vpack.c.bf16 %v54_v20, %v53_v19  ;;  %v58_v24 = vld [vmem:[%s8402_s1 + $0x38] sm:$0x1]  ;;  %v7199_v25 = vld [vmem:[%s8405_s4 + $0x50] sm:$0xff]  ;;  %v7225_v30 = vld [vmem:[%s8405_s4 + $0x60] sm:$0xff] }
   0xe   :  { %v6195_v26 = vpack.c.bf16 %v58_v24, %v57_v21  ;;  %v61_v27 = vld [vmem:[%s8402_s1 + $0x50] sm:$0xff]  ;;  %v62_v28 = vld [vmem:[%s8402_s1 + $0x58] sm:$0x1]  ;;  %v7238_v32 = vld [vmem:[%s8405_s4 + $0x68] sm:$0xff] }
   0xf   :  { %6185 = vmatprep.subr.msk.bf16.mxu1 %vm7093_vm2, %v6183_v23  ;;  %v7218_v29 = vld [vmem:[%s8405_s4 + $0x58] sm:$0xff]  ;;  %v6207_v31 = vpack.c.bf16 %v62_v28, %v61_v27  ;;  %v7245_v33 = vld [vmem:[%s8405_s4 + $0x70] sm:$0xff]  ;;  %v63_v35 = vld [vmem:[%s8402_s1 + $0x60] sm:$0xff] }
  0x10   :  { %5635 = vmatmul.mubr.msk.f32.gmra.mrb[4].mxu0 %vm67_vm3, %v7154_v15  ;;  %6188 = vmatpush3.bf16.msk.msra.mxu1 %vm7093_vm2, %v6183_v23  ;;  %v7260_v34 = vld [vmem:[%s8405_s4 + $0x78] sm:$0xff]  ;;  %v64_v36 = vld [vmem:[%s8402_s1 + $0x68] sm:$0x1]  ;;  %v7465_v39 = vld [vmem:[%s8406_s5] sm:$0xff] }
  0x11   :  { %5637 = vmatprep.mubr.msk.f32.mxu0 %vm67_vm3, %v7159_v16  ;;  %6197 = vmatprep.subr.msk.bf16.mxu1 %vm7093_vm2, %v6195_v26  ;;  %v6213_v37 = vpack.c.bf16 %v64_v36, %v63_v35  ;;  %v7474_v40 = vld [vmem:[%s8406_s5 + $0x8] sm:$0xff]  ;;  %v7479_v41 = vld [vmem:[%s8406_s5 + $0x10] sm:$0xff]  ;;  %v7488_v42 = vld [vmem:[%s8406_s5 + $0x18] sm:$0xff] }
  0x12   :  { %v7493_v43 = vld [vmem:[%s8406_s5 + $0x20] sm:$0xff]  ;;  %v7502_v44 = vld [vmem:[%s8406_s5 + $0x28] sm:$0xff]  ;;  %v7507_v45 = vld [vmem:[%s8406_s5 + $0x30] sm:$0xff] }
  0x13   :  { %5657 = vmatmul.mubr.msk.f32.vlgmr.msra.gmra.mrb[0].mxu1 %vm67_vm3, %v7108_v5  ;;  %v7516_v46 = vld [vmem:[%s8406_s5 + $0x38] sm:$0xff]  ;;  %v65_v47 = vld [vmem:[%s8402_s1 + $0x70] sm:$0xff] }
  0x14   :  { %5638 = vmatmul.mubr.msk.f32.gmra.mrb[6].mxu0 %vm67_vm3, %v7168_v17  ;;  %5659 = vmatprep.mubr.msk.f32.mxu1 %vm67_vm3, %v7113_v6  ;;  %v66_v48 = vld [vmem:[%s8402_s1 + $0x78] sm:$0x1] }
  0x15   :  { %5640 = vmatprep.mubr.msk.f32.mxu0 %vm67_vm3, %v7173_v18  ;;  %6200 = vmatpush3.bf16.msk.msra.mxu1 %vm7093_vm2, %v6195_v26  ;;  %v6219_v49 = vpack.c.bf16 %v66_v48, %v65_v47  ;;  %v7573_v26 = vld [vmem:[%s8403_s2] ss:$0 sm:$0xff] }
  0x16   :  { %6209 = vmatprep.subr.msk.bf16.mxu1 %vm7093_vm2, %v6207_v31  ;;  %vm1503_vm5 = vcmp.gt.s32.totalorder %v7573_v26, 0  ;;  %vm1669_vm7 = vcmp.gt.s32.totalorder %v7573_v26, 1  ;;  %vm1835_vm8 = vcmp.gt.s32.totalorder %v7573_v26, 2  ;;  %vm2001_vm9 = vcmp.gt.s32.totalorder %v7573_v26, 3 }
  0x17   :  { %5660 = vmatmul.mubr.msk.f32.gmra.mrb[2].mxu1 %vm67_vm3, %v7134_v12  ;;  %vm6226_vm6 = vmpackc.low %vm1503_vm5, %vm1503_vm5  ;;  %vm2167_vm10 = vcmp.gt.s32.totalorder %v7573_v26, 4  ;;  %vm2333_vm11 = vcmp.gt.s32.totalorder %v7573_v26, 5  ;;  %vm2499_vm12 = vcmp.gt.s32.totalorder %v7573_v26, 6  ;;  %v7000_v26 = vld [vmem:[%s8406_s5 + $0x50] sm:$0xff] }
  0x18   :  { %5641 = vmatmul.mubr.msk.f32.gmra.mrb[8].mxu0 %vm67_vm3, %v7191_v22  ;;  %5662 = vmatprep.mubr.msk.f32.mxu1 %vm67_vm3, %v7139_v14 }
  0x19   :  { %5643 = vmatprep.mubr.msk.f32.mxu0 %vm67_vm3, %v7199_v25 }
  0x1b   :  { %5663 = vmatmul.mubr.msk.f32.gmra.mrb[4].mxu1 %vm67_vm3, %v7154_v15 }
  0x1c   :  { %5644 = vmatmul.mubr.msk.f32.gmra.mrb[10].mxu0 %vm67_vm3, %v7218_v29  ;;  %5665 = vmatprep.mubr.msk.f32.mxu1 %vm67_vm3, %v7159_v16 }
  0x1d   :  { %5646 = vmatprep.mubr.msk.f32.mxu0 %vm67_vm3, %v7225_v30 }
  0x1f   :  { %5666 = vmatmul.mubr.msk.f32.gmra.mrb[6].mxu1 %vm67_vm3, %v7168_v17 }
  0x20   :  { %5647 = vmatmul.mubr.msk.f32.gmra.mrb[12].mxu0 %vm67_vm3, %v7238_v32  ;;  %5668 = vmatprep.mubr.msk.f32.mxu1 %vm67_vm3, %v7173_v18 }
  0x21   :  { %5649 = vmatprep.mubr.msk.f32.mxu0 %vm67_vm3, %v7245_v33 }
  0x23   :  { %5669 = vmatmul.mubr.msk.f32.gmra.mrb[8].mxu1 %vm67_vm3, %v7191_v22 }
  0x24   :  { %5650 = vmatmul.mubr.msk.f32.gmra.mrb[14].mxu0 %vm67_vm3, %v7260_v34  ;;  %5671 = vmatprep.mubr.msk.f32.mxu1 %vm67_vm3, %v7199_v25 }
  0x25   :  { %5684 = vmatprep.mubr.msk.f32.mxu0 %vm67_vm3, %v7090_v2 }
  0x27   :  { %5672 = vmatmul.mubr.msk.f32.gmra.mrb[10].mxu1 %vm67_vm3, %v7218_v29 }
  0x28   :  { %5685 = vmatmul.mubr.msk.f32.vlgmr.msra.gmra.mrb[16].mxu0 %vm67_vm3, %v7108_v5  ;;  %5674 = vmatprep.mubr.msk.f32.mxu1 %vm67_vm3, %v7225_v30 }
  0x29   :  { %5687 = vmatprep.mubr.msk.f32.mxu0 %vm67_vm3, %v7113_v6  ;;  %6206 = vmatpush3.bf16.msk.msra.mxu0 %vm7093_vm2, %v6201_v13 }
  0x2a   :  { %6215 = vmatprep.subr.msk.bf16.mxu0 %vm7093_vm2, %v6213_v37 }
  0x2b   :  { %5675 = vmatmul.mubr.msk.f32.gmra.mrb[12].mxu1 %vm67_vm3, %v7238_v32 }
  0x2c   :  { %5688 = vmatmul.mubr.msk.f32.gmra.mrb[18].mxu0 %vm67_vm3, %v7134_v12  ;;  %5677 = vmatprep.mubr.msk.f32.mxu1 %vm67_vm3, %v7245_v33 }
  0x2d   :  { %5690 = vmatprep.mubr.msk.f32.mxu0 %vm67_vm3, %v7139_v14 }
  0x2f   :  { %5678 = vmatmul.mubr.msk.f32.gmra.mrb[14].mxu1 %vm67_vm3, %v7260_v34 }
  0x30   :  { %5691 = vmatmul.mubr.msk.f32.gmra.mrb[20].mxu0 %vm67_vm3, %v7154_v15  ;;  %5712 = vmatprep.mubr.msk.f32.mxu1 %vm67_vm3, %v7090_v2 }
  0x31   :  { %5693 = vmatprep.mubr.msk.f32.mxu0 %vm67_vm3, %v7159_v16 }
  0x33   :  { %5713 = vmatmul.mubr.msk.f32.vlgmr.msra.gmra.mrb[16].mxu1 %vm67_vm3, %v7108_v5 }
  0x34   :  { %5694 = vmatmul.mubr.msk.f32.gmra.mrb[22].mxu0 %vm67_vm3, %v7168_v17  ;;  %5715 = vmatprep.mubr.msk.f32.mxu1 %vm67_vm3, %v7113_v6 }
  0x35   :  { %5696 = vmatprep.mubr.msk.f32.mxu0 %vm67_vm3, %v7173_v18  ;;  %6212 = vmatpush3.bf16.msk.msra.mxu1 %vm7093_vm2, %v6207_v31 }
  0x36   :  { %6221 = vmatprep.subr.msk.bf16.mxu1 %vm7093_vm2, %v6219_v49 }
  0x37   :  { %5716 = vmatmul.mubr.msk.f32.gmra.mrb[18].mxu1 %vm67_vm3, %v7134_v12 }
  0x38   :  { %5697 = vmatmul.mubr.msk.f32.gmra.mrb[24].mxu0 %vm67_vm3, %v7191_v22  ;;  %5718 = vmatprep.mubr.msk.f32.mxu1 %vm67_vm3, %v7139_v14 }
  0x39   :  { %5699 = vmatprep.mubr.msk.f32.mxu0 %vm67_vm3, %v7199_v25 }
  0x3b   :  { %5719 = vmatmul.mubr.msk.f32.gmra.mrb[20].mxu1 %vm67_vm3, %v7154_v15 }
  0x3c   :  { %5700 = vmatmul.mubr.msk.f32.gmra.mrb[26].mxu0 %vm67_vm3, %v7218_v29  ;;  %5721 = vmatprep.mubr.msk.f32.mxu1 %vm67_vm3, %v7159_v16 }
  0x3d   :  { %5702 = vmatprep.mubr.msk.f32.mxu0 %vm67_vm3, %v7225_v30 }
  0x3f   :  { %5722 = vmatmul.mubr.msk.f32.gmra.mrb[22].mxu1 %vm67_vm3, %v7168_v17 }
  0x40   :  { %5703 = vmatmul.mubr.msk.f32.gmra.mrb[28].mxu0 %vm67_vm3, %v7238_v32  ;;  %5724 = vmatprep.mubr.msk.f32.mxu1 %vm67_vm3, %v7173_v18 }
  0x41   :  { %5705 = vmatprep.mubr.msk.f32.mxu0 %vm67_vm3, %v7245_v33 }
  0x43   :  { %5725 = vmatmul.mubr.msk.f32.gmra.mrb[24].mxu1 %vm67_vm3, %v7191_v22 }
  0x44   :  { %5706 = vmatmul.mubr.msk.f32.gmra.mrb[30].mxu0 %vm67_vm3, %v7260_v34  ;;  %5727 = vmatprep.mubr.msk.f32.mxu1 %vm67_vm3, %v7199_v25 }
  0x45   :  { %5740 = vmatprep.mubr.msk.f32.mxu0 %vm67_vm3, %v7090_v2 }
  0x47   :  { %5728 = vmatmul.mubr.msk.f32.gmra.mrb[26].mxu1 %vm67_vm3, %v7218_v29 }
  0x48   :  { %5741 = vmatmul.mubr.msk.f32.vlgmr.msra.gmra.mrb[32].mxu0 %vm67_vm3, %v7108_v5  ;;  %5730 = vmatprep.mubr.msk.f32.mxu1 %vm67_vm3, %v7225_v30 }
  0x49   :  { %5743 = vmatprep.mubr.msk.f32.mxu0 %vm67_vm3, %v7113_v6  ;;  %6218 = vmatpush3.bf16.msk.msra.mxu0 %vm7093_vm2, %v6213_v37 }
  0x4a   :  { %5848 = vmatprep.subr.mxu0 %v7032_v38 }
  0x4b   :  { %5731 = vmatmul.mubr.msk.f32.gmra.mrb[28].mxu1 %vm67_vm3, %v7238_v32 }
  0x4c   :  { %5744 = vmatmul.mubr.msk.f32.gmra.mrb[34].mxu0 %vm67_vm3, %v7134_v12  ;;  %5733 = vmatprep.mubr.msk.f32.mxu1 %vm67_vm3, %v7245_v33 }
  0x4d   :  { %5746 = vmatprep.mubr.msk.f32.mxu0 %vm67_vm3, %v7139_v14 }
  0x4f   :  { %5734 = vmatmul.mubr.msk.f32.gmra.mrb[30].mxu1 %vm67_vm3, %v7260_v34 }
  0x50   :  { %5747 = vmatmul.mubr.msk.f32.gmra.mrb[36].mxu0 %vm67_vm3, %v7154_v15  ;;  %5768 = vmatprep.mubr.msk.f32.mxu1 %vm67_vm3, %v7090_v2 }
  0x51   :  { %5749 = vmatprep.mubr.msk.f32.mxu0 %vm67_vm3, %v7159_v16 }
  0x53   :  { %5769 = vmatmul.mubr.msk.f32.vlgmr.msra.gmra.mrb[32].mxu1 %vm67_vm3, %v7108_v5 }
  0x54   :  { %5750 = vmatmul.mubr.msk.f32.gmra.mrb[38].mxu0 %vm67_vm3, %v7168_v17  ;;  %5771 = vmatprep.mubr.msk.f32.mxu1 %vm67_vm3, %v7113_v6 }
  0x55   :  { %5752 = vmatprep.mubr.msk.f32.mxu0 %vm67_vm3, %v7173_v18  ;;  %6224 = vmatpush3.bf16.msk.msra.mxu1 %vm7093_vm2, %v6219_v49  ;;  %vm4597_vm2 = vcmask 261120  }
  0x57   :  { %5772 = vmatmul.mubr.msk.f32.gmra.mrb[34].mxu1 %vm67_vm3, %v7134_v12 }
  0x58   :  { %5753 = vmatmul.mubr.msk.f32.gmra.mrb[40].mxu0 %vm67_vm3, %v7191_v22  ;;  %5774 = vmatprep.mubr.msk.f32.mxu1 %vm67_vm3, %v7139_v14 }
  0x59   :  { %5755 = vmatprep.mubr.msk.f32.mxu0 %vm67_vm3, %v7199_v25 }
  0x5b   :  { %5775 = vmatmul.mubr.msk.f32.gmra.mrb[36].mxu1 %vm67_vm3, %v7154_v15 }
  0x5c   :  { %5756 = vmatmul.mubr.msk.f32.gmra.mrb[42].mxu0 %vm67_vm3, %v7218_v29  ;;  %5777 = vmatprep.mubr.msk.f32.mxu1 %vm67_vm3, %v7159_v16 }
  0x5d   :  { %5758 = vmatprep.mubr.msk.f32.mxu0 %vm67_vm3, %v7225_v30 }
  0x5f   :  { %5778 = vmatmul.mubr.msk.f32.gmra.mrb[38].mxu1 %vm67_vm3, %v7168_v17 }
  0x60   :  { %5759 = vmatmul.mubr.msk.f32.gmra.mrb[44].mxu0 %vm67_vm3, %v7238_v32  ;;  %5780 = vmatprep.mubr.msk.f32.mxu1 %vm67_vm3, %v7173_v18 }
  0x61   :  { %5761 = vmatprep.mubr.msk.f32.mxu0 %vm67_vm3, %v7245_v33 }
  0x63   :  { %5781 = vmatmul.mubr.msk.f32.gmra.mrb[40].mxu1 %vm67_vm3, %v7191_v22 }
  0x64   :  { %5762 = vmatmul.mubr.msk.f32.gmra.mrb[46].mxu0 %vm67_vm3, %v7260_v34  ;;  %5783 = vmatprep.mubr.msk.f32.mxu1 %vm67_vm3, %v7199_v25 }
  0x65   :  { %5796 = vmatprep.mubr.msk.f32.mxu0 %vm67_vm3, %v7090_v2 }
  0x67   :  { %5784 = vmatmul.mubr.msk.f32.gmra.mrb[42].mxu1 %vm67_vm3, %v7218_v29 }
  0x68   :  { %5797 = vmatmul.mubr.msk.f32.vlgmr.msra.gmra.mrb[48].mxu0 %vm67_vm3, %v7108_v5  ;;  %5786 = vmatprep.mubr.msk.f32.mxu1 %vm67_vm3, %v7225_v30 }
  0x69   :  { %5799 = vmatprep.mubr.msk.f32.mxu0 %vm67_vm3, %v7113_v6  ;;  %5849 = vmatpush3.msra.mxu0 %v7032_v38 }
  0x6b   :  { %5787 = vmatmul.mubr.msk.f32.gmra.mrb[44].mxu1 %vm67_vm3, %v7238_v32 }
  0x6c   :  { %5800 = vmatmul.mubr.msk.f32.gmra.mrb[50].mxu0 %vm67_vm3, %v7134_v12  ;;  %5789 = vmatprep.mubr.msk.f32.mxu1 %vm67_vm3, %v7245_v33 }
  0x6d   :  { %5802 = vmatprep.mubr.msk.f32.mxu0 %vm67_vm3, %v7139_v14 }
  0x6f   :  { %5790 = vmatmul.mubr.msk.f32.gmra.mrb[46].mxu1 %vm67_vm3, %v7260_v34 }
  0x70   :  { %5803 = vmatmul.mubr.msk.f32.gmra.mrb[52].mxu0 %vm67_vm3, %v7154_v15  ;;  %5824 = vmatprep.mubr.msk.f32.mxu1 %vm67_vm3, %v7090_v2 }
  0x71   :  { %5805 = vmatprep.mubr.msk.f32.mxu0 %vm67_vm3, %v7159_v16 }
  0x73   :  { %5825 = vmatmul.mubr.msk.f32.vlgmr.msra.gmra.mrb[48].mxu1 %vm67_vm3, %v7108_v5 }
  0x74   :  { %5806 = vmatmul.mubr.msk.f32.gmra.mrb[54].mxu0 %vm67_vm3, %v7168_v17  ;;  %5827 = vmatprep.mubr.msk.f32.mxu1 %vm67_vm3, %v7113_v6 }
  0x75   :  { %5808 = vmatprep.mubr.msk.f32.mxu0 %vm67_vm3, %v7173_v18 }
  0x77   :  { %5828 = vmatmul.mubr.msk.f32.gmra.mrb[50].mxu1 %vm67_vm3, %v7134_v12 }
  0x78   :  { %5809 = vmatmul.mubr.msk.f32.gmra.mrb[56].mxu0 %vm67_vm3, %v7191_v22  ;;  %5830 = vmatprep.mubr.msk.f32.mxu1 %vm67_vm3, %v7139_v14 }
  0x79   :  { %5811 = vmatprep.mubr.msk.f32.mxu0 %vm67_vm3, %v7199_v25 }
  0x7b   :  { %5831 = vmatmul.mubr.msk.f32.gmra.mrb[52].mxu1 %vm67_vm3, %v7154_v15 }
  0x7c   :  { %5812 = vmatmul.mubr.msk.f32.gmra.mrb[58].mxu0 %vm67_vm3, %v7218_v29  ;;  %5833 = vmatprep.mubr.msk.f32.mxu1 %vm67_vm3, %v7159_v16 }
  0x7d   :  { %5814 = vmatprep.mubr.msk.f32.mxu0 %vm67_vm3, %v7225_v30 }
  0x7f   :  { %5834 = vmatmul.mubr.msk.f32.gmra.mrb[54].mxu1 %vm67_vm3, %v7168_v17 }
  0x80   :  { %5815 = vmatmul.mubr.msk.f32.gmra.mrb[60].mxu0 %vm67_vm3, %v7238_v32  ;;  %5836 = vmatprep.mubr.msk.f32.mxu1 %vm67_vm3, %v7173_v18 }
  0x81   :  { %5817 = vmatprep.mubr.msk.f32.mxu0 %vm67_vm3, %v7245_v33 }
  0x83   :  { %5837 = vmatmul.mubr.msk.f32.gmra.mrb[56].mxu1 %vm67_vm3, %v7191_v22 }
  0x84   :  { %5818 = vmatmul.mubr.msk.f32.gmra.mrb[62].mxu0 %vm67_vm3, %v7260_v34  ;;  %5839 = vmatprep.mubr.msk.f32.mxu1 %vm67_vm3, %v7199_v25 }
  0x85   :  { %5850 = vmatprep.mubr.msk.f32.mxu0 %vm1317_vm4, %v7465_v39 }
  0x87   :  { %5840 = vmatmul.mubr.msk.f32.gmra.mrb[58].mxu1 %vm67_vm3, %v7218_v29 }
  0x88   :  { %5851 = vmatmul.mubr.msk.f32.vlgmr.msra.gmra.mrb[0].mxu0 %vm1317_vm4, %v7474_v40  ;;  %5842 = vmatprep.mubr.msk.f32.mxu1 %vm67_vm3, %v7225_v30 }
  0x89   :  { %5853 = vmatprep.mubr.msk.f32.mxu0 %vm1317_vm4, %v7479_v41 }
  0x8b   :  { %5843 = vmatmul.mubr.msk.f32.gmra.mrb[60].mxu1 %vm67_vm3, %v7238_v32 }
  0x8c   :  { %5854 = vmatmul.mubr.msk.f32.gmra.mrb[2].mxu0 %vm1317_vm4, %v7488_v42  ;;  %5845 = vmatprep.mubr.msk.f32.mxu1 %vm67_vm3, %v7245_v33 }
  0x8d   :  { %5856 = vmatprep.mubr.msk.f32.mxu0 %vm1317_vm4, %v7493_v43 }
  0x8f   :  { %5846 = vmatmul.mubr.msk.f32.gmra.mrb[62].mxu1 %vm67_vm3, %v7260_v34  ;;  %vm7038_vm3 = vmmov 0  }
  0x90   :  { %5857 = vmatmul.mubr.msk.f32.gmra.mrb[4].mxu0 %vm1317_vm4, %v7502_v44  ;;  %5866 = vmatprep.mubr.msk.f32.mxu1 %vm1317_vm4, %v7465_v39 }
  0x91   :  { %5859 = vmatprep.mubr.msk.f32.mxu0 %vm1317_vm4, %v7507_v45 }
  0x94   :  { %5860 = vmatmul.mubr.msk.f32.gmra.mrb[6].mxu0 %vm1317_vm4, %v7516_v46 }
  0x95   :  { %5882 = vmatprep.mubr.msk.f32.mxu0 %vm1317_vm4, %v7465_v39 }
 0x15b   :  { %v5852_v50 = vpop.f32.mrb[0].mxu0 }
 0x15c   :  { %v5033_v51 = vmul.f32 -1.442695, %v5852_v50  ;;  %v1408_v52 = vpop.f32.mrb[1].mxu0 }
 0x15d   :  { %v5032_v53 = vmul.f32 -1.442695, %v1408_v52 }
 0x15e   :  { %6474 = vpow2.f32 %v5033_v51 }
 0x15f   :  { %6476 = vpow2.f32 %v5032_v53  ;;  %v5855_v54 = vpop.f32.mrb[2].mxu0 }
 0x160   :  { %v5035_v55 = vmul.f32 -1.442695, %v5855_v54  ;;  %v1418_v56 = vpop.f32.mrb[3].mxu0 }
 0x161   :  { %v5034_v57 = vmul.f32 -1.442695, %v1418_v56 }
 0x162   :  { %6478 = vpow2.f32 %v5035_v55 }
 0x163   :  { %6480 = vpow2.f32 %v5034_v57  ;;  %v5858_v58 = vpop.f32.mrb[4].mxu0 }
 0x164   :  { %v1428_v59 = vpop.f32.mrb[5].mxu0  ;;  %6482 = vtanh.f32 %v5858_v58 }
 0x165   :  { %6484 = vtanh.f32 %v1428_v59 }
 0x167   :  { %v5861_v60 = vpop.f32.mrb[6].mxu0 }
 0x168   :  { %v6475_v61 = vpop.eup %6474  ;;  %v5037_v62 = vmul.f32 -1.442695, %v5861_v60  ;;  %v1438_v63 = vpop.f32.mrb[7].mxu0 }
 0x169   :  { %v6477_v0 = vpop.eup %6476  ;;  %v1468_v1 = vadd.f32 1.0, %v6475_v61  ;;  %v5036_v2 = vmul.f32 -1.442695, %v1438_v63 }
 0x16a   :  { %v1467_v3 = vadd.f32 1.0, %v6477_v0  ;;  %6486 = vpow2.f32 %v5037_v62 }
 0x16b   :  { %6488 = vrcp.f32 %v1468_v1 }
 0x16c   :  { %v6479_v4 = vpop.eup %6478  ;;  %6490 = vrcp.f32 %v1467_v3 }
 0x16d   :  { %v6481_v5 = vpop.eup %6480  ;;  %v1470_v6 = vadd.f32 1.0, %v6479_v4  ;;  %6492 = vpow2.f32 %v5036_v2 }
 0x16e   :  { %v1469_v7 = vadd.f32 1.0, %v6481_v5  ;;  %v6483_v8 = vpop.eup %6482 }
 0x16f   :  { %6494 = vrcp.f32 %v1470_v6  ;;  %v6485_v9 = vpop.eup %6484 }
 0x170   :  { %6496 = vrcp.f32 %v1469_v7 }
 0x174   :  { %v6487_v10 = vpop.eup %6486 }
 0x175   :  { %v6489_v11 = vpop.eup %6488  ;;  %v1488_v16 = vadd.f32 1.0, %v6487_v10 }
 0x176   :  { %v6491_v12 = vpop.eup %6490  ;;  %v1496_v13 = vmul.f32 %v6489_v11, %v6483_v8 }
 0x177   :  { %v6493_v14 = vpop.eup %6492  ;;  %v1495_v15 = vmul.f32 %v6491_v12, %v6485_v9  ;;  %6498 = vrcp.f32 %v1488_v16 }
 0x178   :  { %v1487_v18 = vadd.f32 1.0, %v6493_v14 }
 0x179   :  { %v6495_v17 = vpop.eup %6494 }
 0x17a   :  { %v6497_v19 = vpop.eup %6496  ;;  %v1494_v20 = vmul.f32 0.0, %v6495_v17  ;;  %6500 = vrcp.f32 %v1487_v18 }
 0x17b   :  { %v1493_v21 = vmul.f32 0.0, %v6497_v19 }
 0x17c   :  { %v7564_v22 = vadd.f32 %v1496_v13, %v1494_v20 }
 0x17d   :  { %v7566_v23 = vadd.f32 %v1495_v15, %v1493_v21 }
 0x17e   :  { %6502 = vtanh.f32 %v7564_v22  ;;  %v1507_v9 = vsel %vm1503_vm5, %v7564_v22, 0.0 }
 0x17f   :  { %6504 = vtanh.f32 %v7566_v23  ;;  %v1506_v12 = vsel %vm1503_vm5, %v7566_v23, 0.0 }
 0x181   :  { %v6499_v24 = vpop.eup %6498 }
 0x184   :  { %v6501_v25 = vpop.eup %6500 }
 0x188   :  { %v6503_v27 = vpop.eup %6502 }
 0x189   :  { %v6505_v28 = vpop.eup %6504  ;;  %v7575_v29 = vmul.f32 %v6503_v27, %v6499_v24 }
 0x18a   :  { %v7578_v30 = vmul.f32 %v6505_v28, %v6501_v25 }
 0x18b   :  { %v1505_v24 = vsel %vm1503_vm5, %v7575_v29, 0.0 }
 0x18c   :  { %v6225_v31 = vpack.c.bf16 %v7575_v29, %v7578_v30  ;;  %v1504_v27 = vsel %vm1503_vm5, %v7578_v30, 0.0 }
 0x18e   :  { %6227 = vmatprep.subr.msk.bf16.mxu1 %vm6226_vm6, %v6225_v31 }
 0x18f   :  { %6230 = vmatpush3.bf16.msk.msra.mxu1 %vm6226_vm6, %v6225_v31  ;;  %vm4794_vm6 = vcmask 80896  }
 0x192   :  { %5867 = vmatmul.mubr.msk.f32.vlgmr.msra.gmra.mrb[0].mxu1 %vm1317_vm4, %v7474_v40 }
 0x193   :  { %5869 = vmatprep.mubr.msk.f32.mxu1 %vm1317_vm4, %v7479_v41 }
 0x196   :  { %5870 = vmatmul.mubr.msk.f32.gmra.mrb[2].mxu1 %vm1317_vm4, %v7488_v42 }
 0x197   :  { %5872 = vmatprep.mubr.msk.f32.mxu1 %vm1317_vm4, %v7493_v43 }
 0x19a   :  { %5873 = vmatmul.mubr.msk.f32.gmra.mrb[4].mxu1 %vm1317_vm4, %v7502_v44 }
 0x19b   :  { %5875 = vmatprep.mubr.msk.f32.mxu1 %vm1317_vm4, %v7507_v45 }
 0x19e   :  { %5876 = vmatmul.mubr.msk.f32.gmra.mrb[6].mxu1 %vm1317_vm4, %v7516_v46 }
 0x19f   :  { %5898 = vmatprep.mubr.msk.f32.mxu1 %vm1317_vm4, %v7465_v39 }
 0x265   :  { %v5868_v32 = vpop.f32.mrb[0].mxu1 }
 0x266   :  { %v5049_v33 = vmul.f32 -1.442695, %v5868_v32  ;;  %v1574_v34 = vpop.f32.mrb[1].mxu1 }
 0x267   :  { %v5048_v35 = vmul.f32 -1.442695, %v1574_v34 }
 0x268   :  { %6506 = vpow2.f32 %v5049_v33 }
 0x269   :  { %6508 = vpow2.f32 %v5048_v35  ;;  %v5871_v36 = vpop.f32.mrb[2].mxu1 }
 0x26a   :  { %v5051_v37 = vmul.f32 -1.442695, %v5871_v36  ;;  %v1584_v47 = vpop.f32.mrb[3].mxu1 }
 0x26b   :  { %v5050_v48 = vmul.f32 -1.442695, %v1584_v47 }
 0x26c   :  { %6510 = vpow2.f32 %v5051_v37 }
 0x26d   :  { %6512 = vpow2.f32 %v5050_v48  ;;  %v5874_v49 = vpop.f32.mrb[4].mxu1 }
 0x26e   :  { %v1594_v50 = vpop.f32.mrb[5].mxu1  ;;  %6514 = vtanh.f32 %v5874_v49 }
 0x26f   :  { %6516 = vtanh.f32 %v1594_v50 }
 0x271   :  { %v5877_v51 = vpop.f32.mrb[6].mxu1 }
 0x272   :  { %v6507_v52 = vpop.eup %6506  ;;  %v5053_v53 = vmul.f32 -1.442695, %v5877_v51  ;;  %v1604_v54 = vpop.f32.mrb[7].mxu1 }
 0x273   :  { %v6509_v55 = vpop.eup %6508  ;;  %v1634_v56 = vadd.f32 1.0, %v6507_v52  ;;  %v5052_v57 = vmul.f32 -1.442695, %v1604_v54 }
 0x274   :  { %v1633_v58 = vadd.f32 1.0, %v6509_v55  ;;  %6518 = vpow2.f32 %v5053_v53 }
 0x275   :  { %6520 = vrcp.f32 %v1634_v56 }
 0x276   :  { %v6511_v59 = vpop.eup %6510  ;;  %6522 = vrcp.f32 %v1633_v58 }
 0x277   :  { %v6513_v60 = vpop.eup %6512  ;;  %v1636_v61 = vadd.f32 1.0, %v6511_v59  ;;  %6524 = vpow2.f32 %v5052_v57 }
 0x278   :  { %v1635_v62 = vadd.f32 1.0, %v6513_v60  ;;  %v6515_v63 = vpop.eup %6514 }
 0x279   :  { %6526 = vrcp.f32 %v1636_v61  ;;  %v6517_v0 = vpop.eup %6516 }
 0x27a   :  { %6528 = vrcp.f32 %v1635_v62 }
 0x27e   :  { %v6519_v1 = vpop.eup %6518 }
 0x27f   :  { %v6521_v2 = vpop.eup %6520  ;;  %v1654_v7 = vadd.f32 1.0, %v6519_v1 }
 0x280   :  { %v6523_v3 = vpop.eup %6522  ;;  %v1662_v4 = vmul.f32 %v6521_v2, %v6515_v63 }
 0x281   :  { %v6525_v5 = vpop.eup %6524  ;;  %v1661_v6 = vmul.f32 %v6523_v3, %v6517_v0  ;;  %6530 = vrcp.f32 %v1654_v7 }
 0x282   :  { %v1653_v10 = vadd.f32 1.0, %v6525_v5 }
 0x283   :  { %v6527_v8 = vpop.eup %6526 }
 0x284   :  { %v6529_v11 = vpop.eup %6528  ;;  %v1660_v13 = vmul.f32 %v6527_v8, %v1507_v9  ;;  %6532 = vrcp.f32 %v1653_v10 }
 0x285   :  { %v1659_v14 = vmul.f32 %v6529_v11, %v1506_v12 }
 0x286   :  { %v1664_v15 = vadd.f32 %v1662_v4, %v1660_v13 }
 0x287   :  { %v1663_v16 = vadd.f32 %v1661_v6, %v1659_v14 }
 0x288   :  { %6534 = vtanh.f32 %v1664_v15  ;;  %v7610_v17 = vsel %vm1669_vm7, %v1664_v15, %v1507_v9 }
 0x289   :  { %6536 = vtanh.f32 %v1663_v16  ;;  %v7614_v18 = vsel %vm1669_vm7, %v1663_v16, %v1506_v12 }
 0x28b   :  { %v6531_v19 = vpop.eup %6530 }
 0x28e   :  { %v6533_v20 = vpop.eup %6532 }
 0x292   :  { %v6535_v21 = vpop.eup %6534 }
 0x293   :  { %v6537_v22 = vpop.eup %6536  ;;  %v1668_v23 = vmul.f32 %v6535_v21, %v6531_v19 }
 0x294   :  { %v1667_v25 = vmul.f32 %v6537_v22, %v6533_v20 }
 0x295   :  { %v7624_v28 = vsel %vm1669_vm7, %v1668_v23, %v1505_v24 }
 0x296   :  { %v7628_v31 = vsel %vm1669_vm7, %v1667_v25, %v1504_v27 }
 0x297   :  { %v6231_v32 = vpack.c.bf16 %v7624_v28, %v7628_v31 }
 0x299   :  { %6232 = vmatprep.subr.bf16.mxu0 %v6231_v32 }
 0x29a   :  { %6234 = vmatpush3.bf16.msra.mxu0 %v6231_v32 }
 0x29d   :  { %5883 = vmatmul.mubr.msk.f32.vlgmr.msra.gmra.mrb[16].mxu0 %vm1317_vm4, %v7474_v40 }
 0x29e   :  { %5885 = vmatprep.mubr.msk.f32.mxu0 %vm1317_vm4, %v7479_v41 }
 0x2a1   :  { %5886 = vmatmul.mubr.msk.f32.gmra.mrb[18].mxu0 %vm1317_vm4, %v7488_v42 }
 0x2a2   :  { %5888 = vmatprep.mubr.msk.f32.mxu0 %vm1317_vm4, %v7493_v43 }
 0x2a5   :  { %5889 = vmatmul.mubr.msk.f32.gmra.mrb[20].mxu0 %vm1317_vm4, %v7502_v44 }
 0x2a6   :  { %5891 = vmatprep.mubr.msk.f32.mxu0 %vm1317_vm4, %v7507_v45 }
 0x2a9   :  { %5892 = vmatmul.mubr.msk.f32.gmra.mrb[22].mxu0 %vm1317_vm4, %v7516_v46 }
 0x2aa   :  { %5914 = vmatprep.mubr.msk.f32.mxu0 %vm1317_vm4, %v7465_v39 }
 0x370   :  { %v5884_v29 = vpop.f32.mrb[16].mxu0 }
 0x371   :  { %v5063_v30 = vmul.f32 -1.442695, %v5884_v29  ;;  %v1740_v33 = vpop.f32.mrb[17].mxu0 }
 0x372   :  { %v5062_v34 = vmul.f32 -1.442695, %v1740_v33 }
 0x373   :  { %6538 = vpow2.f32 %v5063_v30 }
 0x374   :  { %6540 = vpow2.f32 %v5062_v34  ;;  %v5887_v35 = vpop.f32.mrb[18].mxu0 }
 0x375   :  { %v5065_v36 = vmul.f32 -1.442695, %v5887_v35  ;;  %v1750_v37 = vpop.f32.mrb[19].mxu0 }
 0x376   :  { %v5064_v47 = vmul.f32 -1.442695, %v1750_v37 }
 0x377   :  { %6542 = vpow2.f32 %v5065_v36 }
 0x378   :  { %6544 = vpow2.f32 %v5064_v47  ;;  %v5890_v48 = vpop.f32.mrb[20].mxu0 }
 0x379   :  { %v1760_v49 = vpop.f32.mrb[21].mxu0  ;;  %6546 = vtanh.f32 %v5890_v48 }
 0x37a   :  { %6548 = vtanh.f32 %v1760_v49 }
 0x37c   :  { %v5893_v50 = vpop.f32.mrb[22].mxu0 }
 0x37d   :  { %v6539_v51 = vpop.eup %6538  ;;  %v5067_v52 = vmul.f32 -1.442695, %v5893_v50  ;;  %v1770_v53 = vpop.f32.mrb[23].mxu0 }
 0x37e   :  { %v6541_v54 = vpop.eup %6540  ;;  %v1800_v55 = vadd.f32 1.0, %v6539_v51  ;;  %v5066_v56 = vmul.f32 -1.442695, %v1770_v53 }
 0x37f   :  { %v1799_v57 = vadd.f32 1.0, %v6541_v54  ;;  %6550 = vpow2.f32 %v5067_v52 }
 0x380   :  { %6552 = vrcp.f32 %v1800_v55 }
 0x381   :  { %v6543_v58 = vpop.eup %6542  ;;  %6554 = vrcp.f32 %v1799_v57 }
 0x382   :  { %v6545_v59 = vpop.eup %6544  ;;  %v1802_v60 = vadd.f32 1.0, %v6543_v58  ;;  %6556 = vpow2.f32 %v5066_v56 }
 0x383   :  { %v1801_v61 = vadd.f32 1.0, %v6545_v59  ;;  %v6547_v62 = vpop.eup %6546 }
 0x384   :  { %6558 = vrcp.f32 %v1802_v60  ;;  %v6549_v63 = vpop.eup %6548 }
 0x385   :  { %6560 = vrcp.f32 %v1801_v61 }
 0x389   :  { %v6551_v0 = vpop.eup %6550 }
 0x38a   :  { %v6553_v1 = vpop.eup %6552  ;;  %v1820_v6 = vadd.f32 1.0, %v6551_v0 }
 0x38b   :  { %v6555_v2 = vpop.eup %6554  ;;  %v1828_v3 = vmul.f32 %v6553_v1, %v6547_v62 }
 0x38c   :  { %v6557_v4 = vpop.eup %6556  ;;  %v1827_v5 = vmul.f32 %v6555_v2, %v6549_v63  ;;  %6562 = vrcp.f32 %v1820_v6 }
 0x38d   :  { %v1819_v8 = vadd.f32 1.0, %v6557_v4 }
 0x38e   :  { %v6559_v7 = vpop.eup %6558 }
 0x38f   :  { %v6561_v9 = vpop.eup %6560  ;;  %v1826_v10 = vmul.f32 %v6559_v7, %v7610_v17  ;;  %6564 = vrcp.f32 %v1819_v8 }
 0x390   :  { %v1825_v11 = vmul.f32 %v6561_v9, %v7614_v18 }
 0x391   :  { %v1830_v12 = vadd.f32 %v1828_v3, %v1826_v10 }
 0x392   :  { %v1829_v13 = vadd.f32 %v1827_v5, %v1825_v11 }
 0x393   :  { %6566 = vtanh.f32 %v1830_v12  ;;  %v7654_v14 = vsel %vm1835_vm8, %v1830_v12, %v7610_v17 }
 0x394   :  { %6568 = vtanh.f32 %v1829_v13  ;;  %v7659_v15 = vsel %vm1835_vm8, %v1829_v13, %v7614_v18 }
 0x396   :  { %v6563_v16 = vpop.eup %6562 }
 0x399   :  { %v6565_v19 = vpop.eup %6564 }
 0x39d   :  { %v6567_v20 = vpop.eup %6566 }
 0x39e   :  { %v6569_v21 = vpop.eup %6568  ;;  %v1834_v22 = vmul.f32 %v6567_v20, %v6563_v16 }
 0x39f   :  { %v1833_v23 = vmul.f32 %v6569_v21, %v6565_v19 }
 0x3a0   :  { %v7664_v24 = vsel %vm1835_vm8, %v1834_v22, %v7624_v28 }
 0x3a1   :  { %v7669_v17 = vsel %vm1835_vm8, %v1833_v23, %v7628_v31 }
 0x3a2   :  { %v6235_v18 = vpack.c.bf16 %v7664_v24, %v7669_v17 }
 0x3a4   :  { %6236 = vmatprep.subr.bf16.mxu1 %v6235_v18 }
 0x3a5   :  { %6238 = vmatpush3.bf16.msra.mxu1 %v6235_v18 }
 0x3a8   :  { %5899 = vmatmul.mubr.msk.f32.vlgmr.msra.gmra.mrb[16].mxu1 %vm1317_vm4, %v7474_v40 }
 0x3a9   :  { %5901 = vmatprep.mubr.msk.f32.mxu1 %vm1317_vm4, %v7479_v41 }
 0x3ac   :  { %5902 = vmatmul.mubr.msk.f32.gmra.mrb[18].mxu1 %vm1317_vm4, %v7488_v42 }
 0x3ad   :  { %5904 = vmatprep.mubr.msk.f32.mxu1 %vm1317_vm4, %v7493_v43 }
 0x3b0   :  { %5905 = vmatmul.mubr.msk.f32.gmra.mrb[20].mxu1 %vm1317_vm4, %v7502_v44 }
 0x3b1   :  { %5907 = vmatprep.mubr.msk.f32.mxu1 %vm1317_vm4, %v7507_v45 }
 0x3b4   :  { %5908 = vmatmul.mubr.msk.f32.gmra.mrb[22].mxu1 %vm1317_vm4, %v7516_v46 }
 0x3b5   :  { %5930 = vmatprep.mubr.msk.f32.mxu1 %vm1317_vm4, %v7465_v39 }
 0x47b   :  { %v5900_v25 = vpop.f32.mrb[16].mxu1 }
 0x47c   :  { %v5077_v27 = vmul.f32 -1.442695, %v5900_v25  ;;  %v1906_v28 = vpop.f32.mrb[17].mxu1 }
 0x47d   :  { %v5076_v31 = vmul.f32 -1.442695, %v1906_v28 }
 0x47e   :  { %6570 = vpow2.f32 %v5077_v27 }
 0x47f   :  { %6572 = vpow2.f32 %v5076_v31  ;;  %v5903_v32 = vpop.f32.mrb[18].mxu1 }
 0x480   :  { %v5079_v29 = vmul.f32 -1.442695, %v5903_v32  ;;  %v1916_v30 = vpop.f32.mrb[19].mxu1 }
 0x481   :  { %v5078_v33 = vmul.f32 -1.442695, %v1916_v30 }
 0x482   :  { %6574 = vpow2.f32 %v5079_v29 }
 0x483   :  { %6576 = vpow2.f32 %v5078_v33  ;;  %v5906_v34 = vpop.f32.mrb[20].mxu1 }
 0x484   :  { %v1926_v35 = vpop.f32.mrb[21].mxu1  ;;  %6578 = vtanh.f32 %v5906_v34 }
 0x485   :  { %6580 = vtanh.f32 %v1926_v35 }
 0x487   :  { %v5909_v36 = vpop.f32.mrb[22].mxu1 }
 0x488   :  { %v6571_v37 = vpop.eup %6570  ;;  %v5081_v47 = vmul.f32 -1.442695, %v5909_v36  ;;  %v1936_v48 = vpop.f32.mrb[23].mxu1 }
 0x489   :  { %v6573_v49 = vpop.eup %6572  ;;  %v1966_v50 = vadd.f32 1.0, %v6571_v37  ;;  %v5080_v51 = vmul.f32 -1.442695, %v1936_v48 }
 0x48a   :  { %v1965_v52 = vadd.f32 1.0, %v6573_v49  ;;  %6582 = vpow2.f32 %v5081_v47 }
 0x48b   :  { %6584 = vrcp.f32 %v1966_v50 }
 0x48c   :  { %v6575_v53 = vpop.eup %6574  ;;  %6586 = vrcp.f32 %v1965_v52 }
 0x48d   :  { %v6577_v54 = vpop.eup %6576  ;;  %v1968_v55 = vadd.f32 1.0, %v6575_v53  ;;  %6588 = vpow2.f32 %v5080_v51 }
 0x48e   :  { %v1967_v56 = vadd.f32 1.0, %v6577_v54  ;;  %v6579_v57 = vpop.eup %6578 }
 0x48f   :  { %6590 = vrcp.f32 %v1968_v55  ;;  %v6581_v58 = vpop.eup %6580 }
 0x490   :  { %6592 = vrcp.f32 %v1967_v56 }
 0x494   :  { %v6583_v59 = vpop.eup %6582 }
 0x495   :  { %v6585_v60 = vpop.eup %6584  ;;  %v1986_v1 = vadd.f32 1.0, %v6583_v59 }
 0x496   :  { %v6587_v61 = vpop.eup %6586  ;;  %v1994_v62 = vmul.f32 %v6585_v60, %v6579_v57 }
 0x497   :  { %v6589_v63 = vpop.eup %6588  ;;  %v1993_v0 = vmul.f32 %v6587_v61, %v6581_v58  ;;  %6594 = vrcp.f32 %v1986_v1 }
 0x498   :  { %v1985_v3 = vadd.f32 1.0, %v6589_v63 }
 0x499   :  { %v6591_v2 = vpop.eup %6590 }
 0x49a   :  { %v6593_v4 = vpop.eup %6592  ;;  %v1992_v5 = vmul.f32 %v6591_v2, %v7654_v14  ;;  %6596 = vrcp.f32 %v1985_v3 }
 0x49b   :  { %v1991_v6 = vmul.f32 %v6593_v4, %v7659_v15 }
 0x49c   :  { %v1996_v7 = vadd.f32 %v1994_v62, %v1992_v5 }
 0x49d   :  { %v1995_v8 = vadd.f32 %v1993_v0, %v1991_v6 }
 0x49e   :  { %6598 = vtanh.f32 %v1996_v7  ;;  %v7695_v9 = vsel %vm2001_vm9, %v1996_v7, %v7654_v14 }
 0x49f   :  { %6600 = vtanh.f32 %v1995_v8  ;;  %v7700_v10 = vsel %vm2001_vm9, %v1995_v8, %v7659_v15 }
 0x4a1   :  { %v6595_v11 = vpop.eup %6594 }
 0x4a4   :  { %v6597_v12 = vpop.eup %6596 }
 0x4a8   :  { %v6599_v13 = vpop.eup %6598 }
 0x4a9   :  { %v6601_v16 = vpop.eup %6600  ;;  %v2000_v19 = vmul.f32 %v6599_v13, %v6595_v11 }
 0x4aa   :  { %v1999_v20 = vmul.f32 %v6601_v16, %v6597_v12 }
 0x4ab   :  { %v7705_v21 = vsel %vm2001_vm9, %v2000_v19, %v7664_v24 }
 0x4ac   :  { %v7710_v14 = vsel %vm2001_vm9, %v1999_v20, %v7669_v17 }
 0x4ad   :  { %v6239_v15 = vpack.c.bf16 %v7705_v21, %v7710_v14 }
 0x4af   :  { %6240 = vmatprep.subr.bf16.mxu0 %v6239_v15 }
 0x4b0   :  { %6242 = vmatpush3.bf16.msra.mxu0 %v6239_v15 }
 0x4b3   :  { %5915 = vmatmul.mubr.msk.f32.vlgmr.msra.gmra.mrb[32].mxu0 %vm1317_vm4, %v7474_v40 }
 0x4b4   :  { %5917 = vmatprep.mubr.msk.f32.mxu0 %vm1317_vm4, %v7479_v41 }
 0x4b7   :  { %5918 = vmatmul.mubr.msk.f32.gmra.mrb[34].mxu0 %vm1317_vm4, %v7488_v42 }
 0x4b8   :  { %5920 = vmatprep.mubr.msk.f32.mxu0 %vm1317_vm4, %v7493_v43 }
 0x4bb   :  { %5921 = vmatmul.mubr.msk.f32.gmra.mrb[36].mxu0 %vm1317_vm4, %v7502_v44 }
 0x4bc   :  { %5923 = vmatprep.mubr.msk.f32.mxu0 %vm1317_vm4, %v7507_v45 }
 0x4bf   :  { %5924 = vmatmul.mubr.msk.f32.gmra.mrb[38].mxu0 %vm1317_vm4, %v7516_v46 }
 0x4c0   :  { %5946 = vmatprep.mubr.msk.f32.mxu0 %vm1317_vm4, %v7465_v39 }
 0x586   :  { %v5916_v22 = vpop.f32.mrb[32].mxu0 }
 0x587   :  { %v5091_v23 = vmul.f32 -1.442695, %v5916_v22  ;;  %v2072_v24 = vpop.f32.mrb[33].mxu0 }
 0x588   :  { %v5090_v17 = vmul.f32 -1.442695, %v2072_v24 }
 0x589   :  { %6602 = vpow2.f32 %v5091_v23 }
 0x58a   :  { %6604 = vpow2.f32 %v5090_v17  ;;  %v5919_v18 = vpop.f32.mrb[34].mxu0 }
 0x58b   :  { %v5093_v25 = vmul.f32 -1.442695, %v5919_v18  ;;  %v2082_v27 = vpop.f32.mrb[35].mxu0 }
 0x58c   :  { %v5092_v28 = vmul.f32 -1.442695, %v2082_v27 }
 0x58d   :  { %6606 = vpow2.f32 %v5093_v25 }
 0x58e   :  { %6608 = vpow2.f32 %v5092_v28  ;;  %v5922_v31 = vpop.f32.mrb[36].mxu0 }
 0x58f   :  { %v2092_v32 = vpop.f32.mrb[37].mxu0  ;;  %6610 = vtanh.f32 %v5922_v31 }
 0x590   :  { %6612 = vtanh.f32 %v2092_v32 }
 0x592   :  { %v5925_v29 = vpop.f32.mrb[38].mxu0 }
 0x593   :  { %v6603_v30 = vpop.eup %6602  ;;  %v5095_v33 = vmul.f32 -1.442695, %v5925_v29  ;;  %v2102_v34 = vpop.f32.mrb[39].mxu0 }
 0x594   :  { %v6605_v35 = vpop.eup %6604  ;;  %v2132_v36 = vadd.f32 1.0, %v6603_v30  ;;  %v5094_v37 = vmul.f32 -1.442695, %v2102_v34 }
 0x595   :  { %v2131_v47 = vadd.f32 1.0, %v6605_v35  ;;  %6614 = vpow2.f32 %v5095_v33 }
 0x596   :  { %6616 = vrcp.f32 %v2132_v36 }
 0x597   :  { %v6607_v48 = vpop.eup %6606  ;;  %6618 = vrcp.f32 %v2131_v47 }
 0x598   :  { %v6609_v49 = vpop.eup %6608  ;;  %v2134_v50 = vadd.f32 1.0, %v6607_v48  ;;  %6620 = vpow2.f32 %v5094_v37 }
 0x599   :  { %v2133_v51 = vadd.f32 1.0, %v6609_v49  ;;  %v6611_v52 = vpop.eup %6610 }
 0x59a   :  { %6622 = vrcp.f32 %v2134_v50  ;;  %v6613_v53 = vpop.eup %6612 }
 0x59b   :  { %6624 = vrcp.f32 %v2133_v51 }
 0x59f   :  { %v6615_v54 = vpop.eup %6614 }
 0x5a0   :  { %v6617_v55 = vpop.eup %6616  ;;  %v2152_v60 = vadd.f32 1.0, %v6615_v54 }
 0x5a1   :  { %v6619_v56 = vpop.eup %6618  ;;  %v2160_v57 = vmul.f32 %v6617_v55, %v6611_v52 }
 0x5a2   :  { %v6621_v58 = vpop.eup %6620  ;;  %v2159_v59 = vmul.f32 %v6619_v56, %v6613_v53  ;;  %6626 = vrcp.f32 %v2152_v60 }
 0x5a3   :  { %v2151_v62 = vadd.f32 1.0, %v6621_v58 }
 0x5a4   :  { %v6623_v61 = vpop.eup %6622 }
 0x5a5   :  { %v6625_v63 = vpop.eup %6624  ;;  %v2158_v0 = vmul.f32 %v6623_v61, %v7695_v9  ;;  %6628 = vrcp.f32 %v2151_v62 }
 0x5a6   :  { %v2157_v1 = vmul.f32 %v6625_v63, %v7700_v10 }
 0x5a7   :  { %v2162_v2 = vadd.f32 %v2160_v57, %v2158_v0 }
 0x5a8   :  { %v2161_v3 = vadd.f32 %v2159_v59, %v2157_v1 }
 0x5a9   :  { %6630 = vtanh.f32 %v2162_v2  ;;  %v7736_v4 = vsel %vm2167_vm10, %v2162_v2, %v7695_v9 }
 0x5aa   :  { %6632 = vtanh.f32 %v2161_v3  ;;  %v7741_v5 = vsel %vm2167_vm10, %v2161_v3, %v7700_v10 }
 0x5ac   :  { %v6627_v6 = vpop.eup %6626 }
 0x5af   :  { %v6629_v7 = vpop.eup %6628 }
 0x5b3   :  { %v6631_v8 = vpop.eup %6630 }
 0x5b4   :  { %v6633_v11 = vpop.eup %6632  ;;  %v2166_v12 = vmul.f32 %v6631_v8, %v6627_v6 }
 0x5b5   :  { %v2165_v13 = vmul.f32 %v6633_v11, %v6629_v7 }
 0x5b6   :  { %v7746_v16 = vsel %vm2167_vm10, %v2166_v12, %v7705_v21 }
 0x5b7   :  { %v7751_v9 = vsel %vm2167_vm10, %v2165_v13, %v7710_v14 }
 0x5b8   :  { %v6243_v10 = vpack.c.bf16 %v7746_v16, %v7751_v9 }
 0x5ba   :  { %6244 = vmatprep.subr.bf16.mxu1 %v6243_v10 }
 0x5bb   :  { %6246 = vmatpush3.bf16.msra.mxu1 %v6243_v10 }
 0x5be   :  { %5931 = vmatmul.mubr.msk.f32.vlgmr.msra.gmra.mrb[32].mxu1 %vm1317_vm4, %v7474_v40 }
 0x5bf   :  { %5933 = vmatprep.mubr.msk.f32.mxu1 %vm1317_vm4, %v7479_v41 }
 0x5c2   :  { %5934 = vmatmul.mubr.msk.f32.gmra.mrb[34].mxu1 %vm1317_vm4, %v7488_v42 }
 0x5c3   :  { %5936 = vmatprep.mubr.msk.f32.mxu1 %vm1317_vm4, %v7493_v43 }
 0x5c6   :  { %5937 = vmatmul.mubr.msk.f32.gmra.mrb[36].mxu1 %vm1317_vm4, %v7502_v44 }
 0x5c7   :  { %5939 = vmatprep.mubr.msk.f32.mxu1 %vm1317_vm4, %v7507_v45 }
 0x5ca   :  { %5940 = vmatmul.mubr.msk.f32.gmra.mrb[38].mxu1 %vm1317_vm4, %v7516_v46 }
 0x5cb   :  { %5962 = vmatprep.mubr.msk.f32.mxu1 %vm1317_vm4, %v7465_v39 }
 0x691   :  { %v5932_v19 = vpop.f32.mrb[32].mxu1 }
 0x692   :  { %v5105_v20 = vmul.f32 -1.442695, %v5932_v19  ;;  %v2238_v21 = vpop.f32.mrb[33].mxu1 }
 0x693   :  { %v5104_v14 = vmul.f32 -1.442695, %v2238_v21 }
 0x694   :  { %6634 = vpow2.f32 %v5105_v20 }
 0x695   :  { %6636 = vpow2.f32 %v5104_v14  ;;  %v5935_v15 = vpop.f32.mrb[34].mxu1 }
 0x696   :  { %v5107_v22 = vmul.f32 -1.442695, %v5935_v15  ;;  %v2248_v23 = vpop.f32.mrb[35].mxu1 }
 0x697   :  { %v5106_v24 = vmul.f32 -1.442695, %v2248_v23 }
 0x698   :  { %6638 = vpow2.f32 %v5107_v22 }
 0x699   :  { %6640 = vpow2.f32 %v5106_v24  ;;  %v5938_v17 = vpop.f32.mrb[36].mxu1 }
 0x69a   :  { %v2258_v18 = vpop.f32.mrb[37].mxu1  ;;  %6642 = vtanh.f32 %v5938_v17 }
 0x69b   :  { %6644 = vtanh.f32 %v2258_v18 }
 0x69d   :  { %v5941_v25 = vpop.f32.mrb[38].mxu1 }
 0x69e   :  { %v6635_v27 = vpop.eup %6634  ;;  %v5109_v28 = vmul.f32 -1.442695, %v5941_v25  ;;  %v2268_v31 = vpop.f32.mrb[39].mxu1 }
 0x69f   :  { %v6637_v39 = vpop.eup %6636  ;;  %v2298_v32 = vadd.f32 1.0, %v6635_v27  ;;  %v5108_v29 = vmul.f32 -1.442695, %v2268_v31 }
 0x6a0   :  { %v2297_v30 = vadd.f32 1.0, %v6637_v39  ;;  %6646 = vpow2.f32 %v5109_v28 }
 0x6a1   :  { %6648 = vrcp.f32 %v2298_v32 }
 0x6a2   :  { %v6639_v33 = vpop.eup %6638  ;;  %6650 = vrcp.f32 %v2297_v30 }
 0x6a3   :  { %v6641_v34 = vpop.eup %6640  ;;  %v2300_v35 = vadd.f32 1.0, %v6639_v33  ;;  %6652 = vpow2.f32 %v5108_v29 }
 0x6a4   :  { %v2299_v36 = vadd.f32 1.0, %v6641_v34  ;;  %v6643_v37 = vpop.eup %6642 }
 0x6a5   :  { %6654 = vrcp.f32 %v2300_v35  ;;  %v6645_v47 = vpop.eup %6644 }
 0x6a6   :  { %6656 = vrcp.f32 %v2299_v36 }
 0x6aa   :  { %v6647_v48 = vpop.eup %6646 }
 0x6ab   :  { %v6649_v49 = vpop.eup %6648  ;;  %v2318_v54 = vadd.f32 1.0, %v6647_v48 }
 0x6ac   :  { %v6651_v50 = vpop.eup %6650  ;;  %v2326_v51 = vmul.f32 %v6649_v49, %v6643_v37 }
 0x6ad   :  { %v6653_v52 = vpop.eup %6652  ;;  %v2325_v53 = vmul.f32 %v6651_v50, %v6645_v47  ;;  %6658 = vrcp.f32 %v2318_v54 }
 0x6ae   :  { %v2317_v56 = vadd.f32 1.0, %v6653_v52 }
 0x6af   :  { %v6655_v55 = vpop.eup %6654 }
 0x6b0   :  { %v6657_v57 = vpop.eup %6656  ;;  %v2324_v58 = vmul.f32 %v6655_v55, %v7736_v4  ;;  %6660 = vrcp.f32 %v2317_v56 }
 0x6b1   :  { %v2323_v59 = vmul.f32 %v6657_v57, %v7741_v5 }
 0x6b2   :  { %v2328_v60 = vadd.f32 %v2326_v51, %v2324_v58 }
 0x6b3   :  { %v2327_v61 = vadd.f32 %v2325_v53, %v2323_v59 }
 0x6b4   :  { %6662 = vtanh.f32 %v2328_v60  ;;  %v7777_v62 = vsel %vm2333_vm11, %v2328_v60, %v7736_v4 }
 0x6b5   :  { %6664 = vtanh.f32 %v2327_v61  ;;  %v7782_v63 = vsel %vm2333_vm11, %v2327_v61, %v7741_v5 }
 0x6b7   :  { %v6659_v0 = vpop.eup %6658 }
 0x6ba   :  { %v6661_v1 = vpop.eup %6660 }
 0x6be   :  { %v6663_v2 = vpop.eup %6662 }
 0x6bf   :  { %v6665_v3 = vpop.eup %6664  ;;  %v2332_v6 = vmul.f32 %v6663_v2, %v6659_v0  ;;  %v6990_v0 = vld [vmem:[%s8406_s5 + $0x8] sm:$0xff]  ;;  %v6992_v2 = vld [vmem:[%s8406_s5 + $0x18] sm:$0xff] }
 0x6c0   :  { %v2331_v7 = vmul.f32 %v6665_v3, %v6661_v1  ;;  %v6991_v1 = vld [vmem:[%s8406_s5 + $0x10] sm:$0xff]  ;;  %v6993_v3 = vld [vmem:[%s8406_s5 + $0x20] sm:$0xff] }
 0x6c1   :  { %v7787_v8 = vsel %vm2333_vm11, %v2332_v6, %v7746_v16  ;;  %v6994_v6 = vld [vmem:[%s8406_s5 + $0x28] sm:$0xff] }
 0x6c2   :  { %v7792_v4 = vsel %vm2333_vm11, %v2331_v7, %v7751_v9  ;;  %v6995_v7 = vld [vmem:[%s8406_s5 + $0x30] sm:$0xff] }
 0x6c3   :  { %v6247_v5 = vpack.c.bf16 %v7787_v8, %v7792_v4 }
 0x6c5   :  { %6248 = vmatprep.subr.bf16.mxu0 %v6247_v5 }
 0x6c6   :  { %6250 = vmatpush3.bf16.msra.mxu0 %v6247_v5  ;;  %v27_v5 = vld [vmem:[%s8401_s0] sm:$0xf] }
 0x6c7   :  { %5974 = vmatprep.subr.msk.mxu0 %vm2693_vm13, %v27_v5 }
 0x6c9   :  { %5947 = vmatmul.mubr.msk.f32.vlgmr.msra.gmra.mrb[48].mxu0 %vm1317_vm4, %v7474_v40  ;;  %v7813_v40 = vld [vmem:[%s8407_s6] sm:$0xff] }
 0x6ca   :  { %5949 = vmatprep.mubr.msk.f32.mxu0 %vm1317_vm4, %v7479_v41  ;;  %v7818_v41 = vld [vmem:[%s8407_s6 + $0x10] sm:$0xff]  ;;  %2676 = vrot.lane.b32.xlu0 %v7813_v40, %s7033_s15 }
 0x6cb   :  { %2680 = vrot.lane.b32.xlu1 %v7818_v41, %s7033_s15  ;;  %5975 = vmatpush3.msk.msra.mxu0 %vm2693_vm13, %v27_v5 }
 0x6cd   :  { %5950 = vmatmul.mubr.msk.f32.gmra.mrb[50].mxu0 %vm1317_vm4, %v7488_v42  ;;  %v7827_v42 = vld [vmem:[%s8407_s6 + $0x8] sm:$0xff] }
 0x6ce   :  { %5952 = vmatprep.mubr.msk.f32.mxu0 %vm1317_vm4, %v7493_v43  ;;  %v7832_v43 = vld [vmem:[%s8407_s6 + $0x18] sm:$0xff]  ;;  %2678 = vrot.lane.b32.xlu0 %v7827_v42, %s7033_s15 }
 0x6cf   :  { %2682 = vrot.lane.b32.xlu1 %v7832_v43, %s7033_s15 }
 0x6d1   :  { %5953 = vmatmul.mubr.msk.f32.gmra.mrb[52].mxu0 %vm1317_vm4, %v7502_v44 }
 0x6d2   :  { %5955 = vmatprep.mubr.msk.f32.mxu0 %vm1317_vm4, %v7507_v45 }
 0x6d5   :  { %5956 = vmatmul.mubr.msk.f32.gmra.mrb[54].mxu0 %vm1317_vm4, %v7516_v46 }
 0x79c   :  { %v5948_v44 = vpop.f32.mrb[48].mxu0 }
 0x79d   :  { %v5119_v45 = vmul.f32 -1.442695, %v5948_v44  ;;  %v2404_v46 = vpop.f32.mrb[49].mxu0  ;;  %v2681_v44 = vpop.permute.xlu1 %2680 }
 0x79e   :  { %v5118_v11 = vmul.f32 -1.442695, %v2404_v46 }
 0x79f   :  { %6666 = vpow2.f32 %v5119_v45 }
 0x7a0   :  { %6668 = vpow2.f32 %v5118_v11  ;;  %v5951_v12 = vpop.f32.mrb[50].mxu0  ;;  %v7034_v11 = vmov 20  }
 0x7a1   :  { %v5121_v13 = vmul.f32 -1.442695, %v5951_v12  ;;  %v2414_v16 = vpop.f32.mrb[51].mxu0  ;;  %v2683_v46 = vpop.permute.xlu1 %2682  ;;  %6466 = vset.pattern.permute.xlu1 %v7034_v11  ;;  %6465 = vset.pattern.permute.xlu0 %v7034_v11 }
 0x7a2   :  { %v5120_v9 = vmul.f32 -1.442695, %v2414_v16  ;;  %2888 = vperm.xlu1 %6466, %v7832_v43   ;;  %2884 = vperm.xlu0 %6465, %v7818_v41  }
 0x7a3   :  { %6670 = vpow2.f32 %v5121_v13 }
 0x7a4   :  { %6672 = vpow2.f32 %v5120_v9  ;;  %v5954_v10 = vpop.f32.mrb[52].mxu0 }
 0x7a5   :  { %v2424_v19 = vpop.f32.mrb[53].mxu0  ;;  %6674 = vtanh.f32 %v5954_v10 }
 0x7a6   :  { %6676 = vtanh.f32 %v2424_v19  ;;  %2876 = vperm.xlu1 %6466, %v7813_v40   ;;  %2880 = vperm.xlu0 %6465, %v7827_v42  }
 0x7a8   :  { %v5957_v20 = vpop.f32.mrb[54].mxu0 }
 0x7a9   :  { %v6667_v21 = vpop.eup %6666  ;;  %v5123_v14 = vmul.f32 -1.442695, %v5957_v20  ;;  %v2434_v15 = vpop.f32.mrb[55].mxu0 }
 0x7aa   :  { %v6669_v22 = vpop.eup %6668  ;;  %v2464_v23 = vadd.f32 1.0, %v6667_v21  ;;  %v5122_v24 = vmul.f32 -1.442695, %v2434_v15 }
 0x7ab   :  { %v2463_v17 = vadd.f32 1.0, %v6669_v22  ;;  %6678 = vpow2.f32 %v5123_v14 }
 0x7ac   :  { %6680 = vrcp.f32 %v2464_v23 }
 0x7ad   :  { %v6671_v18 = vpop.eup %6670  ;;  %6682 = vrcp.f32 %v2463_v17 }
 0x7ae   :  { %v6673_v25 = vpop.eup %6672  ;;  %v2466_v27 = vadd.f32 1.0, %v6671_v18  ;;  %6684 = vpow2.f32 %v5122_v24 }
 0x7af   :  { %v2465_v28 = vadd.f32 1.0, %v6673_v25  ;;  %v6675_v31 = vpop.eup %6674 }
 0x7b0   :  { %6686 = vrcp.f32 %v2466_v27  ;;  %v6677_v39 = vpop.eup %6676 }
 0x7b1   :  { %6688 = vrcp.f32 %v2465_v28 }
 0x7b5   :  { %v6679_v32 = vpop.eup %6678 }
 0x7b6   :  { %v6681_v29 = vpop.eup %6680  ;;  %v2484_v36 = vadd.f32 1.0, %v6679_v32 }
 0x7b7   :  { %v6683_v30 = vpop.eup %6682  ;;  %v2492_v33 = vmul.f32 %v6681_v29, %v6675_v31 }
 0x7b8   :  { %v6685_v34 = vpop.eup %6684  ;;  %v2491_v35 = vmul.f32 %v6683_v30, %v6677_v39  ;;  %6690 = vrcp.f32 %v2484_v36 }
 0x7b9   :  { %v2483_v47 = vadd.f32 1.0, %v6685_v34 }
 0x7ba   :  { %v6687_v37 = vpop.eup %6686 }
 0x7bb   :  { %v6689_v48 = vpop.eup %6688  ;;  %v2490_v49 = vmul.f32 %v6687_v37, %v7777_v62  ;;  %6692 = vrcp.f32 %v2483_v47 }
 0x7bc   :  { %v2489_v50 = vmul.f32 %v6689_v48, %v7782_v63 }
 0x7bd   :  { %v2494_v51 = vadd.f32 %v2492_v33, %v2490_v49 }
 0x7be   :  { %v2493_v52 = vadd.f32 %v2491_v35, %v2489_v50 }
 0x7bf   :  { %6694 = vtanh.f32 %v2494_v51  ;;  %v7844_v53 = vsel %vm2499_vm12, %v2494_v51, %v7777_v62 }
 0x7c0   :  { %6696 = vtanh.f32 %v2493_v52  ;;  %v7849_v54 = vsel %vm2499_vm12, %v2493_v52, %v7782_v63 }
 0x7c2   :  { %v6691_v55 = vpop.eup %6690 }
 0x7c5   :  { %v6693_v56 = vpop.eup %6692 }
 0x7c9   :  { %v6695_v57 = vpop.eup %6694 }
 0x7ca   :  { %v6697_v58 = vpop.eup %6696  ;;  %v2498_v59 = vmul.f32 %v6695_v57, %v6691_v55 }
 0x7cb   :  { %v2497_v60 = vmul.f32 %v6697_v58, %v6693_v56 }
 0x7cc   :  { %v7854_v61 = vsel %vm2499_vm12, %v2498_v59, %v7787_v8  ;;  %v6996_v8 = vld [vmem:[%s8406_s5 + $0x38] sm:$0xff] }
 0x7cd   :  { %v7859_v62 = vsel %vm2499_vm12, %v2497_v60, %v7792_v4  ;;  %v2677_v4 = vpop.permute.xlu0 %2676 }
 0x7ce   :  { %v6251_v63 = vpack.c.bf16 %v7854_v61, %v7859_v62  ;;  %5976 = vmatprep.mubr.msk.f32.mxu0 %vm2684_vm14, %v2677_v4 }
 0x7d0   :  { %6252 = vmatprep.subr.bf16.mxu1 %v6251_v63 }
 0x7d1   :  { %6254 = vmatpush3.bf16.msra.mxu1 %v6251_v63  ;;  %v2679_v45 = vpop.permute.xlu0 %2678  ;;  %v7913_v63 = vld [vmem:[%s8403_s2] ss:$0 sm:$0xff] }
 0x7d2   :  { %5977 = vmatmul.mubr.msk.f32.vlgmr.msra.gmra.mrb[64].mxu0 %vm2684_vm14, %v2679_v45  ;;  %vm2665_vm15 = vcmp.gt.s32.totalorder %v7913_v63, 7  ;;  %v4573_v63 = vld [vmem:[%s8407_s6 + $0x50] sm:$0xff] }
 0x7d3   :  { %5979 = vmatprep.mubr.msk.f32.mxu0 %vm2684_vm14, %v2681_v44 }
 0x7d4   :  { %5963 = vmatmul.mubr.msk.f32.vlgmr.msra.gmra.mrb[48].mxu1 %vm1317_vm4, %v6990_v0 }
 0x7d5   :  { %5965 = vmatprep.mubr.msk.f32.mxu1 %vm1317_vm4, %v6991_v1 }
 0x7d6   :  { %5980 = vmatmul.mubr.msk.f32.gmra.mrb[66].mxu0 %vm2684_vm14, %v2683_v46 }
 0x7d7   :  { %5986 = vmatprep.mubr.msk.f32.mxu0 %vm1317_vm4, %v7813_v40 }
 0x7d8   :  { %5966 = vmatmul.mubr.msk.f32.gmra.mrb[50].mxu1 %vm1317_vm4, %v6992_v2 }
 0x7d9   :  { %5968 = vmatprep.mubr.msk.f32.mxu1 %vm1317_vm4, %v6993_v3 }
 0x7dc   :  { %5969 = vmatmul.mubr.msk.f32.gmra.mrb[52].mxu1 %vm1317_vm4, %v6994_v6  ;;  %v7035_v6 = vmov 16  }
 0x7dd   :  { %5971 = vmatprep.mubr.msk.f32.mxu1 %vm1317_vm4, %v6995_v7  ;;  %6467 = vset.pattern.permute.xlu1 %v7035_v6 }
 0x7de   :  { %6468 = vset.pattern.permute.xlu0 %v7035_v6 }
 0x7e0   :  { %5972 = vmatmul.mubr.msk.f32.gmra.mrb[54].mxu1 %vm1317_vm4, %v6996_v8 }
 0x821   :  { %v2885_v8 = vpop.permute.xlu0 %2884 }
 0x8a7   :  { %v5964_v12 = vpop.f32.mrb[48].mxu1 }
 0x8a8   :  { %v5133_v13 = vmul.f32 -1.442695, %v5964_v12  ;;  %v2570_v16 = vpop.f32.mrb[49].mxu1 }
 0x8a9   :  { %v5132_v9 = vmul.f32 -1.442695, %v2570_v16  ;;  %v2881_v16 = vpop.permute.xlu0 %2880 }
 0x8aa   :  { %6698 = vpow2.f32 %v5133_v13 }
 0x8ab   :  { %6700 = vpow2.f32 %v5132_v9  ;;  %v5967_v10 = vpop.f32.mrb[50].mxu1  ;;  %v29_v9 = vld [vmem:[%s8404_s3 + $0x8] sm:$0xff] }
 0x8ac   :  { %v5135_v19 = vmul.f32 -1.442695, %v5967_v10  ;;  %v2580_v20 = vpop.f32.mrb[51].mxu1  ;;  %v28_v10 = vld [vmem:[%s8404_s3] sm:$0xff] }
 0x8ad   :  { %v5134_v21 = vmul.f32 -1.442695, %v2580_v20 }
 0x8ae   :  { %6702 = vpow2.f32 %v5135_v19 }
 0x8af   :  { %6704 = vpow2.f32 %v5134_v21  ;;  %v5970_v14 = vpop.f32.mrb[52].mxu1 }
 0x8b0   :  { %v2590_v15 = vpop.f32.mrb[53].mxu1  ;;  %6706 = vtanh.f32 %v5970_v14 }
 0x8b1   :  { %6708 = vtanh.f32 %v2590_v15 }
 0x8b3   :  { %v5973_v22 = vpop.f32.mrb[54].mxu1 }
 0x8b4   :  { %v6699_v23 = vpop.eup %6698  ;;  %v5137_v40 = vmul.f32 -1.442695, %v5973_v22  ;;  %v2600_v24 = vpop.f32.mrb[55].mxu1 }
 0x8b5   :  { %v6701_v17 = vpop.eup %6700  ;;  %v2630_v18 = vadd.f32 1.0, %v6699_v23  ;;  %v5136_v25 = vmul.f32 -1.442695, %v2600_v24 }
 0x8b6   :  { %v2629_v27 = vadd.f32 1.0, %v6701_v17  ;;  %6710 = vpow2.f32 %v5137_v40  ;;  %v7947_v17 = vld [vmem:[%s8406_s5 + $0x40] sm:$0xff] }
 0x8b7   :  { %6712 = vrcp.f32 %v2630_v18 }
 0x8b8   :  { %v6703_v28 = vpop.eup %6702  ;;  %6714 = vrcp.f32 %v2629_v27 }
 0x8b9   :  { %v6705_v31 = vpop.eup %6704  ;;  %v2632_v39 = vadd.f32 1.0, %v6703_v28  ;;  %6716 = vpow2.f32 %v5136_v25 }
 0x8ba   :  { %v2631_v32 = vadd.f32 1.0, %v6705_v31  ;;  %v6707_v29 = vpop.eup %6706 }
 0x8bb   :  { %6718 = vrcp.f32 %v2632_v39  ;;  %v6709_v30 = vpop.eup %6708 }
 0x8bc   :  { %6720 = vrcp.f32 %v2631_v32 }
 0x8c0   :  { %v6711_v33 = vpop.eup %6710 }
 0x8c1   :  { %v6713_v34 = vpop.eup %6712  ;;  %v2650_v48 = vadd.f32 1.0, %v6711_v33  ;;  %v7976_v33 = vld [vmem:[%s8406_s5 + $0x58] sm:$0xff] }
 0x8c2   :  { %v6715_v35 = vpop.eup %6714  ;;  %v2658_v36 = vmul.f32 %v6713_v34, %v6707_v29  ;;  %v7962_v29 = vld [vmem:[%s8406_s5 + $0x48] sm:$0xff]  ;;  %v7981_v34 = vld [vmem:[%s8406_s5 + $0x60] sm:$0xff] }
 0x8c3   :  { %v6717_v37 = vpop.eup %6716  ;;  %v2657_v47 = vmul.f32 %v6715_v35, %v6709_v30  ;;  %6722 = vrcp.f32 %v2650_v48  ;;  %v7967_v30 = vld [vmem:[%s8406_s5 + $0x50] sm:$0xff]  ;;  %v7990_v35 = vld [vmem:[%s8406_s5 + $0x68] sm:$0xff] }
 0x8c4   :  { %v2649_v50 = vadd.f32 1.0, %v6717_v37  ;;  %v8004_v37 = vld [vmem:[%s8406_s5 + $0x78] sm:$0xff] }
 0x8c5   :  { %v6719_v49 = vpop.eup %6718 }
 0x8c6   :  { %v6721_v51 = vpop.eup %6720  ;;  %v2656_v52 = vmul.f32 %v6719_v49, %v7844_v53  ;;  %6724 = vrcp.f32 %v2649_v50 }
 0x8c7   :  { %v2655_v55 = vmul.f32 %v6721_v51, %v7849_v54 }
 0x8c8   :  { %v2660_v56 = vadd.f32 %v2658_v36, %v2656_v52  ;;  %v7995_v36 = vld [vmem:[%s8406_s5 + $0x70] sm:$0xff] }
 0x8c9   :  { %v2659_v57 = vadd.f32 %v2657_v47, %v2655_v55 }
 0x8ca   :  { %6726 = vtanh.f32 %v2660_v56 }
 0x8cb   :  { %6728 = vtanh.f32 %v2659_v57 }
 0x8cd   :  { %v6723_v58 = vpop.eup %6722 }
 0x8d0   :  { %v6725_v59 = vpop.eup %6724 }
 0x8d4   :  { %v6727_v60 = vpop.eup %6726 }
 0x8d5   :  { %v6729_v0 = vpop.eup %6728  ;;  %v2664_v53 = vmul.f32 %v6727_v60, %v6723_v58 }
 0x8d6   :  { %v2663_v1 = vmul.f32 %v6729_v0, %v6725_v59 }
 0x8d7   :  { %v2667_v54 = vsel %vm2665_vm15, %v2664_v53, %v7854_v61  ;;  %v2905_v61 = vld [vmem:[%s8407_s6 + $0x20] sm:$0xff] }
 0x8d8   :  { %v2666_v2 = vsel %vm2665_vm15, %v2663_v1, %v7859_v62  ;;  %5996 = vmatprep.mubr.msk.f32.mxu1 %vm1317_vm4, %v2905_v61  ;;  %v2906_v62 = vld [vmem:[%s8407_s6 + $0x28] sm:$0xff]  ;;  %2909 = vperm.xlu1 %6467, %v2905_v61  }
 0x8d9   :  { %v6255_v3 = vpack.c.bf16 %v2667_v54, %v2666_v2  ;;  %2914 = vperm.xlu0 %6468, %v2906_v62  }
 0x8db   :  { %6256 = vmatprep.subr.bf16.mxu0 %v6255_v3 }
 0x8dc   :  { %6258 = vmatpush3.bf16.msra.mxu0 %v6255_v3  ;;  %6470 = vset.pattern.permute.xlu1 %v7034_v11 }
 0x8dd   :  { %6469 = vset.pattern.permute.xlu0 %v7034_v11 }
 0x8df   :  { %5987 = vmatmul.mubr.msk.f32.vlgmr.msra.gmra.mrb[64].mxu0 %vm1317_vm4, %v7827_v42 }
 0x8e0   :  { %5989 = vmatprep.mubr.msk.f32.mxu0 %vm1317_vm4, %v7818_v41 }
 0x8e3   :  { %5990 = vmatmul.mubr.msk.f32.gmra.mrb[66].mxu0 %vm1317_vm4, %v7832_v43  ;;  %v2889_v43 = vpop.permute.xlu1 %2888 }
 0x8e4   :  { %6003 = vmatprep.mubr.msk.f32.mxu0 %vm1317_vm4, %v7947_v17 }
 0x8e7   :  { %v2877_v11 = vpop.permute.xlu1 %2876 }
 0x957   :  { %v2910_v25 = vpop.permute.xlu1 %2909 }
 0x958   :  { %v2915_v18 = vpop.permute.xlu0 %2914 }
 0x9b2   :  { %v5988_v41 = vpop.f32.mrb[64].mxu0 }
 0x9b3   :  { %v2856_v42 = vpop.f32.mrb[65].mxu0  ;;  %v2892_v21 = vadd.f32 %v5988_v41, %v2881_v16 }
 0x9b4   :  { %v2891_v15 = vadd.f32 %v2877_v11, %v2856_v42 }
 0x9b6   :  { %v5991_v7 = vpop.f32.mrb[66].mxu0 }
 0x9b7   :  { %v2894_v4 = vadd.f32 %v5991_v7, %v2889_v43  ;;  %v2866_v5 = vpop.f32.mrb[67].mxu0 }
 0x9b8   :  { %v2893_v44 = vadd.f32 %v2885_v8, %v2866_v5 }
 0x9b9   :  { %v2896_v45 = vmul.f32 0.5, %v2894_v4 }
 0x9ba   :  { %v2895_v46 = vmul.f32 0.5, %v2893_v44 }
 0x9bb   :  { %v2899_v12 = vmul.f32 1.442695, %v2896_v45 }
 0x9bc   :  { %v2897_v13 = vmul.f32 1.442695, %v2895_v46 }
 0x9bd   :  { %6730 = vpow2.f32 %v2899_v12 }
 0x9be   :  { %6732 = vpow2.f32 %v2897_v13 }
 0x9c7   :  { %v6731_v19 = vpop.eup %6730 }
 0x9c8   :  { %v6733_v20 = vpop.eup %6732  ;;  %v2902_v14 = vmul.f32 %v6731_v19, %v29_v9 }
 0x9c9   :  { %v2901_v22 = vmul.f32 %v6733_v20, %v28_v10 }
 0x9ca   :  { %v2904_v23 = vadd.f32 %v2902_v14, %v2892_v21 }
 0x9cb   :  { %v2903_v40 = vadd.f32 %v2901_v22, %v2891_v15 }
 0x9cd   :  { %v6259_v24 = vpack.c.bf16 %v2904_v23, %v2903_v40 }
 0x9cf   :  { %6260 = vmatprep.subr.bf16.mxu1 %v6259_v24 }
 0x9d0   :  { %6262 = vmatpush3.bf16.msra.mxu1 %v6259_v24 }
 0x9d3   :  { %5997 = vmatmul.mubr.msk.f32.vlgmr.msra.gmra.mrb[64].mxu1 %vm1317_vm4, %v2906_v62 }
 0x9d4   :  { %6019 = vmatprep.mubr.msk.f32.mxu1 %vm1317_vm4, %v7947_v17 }
 0xaa6   :  { %v5998_v27 = vpop.f32.mrb[64].mxu1 }
 0xaa7   :  { %v7953_v28 = vadd.f32 %v5998_v27, %v2915_v18  ;;  %v2987_v31 = vpop.f32.mrb[65].mxu1 }
 0xaa8   :  { %v7955_v39 = vadd.f32 %v2987_v31, %v2910_v25 }
 0xaaa   :  { %v6263_v32 = vpack.c.bf16 %v7953_v28, %v7955_v39 }
 0xaac   :  { %6264 = vmatprep.subr.bf16.mxu0 %v6263_v32 }
 0xaad   :  { %6266 = vmatpush3.bf16.msra.mxu0 %v6263_v32 }
 0xab0   :  { %6004 = vmatmul.mubr.msk.f32.vlgmr.msra.gmra.mrb[8].mxu0 %vm1317_vm4, %v7962_v29 }
 0xab1   :  { %6006 = vmatprep.mubr.msk.f32.mxu0 %vm1317_vm4, %v7967_v30 }
 0xab4   :  { %6007 = vmatmul.mubr.msk.f32.gmra.mrb[10].mxu0 %vm1317_vm4, %v7976_v33 }
 0xab5   :  { %6009 = vmatprep.mubr.msk.f32.mxu0 %vm1317_vm4, %v7981_v34 }
 0xab8   :  { %6010 = vmatmul.mubr.msk.f32.gmra.mrb[12].mxu0 %vm1317_vm4, %v7990_v35 }
 0xab9   :  { %6012 = vmatprep.mubr.msk.f32.mxu0 %vm1317_vm4, %v7995_v36 }
 0xabc   :  { %6013 = vmatmul.mubr.msk.f32.gmra.mrb[14].mxu0 %vm1317_vm4, %v8004_v37 }
 0xabd   :  { %6035 = vmatprep.mubr.msk.f32.mxu0 %vm1317_vm4, %v7947_v17 }
 0xb83   :  { %v6005_v47 = vpop.f32.mrb[8].mxu0 }
 0xb84   :  { %v5158_v48 = vmul.f32 -1.442695, %v6005_v47  ;;  %v3086_v49 = vpop.f32.mrb[9].mxu0 }
 0xb85   :  { %v5157_v50 = vmul.f32 -1.442695, %v3086_v49 }
 0xb86   :  { %6734 = vpow2.f32 %v5158_v48 }
 0xb87   :  { %6736 = vpow2.f32 %v5157_v50  ;;  %v6008_v51 = vpop.f32.mrb[10].mxu0 }
 0xb88   :  { %v5160_v52 = vmul.f32 -1.442695, %v6008_v51  ;;  %v3096_v55 = vpop.f32.mrb[11].mxu0 }
 0xb89   :  { %v5159_v56 = vmul.f32 -1.442695, %v3096_v55 }
 0xb8a   :  { %6738 = vpow2.f32 %v5160_v52 }
 0xb8b   :  { %6740 = vpow2.f32 %v5159_v56  ;;  %v6011_v57 = vpop.f32.mrb[12].mxu0 }
 0xb8c   :  { %v3106_v58 = vpop.f32.mrb[13].mxu0  ;;  %6742 = vtanh.f32 %v6011_v57 }
 0xb8d   :  { %6744 = vtanh.f32 %v3106_v58 }
 0xb8f   :  { %v6014_v59 = vpop.f32.mrb[14].mxu0 }
 0xb90   :  { %v6735_v60 = vpop.eup %6734  ;;  %v5162_v0 = vmul.f32 -1.442695, %v6014_v59  ;;  %v3116_v53 = vpop.f32.mrb[15].mxu0 }
 0xb91   :  { %v6737_v1 = vpop.eup %6736  ;;  %v3146_v54 = vadd.f32 1.0, %v6735_v60  ;;  %v5161_v2 = vmul.f32 -1.442695, %v3116_v53 }
 0xb92   :  { %v3145_v3 = vadd.f32 1.0, %v6737_v1  ;;  %6746 = vpow2.f32 %v5162_v0 }
 0xb93   :  { %6748 = vrcp.f32 %v3146_v54 }
 0xb94   :  { %v6739_v61 = vpop.eup %6738  ;;  %6750 = vrcp.f32 %v3145_v3 }
 0xb95   :  { %v6741_v62 = vpop.eup %6740  ;;  %v3148_v6 = vadd.f32 1.0, %v6739_v61  ;;  %6752 = vpow2.f32 %v5161_v2 }
 0xb96   :  { %v3147_v41 = vadd.f32 1.0, %v6741_v62  ;;  %v6743_v42 = vpop.eup %6742 }
 0xb97   :  { %6754 = vrcp.f32 %v3148_v6  ;;  %v6745_v43 = vpop.eup %6744 }
 0xb98   :  { %6756 = vrcp.f32 %v3147_v41 }
 0xb9c   :  { %v6747_v7 = vpop.eup %6746 }
 0xb9d   :  { %v6749_v8 = vpop.eup %6748  ;;  %v3166_v46 = vadd.f32 1.0, %v6747_v7 }
 0xb9e   :  { %v6751_v4 = vpop.eup %6750  ;;  %v3174_v5 = vmul.f32 %v6749_v8, %v6743_v42 }
 0xb9f   :  { %v6753_v44 = vpop.eup %6752  ;;  %v3173_v45 = vmul.f32 %v6751_v4, %v6745_v43  ;;  %6758 = vrcp.f32 %v3166_v46 }
 0xba0   :  { %v3165_v13 = vadd.f32 1.0, %v6753_v44 }
 0xba1   :  { %v6755_v12 = vpop.eup %6754 }
 0xba2   :  { %v6757_v16 = vpop.eup %6756  ;;  %v3172_v9 = vmul.f32 %v6755_v12, %v7953_v28  ;;  %6760 = vrcp.f32 %v3165_v13 }
 0xba3   :  { %v3171_v11 = vmul.f32 %v6757_v16, %v7955_v39 }
 0xba4   :  { %v8012_v10 = vadd.f32 %v3174_v5, %v3172_v9 }
 0xba5   :  { %v8014_v19 = vadd.f32 %v3173_v45, %v3171_v11 }
 0xba6   :  { %6762 = vtanh.f32 %v8012_v10  ;;  %v3184_v44 = vsel %vm1503_vm5, %v8012_v10, %v7953_v28 }
 0xba7   :  { %6764 = vtanh.f32 %v8014_v19  ;;  %v3183_v13 = vsel %vm1503_vm5, %v8014_v19, %v7955_v39 }
 0xba9   :  { %v6759_v20 = vpop.eup %6758 }
 0xbac   :  { %v6761_v21 = vpop.eup %6760 }
 0xbb0   :  { %v6763_v14 = vpop.eup %6762 }
 0xbb1   :  { %v6765_v15 = vpop.eup %6764  ;;  %v3180_v22 = vmul.f32 %v6763_v14, %v6759_v20 }
 0xbb2   :  { %v3179_v23 = vmul.f32 %v6765_v15, %v6761_v21 }
 0xbb3   :  { %v8021_v40 = vsel %vm1503_vm5, %v3180_v22, %v7953_v28 }
 0xbb4   :  { %v8026_v24 = vsel %vm1503_vm5, %v3179_v23, %v7955_v39 }
 0xbb5   :  { %v6267_v18 = vpack.c.bf16 %v8021_v40, %v8026_v24 }
 0xbb7   :  { %6268 = vmatprep.subr.bf16.mxu1 %v6267_v18 }
 0xbb8   :  { %6270 = vmatpush3.bf16.msra.mxu1 %v6267_v18 }
 0xbbb   :  { %6020 = vmatmul.mubr.msk.f32.vlgmr.msra.gmra.mrb[8].mxu1 %vm1317_vm4, %v7962_v29 }
 0xbbc   :  { %6022 = vmatprep.mubr.msk.f32.mxu1 %vm1317_vm4, %v7967_v30 }
 0xbbf   :  { %6023 = vmatmul.mubr.msk.f32.gmra.mrb[10].mxu1 %vm1317_vm4, %v7976_v33 }
 0xbc0   :  { %6025 = vmatprep.mubr.msk.f32.mxu1 %vm1317_vm4, %v7981_v34 }
 0xbc3   :  { %6026 = vmatmul.mubr.msk.f32.gmra.mrb[12].mxu1 %vm1317_vm4, %v7990_v35 }
 0xbc4   :  { %6028 = vmatprep.mubr.msk.f32.mxu1 %vm1317_vm4, %v7995_v36 }
 0xbc7   :  { %6029 = vmatmul.mubr.msk.f32.gmra.mrb[14].mxu1 %vm1317_vm4, %v8004_v37 }
 0xbc8   :  { %6051 = vmatprep.mubr.msk.f32.mxu1 %vm1317_vm4, %v7947_v17 }
 0xc8e   :  { %v6021_v25 = vpop.f32.mrb[8].mxu1 }
 0xc8f   :  { %v5172_v27 = vmul.f32 -1.442695, %v6021_v25  ;;  %v3251_v31 = vpop.f32.mrb[9].mxu1 }
 0xc90   :  { %v5171_v32 = vmul.f32 -1.442695, %v3251_v31 }
 0xc91   :  { %6766 = vpow2.f32 %v5172_v27 }
 0xc92   :  { %6768 = vpow2.f32 %v5171_v32  ;;  %v6024_v47 = vpop.f32.mrb[10].mxu1 }
 0xc93   :  { %v5174_v48 = vmul.f32 -1.442695, %v6024_v47  ;;  %v3261_v49 = vpop.f32.mrb[11].mxu1 }
 0xc94   :  { %v5173_v50 = vmul.f32 -1.442695, %v3261_v49 }
 0xc95   :  { %6770 = vpow2.f32 %v5174_v48 }
 0xc96   :  { %6772 = vpow2.f32 %v5173_v50  ;;  %v6027_v51 = vpop.f32.mrb[12].mxu1 }
 0xc97   :  { %v3271_v52 = vpop.f32.mrb[13].mxu1  ;;  %6774 = vtanh.f32 %v6027_v51 }
 0xc98   :  { %6776 = vtanh.f32 %v3271_v52 }
 0xc9a   :  { %v6030_v55 = vpop.f32.mrb[14].mxu1 }
 0xc9b   :  { %v6767_v56 = vpop.eup %6766  ;;  %v5176_v57 = vmul.f32 -1.442695, %v6030_v55  ;;  %v3281_v58 = vpop.f32.mrb[15].mxu1 }
 0xc9c   :  { %v6769_v59 = vpop.eup %6768  ;;  %v3311_v60 = vadd.f32 1.0, %v6767_v56  ;;  %v5175_v0 = vmul.f32 -1.442695, %v3281_v58 }
 0xc9d   :  { %v3310_v53 = vadd.f32 1.0, %v6769_v59  ;;  %6778 = vpow2.f32 %v5176_v57 }
 0xc9e   :  { %6780 = vrcp.f32 %v3311_v60 }
 0xc9f   :  { %v6771_v1 = vpop.eup %6770  ;;  %6782 = vrcp.f32 %v3310_v53 }
 0xca0   :  { %v6773_v54 = vpop.eup %6772  ;;  %v3313_v2 = vadd.f32 1.0, %v6771_v1  ;;  %6784 = vpow2.f32 %v5175_v0 }
 0xca1   :  { %v3312_v3 = vadd.f32 1.0, %v6773_v54  ;;  %v6775_v61 = vpop.eup %6774 }
 0xca2   :  { %6786 = vrcp.f32 %v3313_v2  ;;  %v6777_v62 = vpop.eup %6776 }
 0xca3   :  { %6788 = vrcp.f32 %v3312_v3 }
 0xca7   :  { %v6779_v6 = vpop.eup %6778 }
 0xca8   :  { %v6781_v41 = vpop.eup %6780  ;;  %v3331_v4 = vadd.f32 1.0, %v6779_v6 }
 0xca9   :  { %v6783_v42 = vpop.eup %6782  ;;  %v3339_v43 = vmul.f32 %v6781_v41, %v6775_v61 }
 0xcaa   :  { %v6785_v7 = vpop.eup %6784  ;;  %v3338_v8 = vmul.f32 %v6783_v42, %v6777_v62  ;;  %6790 = vrcp.f32 %v3331_v4 }
 0xcab   :  { %v3330_v45 = vadd.f32 1.0, %v6785_v7 }
 0xcac   :  { %v6787_v5 = vpop.eup %6786 }
 0xcad   :  { %v6789_v46 = vpop.eup %6788  ;;  %v3337_v12 = vmul.f32 %v6787_v5, %v3184_v44  ;;  %6792 = vrcp.f32 %v3330_v45 }
 0xcae   :  { %v3336_v16 = vmul.f32 %v6789_v46, %v3183_v13 }
 0xcaf   :  { %v3341_v9 = vadd.f32 %v3339_v43, %v3337_v12 }
 0xcb0   :  { %v3340_v11 = vadd.f32 %v3338_v8, %v3336_v16 }
 0xcb1   :  { %6794 = vtanh.f32 %v3341_v9  ;;  %v8056_v20 = vsel %vm1669_vm7, %v3341_v9, %v3184_v44 }
 0xcb2   :  { %6796 = vtanh.f32 %v3340_v11  ;;  %v8060_v28 = vsel %vm1669_vm7, %v3340_v11, %v3183_v13 }
 0xcb4   :  { %v6791_v10 = vpop.eup %6790 }
 0xcb7   :  { %v6793_v21 = vpop.eup %6792 }
 0xcbb   :  { %v6795_v14 = vpop.eup %6794 }
 0xcbc   :  { %v6797_v15 = vpop.eup %6796  ;;  %v3345_v39 = vmul.f32 %v6795_v14, %v6791_v10 }
 0xcbd   :  { %v3344_v19 = vmul.f32 %v6797_v15, %v6793_v21 }
 0xcbe   :  { %v8065_v22 = vsel %vm1669_vm7, %v3345_v39, %v8021_v40 }
 0xcbf   :  { %v8070_v23 = vsel %vm1669_vm7, %v3344_v19, %v8026_v24  ;;  %vm4871_vm7 = vcmask 57344  }
 0xcc0   :  { %v6271_v18 = vpack.c.bf16 %v8065_v22, %v8070_v23 }
 0xcc2   :  { %6272 = vmatprep.subr.bf16.mxu0 %v6271_v18 }
 0xcc3   :  { %6274 = vmatpush3.bf16.msra.mxu0 %v6271_v18 }
 0xcc6   :  { %6036 = vmatmul.mubr.msk.f32.vlgmr.msra.gmra.mrb[24].mxu0 %vm1317_vm4, %v7962_v29 }
 0xcc7   :  { %6038 = vmatprep.mubr.msk.f32.mxu0 %vm1317_vm4, %v7967_v30 }
 0xcca   :  { %6039 = vmatmul.mubr.msk.f32.gmra.mrb[26].mxu0 %vm1317_vm4, %v7976_v33 }
 0xccb   :  { %6041 = vmatprep.mubr.msk.f32.mxu0 %vm1317_vm4, %v7981_v34 }
 0xcce   :  { %6042 = vmatmul.mubr.msk.f32.gmra.mrb[28].mxu0 %vm1317_vm4, %v7990_v35 }
 0xccf   :  { %6044 = vmatprep.mubr.msk.f32.mxu0 %vm1317_vm4, %v7995_v36 }
 0xcd2   :  { %6045 = vmatmul.mubr.msk.f32.gmra.mrb[30].mxu0 %vm1317_vm4, %v8004_v37 }
 0xcd3   :  { %6067 = vmatprep.mubr.msk.f32.mxu0 %vm1317_vm4, %v7947_v17 }
 0xd99   :  { %v6037_v40 = vpop.f32.mrb[24].mxu0 }
 0xd9a   :  { %v5186_v24 = vmul.f32 -1.442695, %v6037_v40  ;;  %v3416_v25 = vpop.f32.mrb[25].mxu0 }
 0xd9b   :  { %v5185_v27 = vmul.f32 -1.442695, %v3416_v25 }
 0xd9c   :  { %6798 = vpow2.f32 %v5186_v24 }
 0xd9d   :  { %6800 = vpow2.f32 %v5185_v27  ;;  %v6040_v31 = vpop.f32.mrb[26].mxu0 }
 0xd9e   :  { %v5188_v32 = vmul.f32 -1.442695, %v6040_v31  ;;  %v3426_v47 = vpop.f32.mrb[27].mxu0 }
 0xd9f   :  { %v5187_v48 = vmul.f32 -1.442695, %v3426_v47 }
 0xda0   :  { %6802 = vpow2.f32 %v5188_v32 }
 0xda1   :  { %6804 = vpow2.f32 %v5187_v48  ;;  %v6043_v49 = vpop.f32.mrb[28].mxu0 }
 0xda2   :  { %v3436_v50 = vpop.f32.mrb[29].mxu0  ;;  %6806 = vtanh.f32 %v6043_v49 }
 0xda3   :  { %6808 = vtanh.f32 %v3436_v50 }
 0xda5   :  { %v6046_v51 = vpop.f32.mrb[30].mxu0 }
 0xda6   :  { %v6799_v52 = vpop.eup %6798  ;;  %v5190_v55 = vmul.f32 -1.442695, %v6046_v51  ;;  %v3446_v56 = vpop.f32.mrb[31].mxu0 }
 0xda7   :  { %v6801_v57 = vpop.eup %6800  ;;  %v3476_v58 = vadd.f32 1.0, %v6799_v52  ;;  %v5189_v59 = vmul.f32 -1.442695, %v3446_v56 }
 0xda8   :  { %v3475_v60 = vadd.f32 1.0, %v6801_v57  ;;  %6810 = vpow2.f32 %v5190_v55 }
 0xda9   :  { %6812 = vrcp.f32 %v3476_v58 }
 0xdaa   :  { %v6803_v0 = vpop.eup %6802  ;;  %6814 = vrcp.f32 %v3475_v60 }
 0xdab   :  { %v6805_v53 = vpop.eup %6804  ;;  %v3478_v1 = vadd.f32 1.0, %v6803_v0  ;;  %6816 = vpow2.f32 %v5189_v59 }
 0xdac   :  { %v3477_v54 = vadd.f32 1.0, %v6805_v53  ;;  %v6807_v2 = vpop.eup %6806 }
 0xdad   :  { %6818 = vrcp.f32 %v3478_v1  ;;  %v6809_v3 = vpop.eup %6808 }
 0xdae   :  { %6820 = vrcp.f32 %v3477_v54 }
 0xdb2   :  { %v6811_v61 = vpop.eup %6810 }
 0xdb3   :  { %v6813_v62 = vpop.eup %6812  ;;  %v3496_v7 = vadd.f32 1.0, %v6811_v61 }
 0xdb4   :  { %v6815_v6 = vpop.eup %6814  ;;  %v3504_v41 = vmul.f32 %v6813_v62, %v6807_v2 }
 0xdb5   :  { %v6817_v42 = vpop.eup %6816  ;;  %v3503_v43 = vmul.f32 %v6815_v6, %v6809_v3  ;;  %6822 = vrcp.f32 %v3496_v7 }
 0xdb6   :  { %v3495_v4 = vadd.f32 1.0, %v6817_v42 }
 0xdb7   :  { %v6819_v8 = vpop.eup %6818 }
 0xdb8   :  { %v6821_v5 = vpop.eup %6820  ;;  %v3502_v44 = vmul.f32 %v6819_v8, %v8056_v20  ;;  %6824 = vrcp.f32 %v3495_v4 }
 0xdb9   :  { %v3501_v45 = vmul.f32 %v6821_v5, %v8060_v28 }
 0xdba   :  { %v3506_v46 = vadd.f32 %v3504_v41, %v3502_v44 }
 0xdbb   :  { %v3505_v12 = vadd.f32 %v3503_v43, %v3501_v45 }
 0xdbc   :  { %6826 = vtanh.f32 %v3506_v46  ;;  %v8095_v13 = vsel %vm1835_vm8, %v3506_v46, %v8056_v20 }
 0xdbd   :  { %6828 = vtanh.f32 %v3505_v12  ;;  %v8100_v16 = vsel %vm1835_vm8, %v3505_v12, %v8060_v28 }
 0xdbf   :  { %v6823_v9 = vpop.eup %6822 }
 0xdc2   :  { %v6825_v11 = vpop.eup %6824 }
 0xdc6   :  { %v6827_v10 = vpop.eup %6826 }
 0xdc7   :  { %v6829_v21 = vpop.eup %6828  ;;  %v3510_v14 = vmul.f32 %v6827_v10, %v6823_v9 }
 0xdc8   :  { %v3509_v15 = vmul.f32 %v6829_v21, %v6825_v11 }
 0xdc9   :  { %v8105_v39 = vsel %vm1835_vm8, %v3510_v14, %v8065_v22 }
 0xdca   :  { %v8110_v20 = vsel %vm1835_vm8, %v3509_v15, %v8070_v23 }
 0xdcb   :  { %v6275_v28 = vpack.c.bf16 %v8105_v39, %v8110_v20 }
 0xdcd   :  { %6276 = vmatprep.subr.bf16.mxu1 %v6275_v28 }
 0xdce   :  { %6278 = vmatpush3.bf16.msra.mxu1 %v6275_v28 }
 0xdd1   :  { %6052 = vmatmul.mubr.msk.f32.vlgmr.msra.gmra.mrb[24].mxu1 %vm1317_vm4, %v7962_v29 }
 0xdd2   :  { %6054 = vmatprep.mubr.msk.f32.mxu1 %vm1317_vm4, %v7967_v30 }
 0xdd5   :  { %6055 = vmatmul.mubr.msk.f32.gmra.mrb[26].mxu1 %vm1317_vm4, %v7976_v33 }
 0xdd6   :  { %6057 = vmatprep.mubr.msk.f32.mxu1 %vm1317_vm4, %v7981_v34 }
 0xdd9   :  { %6058 = vmatmul.mubr.msk.f32.gmra.mrb[28].mxu1 %vm1317_vm4, %v7990_v35 }
 0xdda   :  { %6060 = vmatprep.mubr.msk.f32.mxu1 %vm1317_vm4, %v7995_v36 }
 0xddd   :  { %6061 = vmatmul.mubr.msk.f32.gmra.mrb[30].mxu1 %vm1317_vm4, %v8004_v37 }
 0xdde   :  { %6083 = vmatprep.mubr.msk.f32.mxu1 %vm1317_vm4, %v7947_v17 }
 0xea4   :  { %v6053_v19 = vpop.f32.mrb[24].mxu1 }
 0xea5   :  { %v5200_v22 = vmul.f32 -1.442695, %v6053_v19  ;;  %v3581_v23 = vpop.f32.mrb[25].mxu1 }
 0xea6   :  { %v5199_v18 = vmul.f32 -1.442695, %v3581_v23 }
 0xea7   :  { %6830 = vpow2.f32 %v5200_v22 }
 0xea8   :  { %6832 = vpow2.f32 %v5199_v18  ;;  %v6056_v40 = vpop.f32.mrb[26].mxu1 }
 0xea9   :  { %v5202_v24 = vmul.f32 -1.442695, %v6056_v40  ;;  %v3591_v25 = vpop.f32.mrb[27].mxu1 }
 0xeaa   :  { %v5201_v27 = vmul.f32 -1.442695, %v3591_v25 }
 0xeab   :  { %6834 = vpow2.f32 %v5202_v24 }
 0xeac   :  { %6836 = vpow2.f32 %v5201_v27  ;;  %v6059_v31 = vpop.f32.mrb[28].mxu1 }
 0xead   :  { %v3601_v32 = vpop.f32.mrb[29].mxu1  ;;  %6838 = vtanh.f32 %v6059_v31 }
 0xeae   :  { %6840 = vtanh.f32 %v3601_v32 }
 0xeb0   :  { %v6062_v47 = vpop.f32.mrb[30].mxu1 }
 0xeb1   :  { %v6831_v48 = vpop.eup %6830  ;;  %v5204_v49 = vmul.f32 -1.442695, %v6062_v47  ;;  %v3611_v50 = vpop.f32.mrb[31].mxu1 }
 0xeb2   :  { %v6833_v51 = vpop.eup %6832  ;;  %v3641_v52 = vadd.f32 1.0, %v6831_v48  ;;  %v5203_v55 = vmul.f32 -1.442695, %v3611_v50 }
 0xeb3   :  { %v3640_v56 = vadd.f32 1.0, %v6833_v51  ;;  %6842 = vpow2.f32 %v5204_v49 }
 0xeb4   :  { %6844 = vrcp.f32 %v3641_v52 }
 0xeb5   :  { %v6835_v57 = vpop.eup %6834  ;;  %6846 = vrcp.f32 %v3640_v56 }
 0xeb6   :  { %v6837_v58 = vpop.eup %6836  ;;  %v3643_v59 = vadd.f32 1.0, %v6835_v57  ;;  %6848 = vpow2.f32 %v5203_v55 }
 0xeb7   :  { %v3642_v60 = vadd.f32 1.0, %v6837_v58  ;;  %v6839_v0 = vpop.eup %6838 }
 0xeb8   :  { %6850 = vrcp.f32 %v3643_v59  ;;  %v6841_v53 = vpop.eup %6840 }
 0xeb9   :  { %6852 = vrcp.f32 %v3642_v60 }
 0xebd   :  { %v6843_v1 = vpop.eup %6842 }
 0xebe   :  { %v6845_v54 = vpop.eup %6844  ;;  %v3661_v6 = vadd.f32 1.0, %v6843_v1 }
 0xebf   :  { %v6847_v2 = vpop.eup %6846  ;;  %v3669_v3 = vmul.f32 %v6845_v54, %v6839_v0 }
 0xec0   :  { %v6849_v61 = vpop.eup %6848  ;;  %v3668_v62 = vmul.f32 %v6847_v2, %v6841_v53  ;;  %6854 = vrcp.f32 %v3661_v6 }
 0xec1   :  { %v3660_v42 = vadd.f32 1.0, %v6849_v61 }
 0xec2   :  { %v6851_v41 = vpop.eup %6850 }
 0xec3   :  { %v6853_v43 = vpop.eup %6852  ;;  %v3667_v7 = vmul.f32 %v6851_v41, %v8095_v13  ;;  %6856 = vrcp.f32 %v3660_v42 }
 0xec4   :  { %v3666_v8 = vmul.f32 %v6853_v43, %v8100_v16 }
 0xec5   :  { %v3671_v4 = vadd.f32 %v3669_v3, %v3667_v7 }
 0xec6   :  { %v3670_v5 = vadd.f32 %v3668_v62, %v3666_v8 }
 0xec7   :  { %6858 = vtanh.f32 %v3671_v4  ;;  %v8135_v44 = vsel %vm2001_vm9, %v3671_v4, %v8095_v13 }
 0xec8   :  { %6860 = vtanh.f32 %v3670_v5  ;;  %v8140_v45 = vsel %vm2001_vm9, %v3670_v5, %v8100_v16 }
 0xeca   :  { %v6855_v46 = vpop.eup %6854 }
 0xecd   :  { %v6857_v12 = vpop.eup %6856 }
 0xed1   :  { %v6859_v9 = vpop.eup %6858 }
 0xed2   :  { %v6861_v11 = vpop.eup %6860  ;;  %v3675_v10 = vmul.f32 %v6859_v9, %v6855_v46 }
 0xed3   :  { %v3674_v21 = vmul.f32 %v6861_v11, %v6857_v12 }
 0xed4   :  { %v8145_v14 = vsel %vm2001_vm9, %v3675_v10, %v8105_v39 }
 0xed5   :  { %v8150_v13 = vsel %vm2001_vm9, %v3674_v21, %v8110_v20 }
 0xed6   :  { %v6279_v16 = vpack.c.bf16 %v8145_v14, %v8150_v13 }
 0xed8   :  { %6280 = vmatprep.subr.bf16.mxu0 %v6279_v16 }
 0xed9   :  { %6282 = vmatpush3.bf16.msra.mxu0 %v6279_v16 }
 0xedc   :  { %6068 = vmatmul.mubr.msk.f32.vlgmr.msra.gmra.mrb[40].mxu0 %vm1317_vm4, %v7962_v29 }
 0xedd   :  { %6070 = vmatprep.mubr.msk.f32.mxu0 %vm1317_vm4, %v7967_v30 }
 0xee0   :  { %6071 = vmatmul.mubr.msk.f32.gmra.mrb[42].mxu0 %vm1317_vm4, %v7976_v33 }
 0xee1   :  { %6073 = vmatprep.mubr.msk.f32.mxu0 %vm1317_vm4, %v7981_v34 }
 0xee4   :  { %6074 = vmatmul.mubr.msk.f32.gmra.mrb[44].mxu0 %vm1317_vm4, %v7990_v35 }
 0xee5   :  { %6076 = vmatprep.mubr.msk.f32.mxu0 %vm1317_vm4, %v7995_v36 }
 0xee8   :  { %6077 = vmatmul.mubr.msk.f32.gmra.mrb[46].mxu0 %vm1317_vm4, %v8004_v37 }
 0xee9   :  { %6099 = vmatprep.mubr.msk.f32.mxu0 %vm1317_vm4, %v7947_v17 }
 0xfaf   :  { %v6069_v15 = vpop.f32.mrb[40].mxu0 }
 0xfb0   :  { %v5214_v39 = vmul.f32 -1.442695, %v6069_v15  ;;  %v3746_v20 = vpop.f32.mrb[41].mxu0 }
 0xfb1   :  { %v5213_v28 = vmul.f32 -1.442695, %v3746_v20 }
 0xfb2   :  { %6862 = vpow2.f32 %v5214_v39 }
 0xfb3   :  { %6864 = vpow2.f32 %v5213_v28  ;;  %v6072_v19 = vpop.f32.mrb[42].mxu0 }
 0xfb4   :  { %v5216_v22 = vmul.f32 -1.442695, %v6072_v19  ;;  %v3756_v23 = vpop.f32.mrb[43].mxu0 }
 0xfb5   :  { %v5215_v18 = vmul.f32 -1.442695, %v3756_v23 }
 0xfb6   :  { %6866 = vpow2.f32 %v5216_v22 }
 0xfb7   :  { %6868 = vpow2.f32 %v5215_v18  ;;  %v6075_v40 = vpop.f32.mrb[44].mxu0 }
 0xfb8   :  { %v3766_v24 = vpop.f32.mrb[45].mxu0  ;;  %6870 = vtanh.f32 %v6075_v40 }
 0xfb9   :  { %6872 = vtanh.f32 %v3766_v24 }
 0xfbb   :  { %v6078_v25 = vpop.f32.mrb[46].mxu0 }
 0xfbc   :  { %v6863_v27 = vpop.eup %6862  ;;  %v5218_v31 = vmul.f32 -1.442695, %v6078_v25  ;;  %v3776_v32 = vpop.f32.mrb[47].mxu0 }
 0xfbd   :  { %v6865_v47 = vpop.eup %6864  ;;  %v3806_v48 = vadd.f32 1.0, %v6863_v27  ;;  %v5217_v49 = vmul.f32 -1.442695, %v3776_v32 }
 0xfbe   :  { %v3805_v50 = vadd.f32 1.0, %v6865_v47  ;;  %6874 = vpow2.f32 %v5218_v31 }
 0xfbf   :  { %6876 = vrcp.f32 %v3806_v48 }
 0xfc0   :  { %v6867_v51 = vpop.eup %6866  ;;  %6878 = vrcp.f32 %v3805_v50 }
 0xfc1   :  { %v6869_v52 = vpop.eup %6868  ;;  %v3808_v55 = vadd.f32 1.0, %v6867_v51  ;;  %6880 = vpow2.f32 %v5217_v49 }
 0xfc2   :  { %v3807_v56 = vadd.f32 1.0, %v6869_v52  ;;  %v6871_v57 = vpop.eup %6870 }
 0xfc3   :  { %6882 = vrcp.f32 %v3808_v55  ;;  %v6873_v58 = vpop.eup %6872 }
 0xfc4   :  { %6884 = vrcp.f32 %v3807_v56 }
 0xfc8   :  { %v6875_v59 = vpop.eup %6874 }
 0xfc9   :  { %v6877_v60 = vpop.eup %6876  ;;  %v3826_v2 = vadd.f32 1.0, %v6875_v59 }
 0xfca   :  { %v6879_v0 = vpop.eup %6878  ;;  %v3834_v53 = vmul.f32 %v6877_v60, %v6871_v57 }
 0xfcb   :  { %v6881_v1 = vpop.eup %6880  ;;  %v3833_v54 = vmul.f32 %v6879_v0, %v6873_v58  ;;  %6886 = vrcp.f32 %v3826_v2 }
 0xfcc   :  { %v3825_v61 = vadd.f32 1.0, %v6881_v1 }
 0xfcd   :  { %v6883_v3 = vpop.eup %6882 }
 0xfce   :  { %v6885_v62 = vpop.eup %6884  ;;  %v3832_v6 = vmul.f32 %v6883_v3, %v8135_v44  ;;  %6888 = vrcp.f32 %v3825_v61 }
 0xfcf   :  { %v3831_v41 = vmul.f32 %v6885_v62, %v8140_v45 }
 0xfd0   :  { %v3836_v42 = vadd.f32 %v3834_v53, %v3832_v6 }
 0xfd1   :  { %v3835_v43 = vadd.f32 %v3833_v54, %v3831_v41 }
 0xfd2   :  { %6890 = vtanh.f32 %v3836_v42  ;;  %v8175_v7 = vsel %vm2167_vm10, %v3836_v42, %v8135_v44 }
 0xfd3   :  { %6892 = vtanh.f32 %v3835_v43  ;;  %v8180_v8 = vsel %vm2167_vm10, %v3835_v43, %v8140_v45 }
 0xfd5   :  { %v6887_v4 = vpop.eup %6886 }
 0xfd8   :  { %v6889_v5 = vpop.eup %6888 }
 0xfdc   :  { %v6891_v46 = vpop.eup %6890 }
 0xfdd   :  { %v6893_v12 = vpop.eup %6892  ;;  %v3840_v9 = vmul.f32 %v6891_v46, %v6887_v4 }
 0xfde   :  { %v3839_v11 = vmul.f32 %v6893_v12, %v6889_v5 }
 0xfdf   :  { %v8185_v10 = vsel %vm2167_vm10, %v3840_v9, %v8145_v14 }
 0xfe0   :  { %v8190_v44 = vsel %vm2167_vm10, %v3839_v11, %v8150_v13 }
 0xfe1   :  { %v6283_v45 = vpack.c.bf16 %v8185_v10, %v8190_v44 }
 0xfe3   :  { %6284 = vmatprep.subr.bf16.mxu1 %v6283_v45 }
 0xfe4   :  { %6286 = vmatpush3.bf16.msra.mxu1 %v6283_v45 }
 0xfe7   :  { %6084 = vmatmul.mubr.msk.f32.vlgmr.msra.gmra.mrb[40].mxu1 %vm1317_vm4, %v7962_v29 }
 0xfe8   :  { %6086 = vmatprep.mubr.msk.f32.mxu1 %vm1317_vm4, %v7967_v30 }
 0xfeb   :  { %6087 = vmatmul.mubr.msk.f32.gmra.mrb[42].mxu1 %vm1317_vm4, %v7976_v33 }
 0xfec   :  { %6089 = vmatprep.mubr.msk.f32.mxu1 %vm1317_vm4, %v7981_v34 }
 0xfef   :  { %6090 = vmatmul.mubr.msk.f32.gmra.mrb[44].mxu1 %vm1317_vm4, %v7990_v35 }
 0xff0   :  { %6092 = vmatprep.mubr.msk.f32.mxu1 %vm1317_vm4, %v7995_v36 }
 0xff3   :  { %6093 = vmatmul.mubr.msk.f32.gmra.mrb[46].mxu1 %vm1317_vm4, %v8004_v37 }
 0xff4   :  { %6115 = vmatprep.mubr.msk.f32.mxu1 %vm1317_vm4, %v7947_v17 }
0x10ba   :  { %v6085_v21 = vpop.f32.mrb[40].mxu1 }
0x10bb   :  { %v5228_v14 = vmul.f32 -1.442695, %v6085_v21  ;;  %v3911_v13 = vpop.f32.mrb[41].mxu1 }
0x10bc   :  { %v5227_v16 = vmul.f32 -1.442695, %v3911_v13 }
0x10bd   :  { %6894 = vpow2.f32 %v5228_v14 }
0x10be   :  { %6896 = vpow2.f32 %v5227_v16  ;;  %v6088_v15 = vpop.f32.mrb[42].mxu1 }
0x10bf   :  { %v5230_v39 = vmul.f32 -1.442695, %v6088_v15  ;;  %v3921_v20 = vpop.f32.mrb[43].mxu1 }
0x10c0   :  { %v5229_v28 = vmul.f32 -1.442695, %v3921_v20 }
0x10c1   :  { %6898 = vpow2.f32 %v5230_v39 }
0x10c2   :  { %6900 = vpow2.f32 %v5229_v28  ;;  %v6091_v19 = vpop.f32.mrb[44].mxu1 }
0x10c3   :  { %v3931_v22 = vpop.f32.mrb[45].mxu1  ;;  %6902 = vtanh.f32 %v6091_v19 }
0x10c4   :  { %6904 = vtanh.f32 %v3931_v22 }
0x10c6   :  { %v6094_v23 = vpop.f32.mrb[46].mxu1 }
0x10c7   :  { %v6895_v18 = vpop.eup %6894  ;;  %v5232_v40 = vmul.f32 -1.442695, %v6094_v23  ;;  %v3941_v24 = vpop.f32.mrb[47].mxu1 }
0x10c8   :  { %v6897_v17 = vpop.eup %6896  ;;  %v3971_v25 = vadd.f32 1.0, %v6895_v18  ;;  %v5231_v27 = vmul.f32 -1.442695, %v3941_v24 }
0x10c9   :  { %v3970_v31 = vadd.f32 1.0, %v6897_v17  ;;  %6906 = vpow2.f32 %v5232_v40 }
0x10ca   :  { %6908 = vrcp.f32 %v3971_v25 }
0x10cb   :  { %v6899_v32 = vpop.eup %6898  ;;  %6910 = vrcp.f32 %v3970_v31 }
0x10cc   :  { %v6901_v47 = vpop.eup %6900  ;;  %v3973_v48 = vadd.f32 1.0, %v6899_v32  ;;  %6912 = vpow2.f32 %v5231_v27 }
0x10cd   :  { %v3972_v49 = vadd.f32 1.0, %v6901_v47  ;;  %v6903_v50 = vpop.eup %6902 }
0x10ce   :  { %6914 = vrcp.f32 %v3973_v48  ;;  %v6905_v51 = vpop.eup %6904 }
0x10cf   :  { %6916 = vrcp.f32 %v3972_v49 }
0x10d3   :  { %v6907_v52 = vpop.eup %6906 }
0x10d4   :  { %v6909_v55 = vpop.eup %6908  ;;  %v3991_v60 = vadd.f32 1.0, %v6907_v52 }
0x10d5   :  { %v6911_v56 = vpop.eup %6910  ;;  %v3999_v57 = vmul.f32 %v6909_v55, %v6903_v50 }
0x10d6   :  { %v6913_v58 = vpop.eup %6912  ;;  %v3998_v59 = vmul.f32 %v6911_v56, %v6905_v51  ;;  %6918 = vrcp.f32 %v3991_v60 }
0x10d7   :  { %v3990_v53 = vadd.f32 1.0, %v6913_v58 }
0x10d8   :  { %v6915_v0 = vpop.eup %6914 }
0x10d9   :  { %v6917_v1 = vpop.eup %6916  ;;  %v3997_v54 = vmul.f32 %v6915_v0, %v8175_v7  ;;  %6920 = vrcp.f32 %v3990_v53 }
0x10da   :  { %v3996_v2 = vmul.f32 %v6917_v1, %v8180_v8 }
0x10db   :  { %v4001_v3 = vadd.f32 %v3999_v57, %v3997_v54 }
0x10dc   :  { %v4000_v61 = vadd.f32 %v3998_v59, %v3996_v2 }
0x10dd   :  { %6922 = vtanh.f32 %v4001_v3  ;;  %v8215_v62 = vsel %vm2333_vm11, %v4001_v3, %v8175_v7 }
0x10de   :  { %6924 = vtanh.f32 %v4000_v61  ;;  %v8220_v6 = vsel %vm2333_vm11, %v4000_v61, %v8180_v8 }
0x10e0   :  { %v6919_v41 = vpop.eup %6918 }
0x10e3   :  { %v6921_v42 = vpop.eup %6920 }
0x10e7   :  { %v6923_v43 = vpop.eup %6922 }
0x10e8   :  { %v6925_v4 = vpop.eup %6924  ;;  %v4005_v5 = vmul.f32 %v6923_v43, %v6919_v41 }
0x10e9   :  { %v4004_v46 = vmul.f32 %v6925_v4, %v6921_v42  ;;  %v6999_v4 = vld [vmem:[%s8406_s5 + $0x48] sm:$0xff] }
0x10ea   :  { %v8225_v12 = vsel %vm2333_vm11, %v4005_v5, %v8185_v10  ;;  %v7001_v5 = vld [vmem:[%s8406_s5 + $0x58] sm:$0xff] }
0x10eb   :  { %v8230_v7 = vsel %vm2333_vm11, %v4004_v46, %v8190_v44  ;;  %v7002_v46 = vld [vmem:[%s8406_s5 + $0x60] sm:$0xff] }
0x10ec   :  { %v6287_v8 = vpack.c.bf16 %v8225_v12, %v8230_v7 }
0x10ee   :  { %6288 = vmatprep.subr.bf16.mxu0 %v6287_v8 }
0x10ef   :  { %6290 = vmatpush3.bf16.msra.mxu0 %v6287_v8  ;;  %v7005_v8 = vld [vmem:[%s8406_s5 + $0x78] sm:$0xff] }
0x10f2   :  { %6100 = vmatmul.mubr.msk.f32.vlgmr.msra.gmra.mrb[56].mxu0 %vm1317_vm4, %v7962_v29  ;;  %v8251_v29 = vld [vmem:[%s8407_s6 + $0x30] sm:$0xff] }
0x10f3   :  { %6102 = vmatprep.mubr.msk.f32.mxu0 %vm1317_vm4, %v7967_v30  ;;  %v8256_v30 = vld [vmem:[%s8407_s6 + $0x40] sm:$0xff]  ;;  %4352 = vrot.lane.b32.xlu1 %v8251_v29, %s7033_s15 }
0x10f4   :  { %4356 = vrot.lane.b32.xlu0 %v8256_v30, %s7033_s15 }
0x10f6   :  { %6103 = vmatmul.mubr.msk.f32.gmra.mrb[58].mxu0 %vm1317_vm4, %v7976_v33  ;;  %v8265_v33 = vld [vmem:[%s8407_s6 + $0x38] sm:$0xff] }
0x10f7   :  { %6105 = vmatprep.mubr.msk.f32.mxu0 %vm1317_vm4, %v7981_v34  ;;  %4354 = vrot.lane.b32.xlu1 %v8265_v33, %s7033_s15  ;;  %v8273_v34 = vld [vmem:[%s8407_s6 + $0x48] sm:$0xff] }
0x10f8   :  { %4550 = vperm.xlu0 %6469, %v8251_v29  }
0x10fa   :  { %6106 = vmatmul.mubr.msk.f32.gmra.mrb[60].mxu0 %vm1317_vm4, %v7990_v35 }
0x10fb   :  { %6108 = vmatprep.mubr.msk.f32.mxu0 %vm1317_vm4, %v7995_v36  ;;  %4358 = vrot.lane.b32.xlu1 %v8273_v34, %s7033_s15 }
0x10fc   :  { %4562 = vperm.xlu0 %6469, %v8273_v34  }
0x10fe   :  { %6109 = vmatmul.mubr.msk.f32.gmra.mrb[62].mxu0 %vm1317_vm4, %v8004_v37 }
0x10ff   :  { %4554 = vperm.xlu1 %6470, %v8265_v33   ;;  %6153 = vmatprep.mubr.msk.f32.mxu0 %vm4597_vm2, %v4573_v63 }
0x1103   :  { %4558 = vperm.xlu1 %6470, %v8256_v30  }
0x11c5   :  { %v6101_v35 = vpop.f32.mrb[56].mxu0 }
0x11c6   :  { %v5242_v36 = vmul.f32 -1.442695, %v6101_v35  ;;  %v4076_v37 = vpop.f32.mrb[57].mxu0  ;;  %v4353_v35 = vpop.permute.xlu1 %4352 }
0x11c7   :  { %v5241_v9 = vmul.f32 -1.442695, %v4076_v37 }
0x11c8   :  { %6926 = vpow2.f32 %v5242_v36  ;;  %v4357_v36 = vpop.permute.xlu0 %4356 }
0x11c9   :  { %6928 = vpow2.f32 %v5241_v9  ;;  %v6104_v11 = vpop.f32.mrb[58].mxu0 }
0x11ca   :  { %v5244_v10 = vmul.f32 -1.442695, %v6104_v11  ;;  %v4086_v44 = vpop.f32.mrb[59].mxu0  ;;  %v4355_v37 = vpop.permute.xlu1 %4354 }
0x11cb   :  { %v5243_v45 = vmul.f32 -1.442695, %v4086_v44 }
0x11cc   :  { %6930 = vpow2.f32 %v5244_v10 }
0x11cd   :  { %6932 = vpow2.f32 %v5243_v45  ;;  %v6107_v21 = vpop.f32.mrb[60].mxu0 }
0x11ce   :  { %v4096_v14 = vpop.f32.mrb[61].mxu0  ;;  %6934 = vtanh.f32 %v6107_v21  ;;  %v4359_v9 = vpop.permute.xlu1 %4358 }
0x11cf   :  { %6936 = vtanh.f32 %v4096_v14 }
0x11d1   :  { %v6110_v13 = vpop.f32.mrb[62].mxu0 }
0x11d2   :  { %v6927_v16 = vpop.eup %6926  ;;  %v5246_v15 = vmul.f32 -1.442695, %v6110_v13  ;;  %v4106_v39 = vpop.f32.mrb[63].mxu0 }
0x11d3   :  { %v6929_v20 = vpop.eup %6928  ;;  %v4136_v28 = vadd.f32 1.0, %v6927_v16  ;;  %v5245_v19 = vmul.f32 -1.442695, %v4106_v39 }
0x11d4   :  { %v4135_v22 = vadd.f32 1.0, %v6929_v20  ;;  %6938 = vpow2.f32 %v5246_v15 }
0x11d5   :  { %6940 = vrcp.f32 %v4136_v28 }
0x11d6   :  { %v6931_v23 = vpop.eup %6930  ;;  %6942 = vrcp.f32 %v4135_v22 }
0x11d7   :  { %v6933_v18 = vpop.eup %6932  ;;  %v4138_v40 = vadd.f32 1.0, %v6931_v23  ;;  %6944 = vpow2.f32 %v5245_v19 }
0x11d8   :  { %v4137_v24 = vadd.f32 1.0, %v6933_v18  ;;  %v6935_v17 = vpop.eup %6934 }
0x11d9   :  { %6946 = vrcp.f32 %v4138_v40  ;;  %v6937_v25 = vpop.eup %6936 }
0x11da   :  { %6948 = vrcp.f32 %v4137_v24 }
0x11de   :  { %v6939_v27 = vpop.eup %6938 }
0x11df   :  { %v6941_v31 = vpop.eup %6940  ;;  %v4156_v50 = vadd.f32 1.0, %v6939_v27 }
0x11e0   :  { %v6943_v32 = vpop.eup %6942  ;;  %v4164_v47 = vmul.f32 %v6941_v31, %v6935_v17 }
0x11e1   :  { %v6945_v48 = vpop.eup %6944  ;;  %v4163_v49 = vmul.f32 %v6943_v32, %v6937_v25  ;;  %6950 = vrcp.f32 %v4156_v50 }
0x11e2   :  { %v4155_v52 = vadd.f32 1.0, %v6945_v48 }
0x11e3   :  { %v6947_v51 = vpop.eup %6946 }
0x11e4   :  { %v6949_v55 = vpop.eup %6948  ;;  %v4162_v56 = vmul.f32 %v6947_v51, %v8215_v62  ;;  %6952 = vrcp.f32 %v4155_v52 }
0x11e5   :  { %v4161_v57 = vmul.f32 %v6949_v55, %v8220_v6 }
0x11e6   :  { %v4166_v58 = vadd.f32 %v4164_v47, %v4162_v56 }
0x11e7   :  { %v4165_v59 = vadd.f32 %v4163_v49, %v4161_v57 }
0x11e8   :  { %6954 = vtanh.f32 %v4166_v58  ;;  %v8285_v60 = vsel %vm2499_vm12, %v4166_v58, %v8215_v62 }
0x11e9   :  { %6956 = vtanh.f32 %v4165_v59  ;;  %v8290_v0 = vsel %vm2499_vm12, %v4165_v59, %v8220_v6  ;;  %v6998_v6 = vld [vmem:[%s8401_s0] sm:$0xf] }
0x11ea   :  { %v4343_v42 = vmax.f32 %v6998_v6, 0.0 }
0x11eb   :  { %v6951_v53 = vpop.eup %6950 }
0x11ee   :  { %v6953_v1 = vpop.eup %6952 }
0x11f2   :  { %v6955_v54 = vpop.eup %6954 }
0x11f3   :  { %v6957_v2 = vpop.eup %6956  ;;  %v4170_v3 = vmul.f32 %v6955_v54, %v6951_v53 }
0x11f4   :  { %v4169_v61 = vmul.f32 %v6957_v2, %v6953_v1 }
0x11f5   :  { %v8295_v41 = vsel %vm2499_vm12, %v4170_v3, %v8225_v12  ;;  %v7003_v12 = vld [vmem:[%s8406_s5 + $0x68] sm:$0xff] }
0x11f6   :  { %v8300_v62 = vsel %vm2499_vm12, %v4169_v61, %v8230_v7  ;;  %v7004_v7 = vld [vmem:[%s8406_s5 + $0x70] sm:$0xff] }
0x11f7   :  { %v6291_v43 = vpack.c.bf16 %v8295_v41, %v8300_v62 }
0x11f9   :  { %6292 = vmatprep.subr.bf16.mxu1 %v6291_v43 }
0x11fa   :  { %6294 = vmatpush3.bf16.msra.mxu1 %v6291_v43  ;;  %v7006_v43 = vld [vmem:[%s8403_s2] ss:$0 sm:$0xff] }
0x11fb   :  { %6127 = vmatprep.subr.msk.mxu1 %vm2693_vm13, %v4343_v42  ;;  %vm4338_vm0 = vcmp.ge.s32.totalorder %v7006_v43, 8 }
0x11fd   :  { %6116 = vmatmul.mubr.msk.f32.vlgmr.msra.gmra.mrb[56].mxu1 %vm1317_vm4, %v6999_v4 }
0x11fe   :  { %6118 = vmatprep.mubr.msk.f32.mxu1 %vm1317_vm4, %v7000_v26  ;;  %6128 = vmatpush3.msk.msra.mxu1 %vm2693_vm13, %v4343_v42 }
0x1201   :  { %6119 = vmatmul.mubr.msk.f32.gmra.mrb[58].mxu1 %vm1317_vm4, %v7001_v5 }
0x1202   :  { %6121 = vmatprep.mubr.msk.f32.mxu1 %vm1317_vm4, %v7002_v46 }
0x1205   :  { %6122 = vmatmul.mubr.msk.f32.gmra.mrb[60].mxu1 %vm1317_vm4, %v7003_v12 }
0x1206   :  { %6124 = vmatprep.mubr.msk.f32.mxu1 %vm1317_vm4, %v7004_v7 }
0x1209   :  { %6125 = vmatmul.mubr.msk.f32.gmra.mrb[62].mxu1 %vm1317_vm4, %v7005_v8  ;;  %v4696_v8 = vld [vmem:[%s8407_s6 + $0x78] sm:$0x3] }
0x120a   :  { %6129 = vmatprep.mubr.msk.f32.mxu1 %vm2684_vm14, %v4353_v35  ;;  %v4551_v35 = vpop.permute.xlu0 %4550 }
0x120d   :  { %6130 = vmatmul.mubr.msk.f32.vlgmr.msra.gmra.mrb[66].mxu1 %vm2684_vm14, %v4355_v37 }
0x120e   :  { %6132 = vmatprep.mubr.msk.f32.mxu1 %vm2684_vm14, %v4357_v36  ;;  %v4555_v36 = vpop.permute.xlu1 %4554 }
0x1211   :  { %6133 = vmatmul.mubr.msk.f32.gmra.mrb[68].mxu1 %vm2684_vm14, %v4359_v9 }
0x1212   :  { %6139 = vmatprep.mubr.msk.f32.mxu1 %vm1317_vm4, %v8251_v29 }
0x12d0   :  { %v6117_v11 = vpop.f32.mrb[56].mxu1 }
0x12d1   :  { %v5256_v10 = vmul.f32 -1.442695, %v6117_v11  ;;  %v4241_v44 = vpop.f32.mrb[57].mxu1 }
0x12d2   :  { %v5255_v45 = vmul.f32 -1.442695, %v4241_v44 }
0x12d3   :  { %6958 = vpow2.f32 %v5256_v10 }
0x12d4   :  { %6960 = vpow2.f32 %v5255_v45  ;;  %v6120_v21 = vpop.f32.mrb[58].mxu1 }
0x12d5   :  { %v5258_v14 = vmul.f32 -1.442695, %v6120_v21  ;;  %v4251_v13 = vpop.f32.mrb[59].mxu1 }
0x12d6   :  { %v5257_v16 = vmul.f32 -1.442695, %v4251_v13  ;;  %v4559_v13 = vpop.permute.xlu1 %4558 }
0x12d7   :  { %6962 = vpow2.f32 %v5258_v14  ;;  %v4563_v14 = vpop.permute.xlu0 %4562 }
0x12d8   :  { %6964 = vpow2.f32 %v5257_v16  ;;  %v6123_v15 = vpop.f32.mrb[60].mxu1 }
0x12d9   :  { %v4261_v39 = vpop.f32.mrb[61].mxu1  ;;  %6966 = vtanh.f32 %v6123_v15 }
0x12da   :  { %6968 = vtanh.f32 %v4261_v39 }
0x12dc   :  { %v6126_v20 = vpop.f32.mrb[62].mxu1 }
0x12dd   :  { %v6959_v28 = vpop.eup %6958  ;;  %v5260_v19 = vmul.f32 -1.442695, %v6126_v20  ;;  %v4271_v22 = vpop.f32.mrb[63].mxu1 }
0x12de   :  { %v6961_v29 = vpop.eup %6960  ;;  %v4301_v23 = vadd.f32 1.0, %v6959_v28  ;;  %v5259_v18 = vmul.f32 -1.442695, %v4271_v22 }
0x12df   :  { %v4300_v40 = vadd.f32 1.0, %v6961_v29  ;;  %6970 = vpow2.f32 %v5260_v19 }
0x12e0   :  { %6972 = vrcp.f32 %v4301_v23 }
0x12e1   :  { %v6963_v24 = vpop.eup %6962  ;;  %6974 = vrcp.f32 %v4300_v40 }
0x12e2   :  { %v6965_v17 = vpop.eup %6964  ;;  %v4303_v25 = vadd.f32 1.0, %v6963_v24  ;;  %6976 = vpow2.f32 %v5259_v18 }
0x12e3   :  { %v4302_v27 = vadd.f32 1.0, %v6965_v17  ;;  %v6967_v31 = vpop.eup %6966 }
0x12e4   :  { %6978 = vrcp.f32 %v4303_v25  ;;  %v6969_v32 = vpop.eup %6968 }
0x12e5   :  { %6980 = vrcp.f32 %v4302_v27 }
0x12e9   :  { %v6971_v47 = vpop.eup %6970 }
0x12ea   :  { %v6973_v48 = vpop.eup %6972  ;;  %v4321_v55 = vadd.f32 1.0, %v6971_v47 }
0x12eb   :  { %v6975_v49 = vpop.eup %6974  ;;  %v4329_v50 = vmul.f32 %v6973_v48, %v6967_v31 }
0x12ec   :  { %v6977_v51 = vpop.eup %6976  ;;  %v4328_v52 = vmul.f32 %v6975_v49, %v6969_v32  ;;  %6982 = vrcp.f32 %v4321_v55 }
0x12ed   :  { %v4320_v57 = vadd.f32 1.0, %v6977_v51 }
0x12ee   :  { %v6979_v56 = vpop.eup %6978 }
0x12ef   :  { %v6981_v58 = vpop.eup %6980  ;;  %v4327_v59 = vmul.f32 %v6979_v56, %v8285_v60  ;;  %6984 = vrcp.f32 %v4320_v57  ;;  %v7037_v57 = vmov 0.0|0.0  }
0x12f0   :  { %v4326_v53 = vmul.f32 %v6981_v58, %v8290_v0  ;;  %v4788_v58 = vld [vmem:[%s8407_s6 + $0x80] sm:$0x1] }
0x12f1   :  { %v4331_v1 = vadd.f32 %v4329_v50, %v4327_v59  ;;  %v7039_v59 = vmov 10  }
0x12f2   :  { %v4330_v54 = vadd.f32 %v4328_v52, %v4326_v53 }
0x12f3   :  { %6986 = vtanh.f32 %v4331_v1 }
0x12f4   :  { %6988 = vtanh.f32 %v4330_v54 }
0x12f6   :  { %v6983_v2 = vpop.eup %6982 }
0x12f9   :  { %v6985_v3 = vpop.eup %6984 }
0x12fd   :  { %v6987_v61 = vpop.eup %6986 }
0x12fe   :  { %v6989_v6 = vpop.eup %6988  ;;  %v4335_v42 = vmul.f32 %v6987_v61, %v6983_v2 }
0x12ff   :  { %v4334_v4 = vmul.f32 %v6989_v6, %v6985_v3 }
0x1300   :  { %v4337_v60 = vsel %vm2665_vm15, %v4335_v42, %v8295_v41  ;;  %v4574_v41 = vld [vmem:[%s8407_s6 + $0x58] sm:$0xff] }
0x1301   :  { %v4336_v0 = vsel %vm2665_vm15, %v4334_v4, %v8300_v62  ;;  %v4340_v26 = vsel %vm4338_vm0, %v4337_v60, 0.0  ;;  %v7036_v62 = vmov 32  }
0x1302   :  { %v4339_v5 = vsel %vm4338_vm0, %v4336_v0, 0.0  ;;  %v4342_v46 = vmax.f32 %v4340_v26, 0.0  ;;  %6471 = vset.pattern.permute.xlu1 %v7036_v62  ;;  %6472 = vset.pattern.permute.xlu0 %v7036_v62 }
0x1303   :  { %v4341_v12 = vmax.f32 %v4339_v5, 0.0  ;;  %4579 = vperm.xlu1 %6471, %v4573_v63   ;;  %4584 = vperm.xlu0 %6472, %v4574_v41  }
0x1305   :  { %v6295_v7 = vpack.c.bf16 %v4342_v46, %v4341_v12 }
0x1307   :  { %6296 = vmatprep.subr.bf16.mxu1 %v6295_v7 }
0x1308   :  { %6298 = vmatpush3.bf16.msra.mxu1 %v6295_v7 }
0x130b   :  { %6140 = vmatmul.mubr.msk.f32.vlgmr.msra.gmra.mrb[66].mxu1 %vm1317_vm4, %v8265_v33  ;;  %v4575_v33 = vld [vmem:[%s8407_s6 + $0x60] sm:$0xff] }
0x130c   :  { %6142 = vmatprep.mubr.msk.f32.mxu1 %vm1317_vm4, %v8256_v30  ;;  %v4695_v30 = vld [vmem:[%s8407_s6 + $0x70] sm:$0xff]  ;;  %4589 = vperm.xlu1 %6471, %v4575_v33  }
0x130d   :  { %4699 = vperm.xlu0 %6472, %v4695_v30  }
0x130f   :  { %6143 = vmatmul.mubr.msk.f32.gmra.mrb[68].mxu1 %vm1317_vm4, %v8273_v34  ;;  %v4576_v34 = vld [vmem:[%s8407_s6 + $0x68] sm:$0xff]  ;;  %vm4797_vm4 = vcmask 1041408   ;;  %s7040_s6 = smov [#allocation2]  }
0x1310   :  { %6167 = vmatprep.mubr.msk.f32.mxu1 %vm4597_vm2, %v4695_v30  ;;  %4594 = vperm.xlu1 %6471, %v4576_v34   ;;  %vm6317_vm5 = vmpackc.low %vm4797_vm4, %vm7031_vm1  ;;  %s4879_s23 = sshll.u32 %s7040_s6, 4  ;;  %s4880_s23 = int_to_ptr.vmem [resolvable:$true] %s4879_s23 }
0x1311   :  { %6473 = vset.pattern.permute.xlu0 %v7039_v59  ;;  %s7007_s3 = scalar_lea.vmem %s4880_s23, 16  ;;  %s7011_s24 = scalar_lea.vmem %s4880_s23, 32 }
0x1312   :  { %4791 = vperm.xlu0 %6473, %v4788_v58   ;;  %p7008_p0 = scmp.ne.s32.totalorder %s4880_s23, %s7007_s3  ;;  %p7012_p1 = scmp.lt.s32.totalorder %s4880_s23, %s4880_s23 }
0x1313   :  { %p7013_p2 = scmp.lt.s32.totalorder %s7011_s24, %s7007_s3 }
0x1314   :  { %4704 = vperm.xlu1 %6471, %v4696_v8  }
0x1315   :  { %p7014_p3 = por %p7013_p2, %p7012_p1 }
0x1317   :  { %p7015_p4 = pnand %p7014_p3, %p7008_p0 }
0x1382   :  { %v4580_v29 = vpop.permute.xlu1 %4579  ;;  %v4585_v40 = vpop.permute.xlu0 %4584 }
0x138b   :  { %v4590_v23 = vpop.permute.xlu1 %4589 }
0x138c   :  { %v4700_v54 = vpop.permute.xlu0 %4699 }
0x138f   :  { %v4595_v47 = vpop.permute.xlu1 %4594 }
0x1393   :  { %v4705_v53 = vpop.permute.xlu1 %4704 }
0x13de   :  { %v6141_v37 = vpop.f32.mrb[66].mxu1 }
0x13df   :  { %v4566_v9 = vadd.f32 %v6141_v37, %v4555_v36  ;;  %v4530_v11 = vpop.f32.mrb[67].mxu1 }
0x13e0   :  { %v4565_v10 = vadd.f32 %v4551_v35, %v4530_v11 }
0x13e1   :  { %v4570_v44 = vmax.f32 %v4566_v9, 0.0 }
0x13e2   :  { %v4569_v45 = vmax.f32 %v4565_v10, 0.0  ;;  %v6144_v21 = vpop.f32.mrb[68].mxu1 }
0x13e3   :  { %v4568_v16 = vadd.f32 %v6144_v21, %v4563_v14  ;;  %v4540_v15 = vpop.f32.mrb[69].mxu1 }
0x13e4   :  { %v6299_v39 = vpack.c.bf16 %v4570_v44, %v4569_v45  ;;  %v4567_v20 = vadd.f32 %v4559_v13, %v4540_v15 }
0x13e5   :  { %v4572_v28 = vmax.f32 %v4568_v16, 0.0 }
0x13e6   :  { %v4571_v19 = vmax.f32 %v4567_v20, 0.0  ;;  %6300 = vmatprep.subr.bf16.mxu0 %v6299_v39 }
0x13e7   :  { %6302 = vmatpush3.bf16.msra.mxu0 %v6299_v39 }
0x13e8   :  { %v6303_v22 = vpack.c.bf16 %v4572_v28, %v4571_v19 }
0x13ea   :  { %6304 = vmatprep.subr.bf16.mxu0 %v6303_v22 }
0x13eb   :  { %6306 = vmatpush3.bf16.msra.mxu0 %v6303_v22 }
0x13ec   :  { %6315 = vmatprep.subr.bf16.mxu0 %v7037_v57 }
0x13ee   :  { %6154 = vmatmul.mubr.msk.f32.vlgmr.msra.gmra.mrb[68].mxu0 %vm4597_vm2, %v4574_v41 }
0x13ef   :  { %6156 = vmatprep.mubr.msk.f32.mxu0 %vm4597_vm2, %v4575_v33 }
0x13f2   :  { %6157 = vmatmul.mubr.msk.f32.gmra.mrb[70].mxu0 %vm4597_vm2, %v4576_v34 }
0x13f3   :  { %6174 = vmatprep.mubr.msk.f32.mxu0 %vm7038_vm3, %v7032_v38  ;;  %v4792_v38 = vpop.permute.xlu0 %4791 }
0x14c1   :  { %v6155_v18 = vpop.f32.mrb[68].mxu0 }
0x14c2   :  { %v4678_v24 = vadd.f32 %v6155_v18, %v4585_v40  ;;  %v4672_v17 = vpop.f32.mrb[69].mxu0 }
0x14c3   :  { %v4673_v25 = vadd.f32 %v4672_v17, %v4580_v29 }
0x14c4   :  { %v4692_v27 = vmax.f32 %v4678_v24, 0.0 }
0x14c5   :  { %v4691_v31 = vmax.f32 %v4673_v25, 0.0  ;;  %v6158_v32 = vpop.f32.mrb[70].mxu0 }
0x14c6   :  { %v4688_v48 = vadd.f32 %v6158_v32, %v4595_v47  ;;  %v4682_v49 = vpop.f32.mrb[71].mxu0 }
0x14c7   :  { %v6307_v50 = vpack.c.bf16 %v4692_v27, %v4691_v31  ;;  %v4683_v51 = vadd.f32 %v4682_v49, %v4590_v23 }
0x14c8   :  { %v4694_v52 = vmax.f32 %v4688_v48, 0.0 }
0x14c9   :  { %v4693_v55 = vmax.f32 %v4683_v51, 0.0  ;;  %6308 = vmatprep.subr.bf16.mxu1 %v6307_v50 }
0x14ca   :  { %6310 = vmatpush3.bf16.msra.mxu1 %v6307_v50 }
0x14cb   :  { %v6311_v56 = vpack.c.bf16 %v4694_v52, %v4693_v55 }
0x14cd   :  { %6312 = vmatprep.subr.bf16.mxu1 %v6311_v56 }
0x14ce   :  { %6314 = vmatpush3.bf16.msra.mxu1 %v6311_v56 }
0x14d1   :  { %6168 = vmatmul.mubr.msk.f32.vlgmr.msra.gmra.mrb[70].mxu1 %vm4597_vm2, %v4696_v8 }
0x15a4   :  { %v6169_v1 = vpop.f32.mrb[70].mxu1 }
0x15a5   :  { %v4783_v2 = vadd.f32 %v6169_v1, %v4705_v53  ;;  %v4777_v3 = vpop.f32.mrb[71].mxu1 }
0x15a6   :  { %v4778_v61 = vadd.f32 %v4777_v3, %v4700_v54 }
0x15a7   :  { %v4787_v6 = vmax.f32 %v4783_v2, 0.0 }
0x15a8   :  { %v4786_v42 = vmax.f32 %v4778_v61, 0.0 }
0x15aa   :  { %v6316_v43 = vpack.c.bf16 %v4787_v6, %v4786_v42 }
0x15ac   :  { %6318 = vmatpush3.bf16.msk.msra.mxu0 %vm6317_vm5, %v6316_v43 }
0x15af   :  { %6175 = vmatmul.mubr.msk.f32.vlgmr.msra.gmra.mrb[72].mxu0 %vm4794_vm6, %v4788_v58 }
0x1682   :  { %v4867_v4 = vpop.f32.mrb[72].mxu0 }
0x1683   :  { %v4868_v60 = vadd.f32 %v4867_v4, %v4792_v38  ;;  %v6176_v0 = vpop.f32.mrb[73].mxu0 }
0x1685   :  { %4872 = vst.msk [vmem:[#allocation2] sm:$0x1] %vm4871_vm7, %v4868_v60 }
0x1686   :  { %7018 = shalt.err (!%p7015_p4)
}
0x1687   :  { %s7019_s26 = scalar_lea.hbm %s8408_s7, 16 }
0x1688   :  { %p7020_p5 = scmp.ne.s32.totalorder %s8408_s7, %s7019_s26  ;;  %p7023_p6 = scmp.lt.u32.totalorder %s7019_s26, %s8408_s7 }
0x168a   :  { %p7025_p7 = pnand %p7023_p6, %p7020_p5 }
0x168c   :  { %7028 = shalt.err (!%p7025_p7)
}
0x168d   :  { %4882 = dma.vmem_to_hbm [thread:$0]  %s4880_s23, 16, %s8408_s7, [#allocation3]  }
0x168e   :  { %7029 = dma.done.wait [#allocation3], 16  }
0x168f   :  { %7030 = vsyncadd [#allocation3], 4294967280 }
0x1690   :  { %4886 = vsyncpa [#allocation3], 1 }

</bundles_post_ra>
